<compile_context>
chip_gen: v7x
topology: tpu7x:2x2x1
jax: 0.10.0
libtpu: 0.0.40
codegen_flags: <defaults>
</compile_context>

<pallas_src>
import functools

import jax
import jax.numpy as jnp
import numpy as np
from jax.experimental import pallas as pl
from jax.experimental.pallas import tpu as pltpu

HIDDEN_SIZE = 768
OUT_CLASSES = 2
OUT_PAD = 128          # lane-dense padded width for the final projection
EPS = 1e-6
NEG_BIG = -1e30        # bias of padded logit columns -> exp() underflows to 0


def _tpu_generation() -> int:
    """Best-effort TPU generation (5 / 6 / 7) from the device kind string."""
    try:
        kind = jax.devices()[0].device_kind.lower()
    except Exception:
        return 6
    for g in (7, 6, 5, 4):
        if f"v{g}" in kind:
            return g
    return 6


def _vmem_cap_bytes(gen: int) -> int:
    """Generation-aware ceiling for the scoped-VMEM request."""
    try:
        cap = int(pltpu.get_tpu_info().vmem_capacity_bytes)
        return (cap * 3) // 4                     # leave headroom for scratch
    except Exception:
        return (48 << 20) if gen >= 7 else (60 << 20)


def _choose_tb(B: int, gen: int) -> int:
    """Batch-tile selection: single grid step for small/medium B (avoids
    per-step overhead and, on v7x, dual-core weight duplication); otherwise a
    large tile chosen to minimize last-tile zero padding."""
    single_step_max = 2048 if gen >= 7 else 1024
    if B <= single_step_max:
        return B
    candidates = (1024, 512, 256)
    return min(candidates, key=lambda t: ((-(-B // t)) * t - B, -t))


def _vecdiff_kernel(p_ref, h_ref,
                    w1d_ref, w1_ref, b1_ref,
                    w2_ref, b2_ref,
                    w3_ref, b3_ref,
                    out_ref, *, use_bf16_tanh):
    # bf16 embeddings -> f32 only for the distance square-sum
    p = p_ref[...].astype(jnp.float32)
    h = h_ref[...].astype(jnp.float32)

    # vector_differences = premises - hypotheses
    diff = p - h

    # pairwise_distance(h, p) = ||h - p + eps||_2 = ||eps - diff||_2
    d = EPS - diff
    dist = jnp.sqrt(jnp.sum(d * d, axis=-1, keepdims=True))      # [tb, 1] f32

    # decoder layer 0 on concat([dist, diff]), split into two terms
    pre = (dist * w1d_ref[...]
           + jnp.dot(diff.astype(jnp.bfloat16), w1_ref[...],
                     preferred_element_type=jnp.float32)
           + b1_ref[...])
    x = jnp.tanh(pre.astype(jnp.bfloat16)) if use_bf16_tanh else jnp.tanh(pre)

    # decoder layer 1
    pre = (jnp.dot(x.astype(jnp.bfloat16), w2_ref[...],
                   preferred_element_type=jnp.float32)
           + b2_ref[...])
    x = jnp.tanh(pre.astype(jnp.bfloat16)) if use_bf16_tanh else jnp.tanh(pre)

    # decoder layer 2 (output).  W3/b3 already carry the 1/temperature factor
    # and are padded out to 128 lanes (zeros / NEG_BIG) for a lane-dense store.
    logits = (jnp.dot(x.astype(jnp.bfloat16), w3_ref[...],
                      preferred_element_type=jnp.float32)
              + b3_ref[...])

    # softmax over the padded row: padded columns contribute exp(...) == 0,
    # so columns 0..1 equal softmax(logits_real / T, dim=1) exactly.
    z = logits - jnp.max(logits, axis=-1, keepdims=True)
    e = jnp.exp(z)
    inv = pl.reciprocal(jnp.sum(e, axis=-1, keepdims=True), approx=False)
    out_ref[...] = e * inv


def prepare_decoder_params(w1_full, b1, w2, b2, w3, b3, temperature):
    """Host-side packing: split W1, fold 1/T into the last layer, pad it to
    128 lanes, cast the big matrices to bf16."""
    inv_t = jnp.float32(1.0 / float(temperature))
    w1d = w1_full[0:1, :].astype(jnp.float32)            # (1, H) dist row (tiny -> f32)
    w1 = w1_full[1:, :].astype(jnp.bfloat16)             # (H, H) diff rows
    w2b = w2.astype(jnp.bfloat16)                        # (H, H)

    w3p = jnp.zeros((HIDDEN_SIZE, OUT_PAD), jnp.float32)
    w3p = w3p.at[:, :OUT_CLASSES].set(w3 * inv_t).astype(jnp.bfloat16)
    b3p = jnp.full((1, OUT_PAD), NEG_BIG, jnp.float32)
    b3p = b3p.at[:, :OUT_CLASSES].set(b3.reshape(1, -1) * inv_t)

    return (w1d, w1,
            b1.reshape(1, HIDDEN_SIZE).astype(jnp.float32),
            w2b,
            b2.reshape(1, HIDDEN_SIZE).astype(jnp.float32),
            w3p, b3p)


def vecdiff_forward(p, h, packed_params, tb=None, use_bf16_tanh=None):
    """p, h: [B, H] sentence embeddings (any float dtype). Returns [B, 2]."""
    B, H = p.shape
    assert H == HIDDEN_SIZE
    gen = _tpu_generation()
    if use_bf16_tanh is None:
        use_bf16_tanh = gen >= 6          # native bf16 EUP on v6e/v7x only

    # bf16 embeddings halve the dominant per-row HBM traffic.
    p = p.astype(jnp.bfloat16)
    h = h.astype(jnp.bfloat16)

    if tb is None:
        tb = _choose_tb(B, gen)
    Bp = (-(-B // tb)) * tb
    if Bp != B:
        pad = Bp - B
        p = jnp.pad(p, ((0, pad), (0, 0)))
        h = jnp.pad(h, ((0, pad), (0, 0)))

    w1d, w1, b1, w2, b2, w3, b3 = packed_params

    batch_spec = pl.BlockSpec((tb, H), lambda i: (i, 0))

    # Grid-invariant weights/biases: single-buffer (index_map never changes).
    def wspec(shape):
        return pl.BlockSpec(shape, lambda i: (0, 0), pipeline_mode=pl.Buffered(1))

    weight_bytes = (2 * HIDDEN_SIZE * HIDDEN_SIZE * 2        # W1, W2 (bf16)
                    + HIDDEN_SIZE * OUT_PAD * 2              # W3 padded (bf16)
                    + (3 * HIDDEN_SIZE + OUT_PAD) * 4)       # w1d, b1, b2, b3 (f32)
    io_tile_bytes = 2 * tb * HIDDEN_SIZE * 2 + tb * OUT_PAD * 4   # p,h bf16 + out f32
    need = weight_bytes + 2 * io_tile_bytes                  # double-buffered tiles
    vmem_limit = int(min(_vmem_cap_bytes(gen),
                         max(int(need * 1.25) + (2 << 20), 8 << 20)))

    cost = pl.CostEstimate(
        flops=int(Bp) * (4 * HIDDEN_SIZE * HIDDEN_SIZE          # two 768x768 matmuls
                         + 2 * HIDDEN_SIZE * OUT_PAD            # output projection
                         + 8 * HIDDEN_SIZE),                    # elementwise
        transcendentals=int(Bp) * (2 * HIDDEN_SIZE + OUT_PAD),  # tanh + exp
        bytes_accessed=weight_bytes
                       + int(Bp) * (2 * HIDDEN_SIZE * 2 + OUT_PAD * 4),
    )

    out = pl.pallas_call(
        functools.partial(_vecdiff_kernel, use_bf16_tanh=use_bf16_tanh),
        out_shape=jax.ShapeDtypeStruct((Bp, OUT_PAD), jnp.float32),
        grid_spec=pltpu.PrefetchScalarGridSpec(
            num_scalar_prefetch=0,
            grid=(Bp // tb,),
            in_specs=[
                batch_spec,                          # premises   [tb, H] bf16
                batch_spec,                          # hypotheses [tb, H] bf16
                wspec((1, HIDDEN_SIZE)),             # W1 dist row (f32)
                wspec((HIDDEN_SIZE, HIDDEN_SIZE)),   # W1 diff rows (bf16)
                wspec((1, HIDDEN_SIZE)),             # b1 (f32)
                wspec((HIDDEN_SIZE, HIDDEN_SIZE)),   # W2 (bf16)
                wspec((1, HIDDEN_SIZE)),             # b2 (f32)
                wspec((HIDDEN_SIZE, OUT_PAD)),       # W3 padded (bf16), 1/T folded
                wspec((1, OUT_PAD)),                 # b3 padded (f32), 1/T folded
            ],
            out_specs=pl.BlockSpec((tb, OUT_PAD), lambda i: (i, 0)),
        ),
        compiler_params=pltpu.CompilerParams(
            dimension_semantics=("parallel",),
            vmem_limit_bytes=vmem_limit),
        cost_estimate=cost,
    )(p, h, w1d, w1, b1, w2, b2, w3, b3)

    return out[:B, :OUT_CLASSES]


def _reference(p, h, packed_params, use_bf16_tanh):
    """Pure-JAX reference using the same bf16 inputs / weights / rounding."""
    w1d, w1, b1, w2, b2, w3p, b3p = packed_params
    pb = p.astype(jnp.bfloat16).astype(jnp.float32)
    hb = h.astype(jnp.bfloat16).astype(jnp.float32)
    diff = pb - hb
    dist = jnp.sqrt(jnp.sum((EPS - diff) ** 2, axis=-1, keepdims=True))
    pre = (dist * w1d
           + jnp.dot(diff.astype(jnp.bfloat16), w1,
                     preferred_element_type=jnp.float32)
           + b1)
    x = jnp.tanh(pre.astype(jnp.bfloat16) if use_bf16_tanh else pre)
    pre = jnp.dot(x.astype(jnp.bfloat16), w2,
                  preferred_element_type=jnp.float32) + b2
    x = jnp.tanh(pre.astype(jnp.bfloat16) if use_bf16_tanh else pre)
    logits = jnp.dot(x.astype(jnp.bfloat16), w3p,
                     preferred_element_type=jnp.float32) + b3p
    return jax.nn.softmax(logits[:, :OUT_CLASSES], axis=-1)


if __name__ == "__main__":
    cfg = dict(classifier_hidden_layers=3, decoder_dropout=0.0,
               softmax_temperature=2.0)
    H = HIDDEN_SIZE
    B = 16

    key = jax.random.PRNGKey(0)
    kp, kh, k1, k2, k3 = jax.random.split(key, 5)

    # synthetic "sentence embeddings" standing in for the SentenceTransformer
    p = jax.random.normal(kp, (B, H), jnp.float32)
    h = jax.random.normal(kh, (B, H), jnp.float32)

    # decoder params: weight.normal_(), bias.zero_()  (stored as (in, out))
    w1_full = jax.random.normal(k1, (H + 1, H), jnp.float32)
    b1 = jnp.zeros((H,), jnp.float32)
    w2 = jax.random.normal(k2, (H, H), jnp.float32)
    b2 = jnp.zeros((H,), jnp.float32)
    w3 = jax.random.normal(k3, (H, OUT_CLASSES), jnp.float32)
    b3 = jnp.zeros((OUT_CLASSES,), jnp.float32)

    params = prepare_decoder_params(w1_full, b1, w2, b2, w3, b3,
                                    cfg["softmax_temperature"])

    use_bf16_tanh = _tpu_generation() >= 6
    out = jax.block_until_ready(
        vecdiff_forward(p, h, params, use_bf16_tanh=use_bf16_tanh))
    ref = jax.block_until_ready(_reference(p, h, params, use_bf16_tanh))

    # 5e-3 tolerance: both paths use identical bf16 rounding, but the Mosaic
    # EUP bf16 tanh and XLA's reference tanh may differ by a last-ulp on
    # non-saturated elements.
    np.testing.assert_allclose(np.asarray(out), np.asarray(ref),
                               atol=5e-3, rtol=5e-3)
    assert out.shape == (B, OUT_CLASSES)

    print("KERNEL_OK")
</pallas_src>

<mosaic_0001>
module attributes {stable_mosaic.version = 11 : i64} {
  func.func @_vecdiff_kernel(%arg0: i32, %arg1: memref<16x768xbf16, #tpu.memory_space<vmem>>, %arg2: memref<16x768xbf16, #tpu.memory_space<vmem>>, %arg3: memref<1x768xf32, #tpu.memory_space<vmem>>, %arg4: memref<768x768xbf16, #tpu.memory_space<vmem>>, %arg5: memref<1x768xf32, #tpu.memory_space<vmem>>, %arg6: memref<768x768xbf16, #tpu.memory_space<vmem>>, %arg7: memref<1x768xf32, #tpu.memory_space<vmem>>, %arg8: memref<768x128xbf16, #tpu.memory_space<vmem>>, %arg9: memref<1x128xf32, #tpu.memory_space<vmem>>, %arg10: memref<16x128xf32, #tpu.memory_space<vmem>>) attributes {dimension_semantics = [#tpu.dimension_semantics<parallel>], iteration_bounds = array<i64: 1>, scalar_prefetch = 0 : i64, scratch_operands = 0 : i64, tpu.core_type = #tpu.core_type<tc>, window_params = [{transform_indices = @transform_0, window_bounds = array<i64: 16, 768>}, {transform_indices = @transform_1, window_bounds = array<i64: 16, 768>}, {pipeline_mode = #tpu.pipeline_mode<synchronous>, transform_indices = @transform_2, window_bounds = array<i64: 1, 768>}, {pipeline_mode = #tpu.pipeline_mode<synchronous>, transform_indices = @transform_3, window_bounds = array<i64: 768, 768>}, {pipeline_mode = #tpu.pipeline_mode<synchronous>, transform_indices = @transform_4, window_bounds = array<i64: 1, 768>}, {pipeline_mode = #tpu.pipeline_mode<synchronous>, transform_indices = @transform_5, window_bounds = array<i64: 768, 768>}, {pipeline_mode = #tpu.pipeline_mode<synchronous>, transform_indices = @transform_6, window_bounds = array<i64: 1, 768>}, {pipeline_mode = #tpu.pipeline_mode<synchronous>, transform_indices = @transform_7, window_bounds = array<i64: 768, 128>}, {pipeline_mode = #tpu.pipeline_mode<synchronous>, transform_indices = @transform_8, window_bounds = array<i64: 1, 128>}, {transform_indices = @transform_9, window_bounds = array<i64: 16, 128>}]} {
    %c0 = arith.constant 0 : index
    %c0_0 = arith.constant 0 : index
    %0 = vector.load %arg1[%c0, %c0_0] : memref<16x768xbf16, #tpu.memory_space<vmem>>, vector<16x768xbf16>
    %1 = arith.extf %0 : vector<16x768xbf16> to vector<16x768xf32>
    %c0_1 = arith.constant 0 : index
    %c0_2 = arith.constant 0 : index
    %2 = vector.load %arg2[%c0_1, %c0_2] : memref<16x768xbf16, #tpu.memory_space<vmem>>, vector<16x768xbf16>
    %3 = arith.extf %2 : vector<16x768xbf16> to vector<16x768xf32>
    %4 = arith.subf %1, %3 : vector<16x768xf32>
    %cst = arith.constant 9.99999997E-7 : f32
    %5 = vector.broadcast %cst : f32 to vector<16x768xf32>
    %6 = arith.subf %5, %4 : vector<16x768xf32>
    %7 = arith.mulf %6, %6 : vector<16x768xf32>
    %cst_3 = arith.constant dense<0.000000e+00> : vector<16xf32>
    %8 = vector.multi_reduction <add>, %7, %cst_3 [1] : vector<16x768xf32> to vector<16xf32>
    %9 = vector.shape_cast %8 : vector<16xf32> to vector<16x1xf32>
    %10 = math.sqrt %9 : vector<16x1xf32>
    %c0_4 = arith.constant 0 : index
    %c0_5 = arith.constant 0 : index
    %11 = vector.load %arg3[%c0_4, %c0_5] : memref<1x768xf32, #tpu.memory_space<vmem>>, vector<1x768xf32>
    %12 = vector.broadcast %10 : vector<16x1xf32> to vector<16x768xf32>
    %13 = vector.broadcast %11 : vector<1x768xf32> to vector<16x768xf32>
    %14 = arith.mulf %12, %13 : vector<16x768xf32>
    %15 = arith.truncf %4 : vector<16x768xf32> to vector<16x768xbf16>
    %c0_6 = arith.constant 0 : index
    %c0_7 = arith.constant 0 : index
    %16 = vector.load %arg4[%c0_6, %c0_7] : memref<768x768xbf16, #tpu.memory_space<vmem>>, vector<768x768xbf16>
    %cst_8 = arith.constant dense<0.000000e+00> : vector<16x768xf32>
    %17 = tpu.matmul %15, %16, %cst_8 {dimension_numbers = #tpu.dot_dimension_numbers<[1], [0], [0], [1], [0, 0, 1, 1], [], []>} : vector<16x768xbf16>, vector<768x768xbf16>, vector<16x768xf32> -> vector<16x768xf32>
    %18 = arith.addf %14, %17 : vector<16x768xf32>
    %c0_9 = arith.constant 0 : index
    %c0_10 = arith.constant 0 : index
    %19 = vector.load %arg5[%c0_9, %c0_10] : memref<1x768xf32, #tpu.memory_space<vmem>>, vector<1x768xf32>
    %20 = vector.broadcast %19 : vector<1x768xf32> to vector<16x768xf32>
    %21 = arith.addf %18, %20 : vector<16x768xf32>
    %22 = arith.truncf %21 : vector<16x768xf32> to vector<16x768xbf16>
    %23 = math.tanh %22 : vector<16x768xbf16>
    %c0_11 = arith.constant 0 : index
    %c0_12 = arith.constant 0 : index
    %24 = vector.load %arg6[%c0_11, %c0_12] : memref<768x768xbf16, #tpu.memory_space<vmem>>, vector<768x768xbf16>
    %cst_13 = arith.constant dense<0.000000e+00> : vector<16x768xf32>
    %25 = tpu.matmul %23, %24, %cst_13 {dimension_numbers = #tpu.dot_dimension_numbers<[1], [0], [0], [1], [0, 0, 1, 1], [], []>} : vector<16x768xbf16>, vector<768x768xbf16>, vector<16x768xf32> -> vector<16x768xf32>
    %c0_14 = arith.constant 0 : index
    %c0_15 = arith.constant 0 : index
    %26 = vector.load %arg7[%c0_14, %c0_15] : memref<1x768xf32, #tpu.memory_space<vmem>>, vector<1x768xf32>
    %27 = vector.broadcast %26 : vector<1x768xf32> to vector<16x768xf32>
    %28 = arith.addf %25, %27 : vector<16x768xf32>
    %29 = arith.truncf %28 : vector<16x768xf32> to vector<16x768xbf16>
    %30 = math.tanh %29 : vector<16x768xbf16>
    %c0_16 = arith.constant 0 : index
    %c0_17 = arith.constant 0 : index
    %31 = vector.load %arg8[%c0_16, %c0_17] : memref<768x128xbf16, #tpu.memory_space<vmem>>, vector<768x128xbf16>
    %cst_18 = arith.constant dense<0.000000e+00> : vector<16x128xf32>
    %32 = tpu.matmul %30, %31, %cst_18 {dimension_numbers = #tpu.dot_dimension_numbers<[1], [0], [0], [1], [0, 0, 1, 1], [], []>} : vector<16x768xbf16>, vector<768x128xbf16>, vector<16x128xf32> -> vector<16x128xf32>
    %c0_19 = arith.constant 0 : index
    %c0_20 = arith.constant 0 : index
    %33 = vector.load %arg9[%c0_19, %c0_20] : memref<1x128xf32, #tpu.memory_space<vmem>>, vector<1x128xf32>
    %34 = vector.broadcast %33 : vector<1x128xf32> to vector<16x128xf32>
    %35 = arith.addf %32, %34 : vector<16x128xf32>
    %cst_21 = arith.constant dense<0xFF800000> : vector<16xf32>
    %36 = vector.multi_reduction <maximumf>, %35, %cst_21 [1] : vector<16x128xf32> to vector<16xf32>
    %37 = vector.shape_cast %36 : vector<16xf32> to vector<16x1xf32>
    %38 = vector.broadcast %37 : vector<16x1xf32> to vector<16x128xf32>
    %39 = arith.subf %35, %38 : vector<16x128xf32>
    %40 = math.exp %39 : vector<16x128xf32>
    %cst_22 = arith.constant dense<0.000000e+00> : vector<16xf32>
    %41 = vector.multi_reduction <add>, %40, %cst_22 [1] : vector<16x128xf32> to vector<16xf32>
    %42 = vector.shape_cast %41 : vector<16xf32> to vector<16x1xf32>
    %43 = tpu.reciprocal %42 : vector<16x1xf32> -> vector<16x1xf32>
    %44 = vector.broadcast %43 : vector<16x1xf32> to vector<16x128xf32>
    %45 = arith.mulf %40, %44 : vector<16x128xf32>
    %c0_23 = arith.constant 0 : index
    %c0_24 = arith.constant 0 : index
    %46 = vector.load %arg10[%c0_23, %c0_24] : memref<16x128xf32, #tpu.memory_space<vmem>>, vector<16x128xf32>
    tpu.vector_store %arg10[%c0_23, %c0_24], %45 {strides = array<i32>} : memref<16x128xf32, #tpu.memory_space<vmem>>, vector<16x128xf32>,
    return
  }
  func.func @transform_0(%arg0: i32) -> (i32, i32) {
    %c0_i32 = arith.constant 0 : i32
    %c0_i32_0 = arith.constant 0 : i32
    return %arg0, %c0_i32 : i32, i32
  }
  func.func @transform_1(%arg0: i32) -> (i32, i32) {
    %c0_i32 = arith.constant 0 : i32
    %c0_i32_0 = arith.constant 0 : i32
    return %arg0, %c0_i32 : i32, i32
  }
  func.func @transform_2(%arg0: i32) -> (i32, i32) {
    %c0_i32 = arith.constant 0 : i32
    %c0_i32_0 = arith.constant 0 : i32
    %c0_i32_1 = arith.constant 0 : i32
    return %c0_i32, %c0_i32_0 : i32, i32
  }
  func.func @transform_3(%arg0: i32) -> (i32, i32) {
    %c0_i32 = arith.constant 0 : i32
    %c0_i32_0 = arith.constant 0 : i32
    %c0_i32_1 = arith.constant 0 : i32
    return %c0_i32, %c0_i32_0 : i32, i32
  }
  func.func @transform_4(%arg0: i32) -> (i32, i32) {
    %c0_i32 = arith.constant 0 : i32
    %c0_i32_0 = arith.constant 0 : i32
    %c0_i32_1 = arith.constant 0 : i32
    return %c0_i32, %c0_i32_0 : i32, i32
  }
  func.func @transform_5(%arg0: i32) -> (i32, i32) {
    %c0_i32 = arith.constant 0 : i32
    %c0_i32_0 = arith.constant 0 : i32
    %c0_i32_1 = arith.constant 0 : i32
    return %c0_i32, %c0_i32_0 : i32, i32
  }
  func.func @transform_6(%arg0: i32) -> (i32, i32) {
    %c0_i32 = arith.constant 0 : i32
    %c0_i32_0 = arith.constant 0 : i32
    %c0_i32_1 = arith.constant 0 : i32
    return %c0_i32, %c0_i32_0 : i32, i32
  }
  func.func @transform_7(%arg0: i32) -> (i32, i32) {
    %c0_i32 = arith.constant 0 : i32
    %c0_i32_0 = arith.constant 0 : i32
    %c0_i32_1 = arith.constant 0 : i32
    return %c0_i32, %c0_i32_0 : i32, i32
  }
  func.func @transform_8(%arg0: i32) -> (i32, i32) {
    %c0_i32 = arith.constant 0 : i32
    %c0_i32_0 = arith.constant 0 : i32
    %c0_i32_1 = arith.constant 0 : i32
    return %c0_i32, %c0_i32_0 : i32, i32
  }
  func.func @transform_9(%arg0: i32) -> (i32, i32) {
    %c0_i32 = arith.constant 0 : i32
    %c0_i32_0 = arith.constant 0 : i32
    return %arg0, %c0_i32 : i32, i32
  }
}

</mosaic_0001>

<bundles_post_ra>
// kernel: tpu_custom_call.1
= control target key start
LH: loop header
LB: loop body
LE: loop exit
PB: predicated region body
PF: predicated region fallthrough
CT: control target
= control target key end

     0   :  { %14 = vsyncpa [#allocation3], 0  ;;  %s7570_s0 = inlined_call_operand.hbm [shape: bf16[16,768], index: 0, kind: input, shape index: {}]   ;;  %s7571_s1 = inlined_call_operand.hbm [shape: bf16[16,768], index: 1, kind: input, shape index: {}]   ;;  %s7572_s2 = inlined_call_operand.hbm [shape: f32[1,768], index: 2, kind: input, shape index: {}]   ;;  %s7573_s3 = inlined_call_operand.hbm [shape: bf16[768,768], index: 3, kind: input, shape index: {}]   ;;  %s7574_s4 = inlined_call_operand.hbm [shape: f32[1,768], index: 4, kind: input, shape index: {}]   ;;  %s7575_s5 = inlined_call_operand.hbm [shape: bf16[768,768], index: 5, kind: input, shape index: {}]   ;;  %s7576_s6 = inlined_call_operand.hbm [shape: f32[1,768], index: 6, kind: input, shape index: {}]   ;;  %s7577_s7 = inlined_call_operand.hbm [shape: bf16[768,128], index: 7, kind: input, shape index: {}]   ;;  %s7578_s8 = inlined_call_operand.hbm [shape: f32[1,128], index: 8, kind: input, shape index: {}]   ;;  %s7579_s9 = inlined_call_operand.hbm [shape: f32[16,128], index: 9, kind: output, shape index: {}]  }
   0x1   :  { %15 = vsyncpa [#allocation6], 0 }
   0x2   :  { %16 = vsyncpa [#allocation9], 0 }
   0x3   :  { %17 = vsyncpa [#allocation12], 0 }
   0x4   :  { %18 = vsyncpa [#allocation15], 0 }
   0x5   :  { %19 = vsyncpa [#allocation4], 0  ;;  %s7142_s30 = smov [#allocation5]   ;;  %s7143_s11 = smov [#allocation8]  }
   0x6   :  { %s37_s10 = sshll.u32 %s7142_s30, 4  ;;  %s59_s12 = sshll.u32 %s7143_s11, 4  ;;  %s38_s10 = int_to_ptr.vmem [resolvable:$true] %s37_s10  ;;  %s7208_s12 = int_to_ptr.vmem [resolvable:$true] %s59_s12 }
   0x7   :  { %s6910_s15 = scalar_lea.hbm %s7571_s1, 768 }
   0x8   :  { %p6911_p0 = scmp.ne.s32.totalorder %s7571_s1, %s6910_s15  ;;  %p6914_p1 = scmp.lt.u32.totalorder %s6910_s15, %s7571_s1 }
   0xa   :  { %p6916_p2 = pnand %p6914_p1, %p6911_p0 }
   0xc   :  { %6919 = shalt.err (!%p6916_p2)
}
   0xd   :  { %s6920_s20 = scalar_lea.vmem %s38_s10, 768  ;;  %p6925_p4 = scmp.lt.s32.totalorder %s38_s10, %s38_s10 }
   0xe   :  { %p6921_p3 = scmp.ne.s32.totalorder %s38_s10, %s6920_s20  ;;  %p6926_p5 = scmp.lt.s32.totalorder %s6920_s20, %s6920_s20 }
  0x10   :  { %p6927_p6 = por %p6926_p5, %p6925_p4 }
  0x12   :  { %p6928_p7 = pnand %p6927_p6, %p6921_p3 }
  0x14   :  { %6931 = shalt.err (!%p6928_p7)
}
  0x15   :  { %s7144_s21 = smov 384   ;;  %s7145_s22 = smov 24  }
  0x16   :  { %43 = dma.hbm_to_vmem [thread:$0]  %s7571_s1, 768, %s38_s10, [#allocation6], %s7144_s21, %s7144_s21, %s7145_s22  }
  0x17   :  { %s6932_s27 = scalar_lea.hbm %s7573_s3, 36864 }
  0x18   :  { %p6933_p8 = scmp.ne.s32.totalorder %s7573_s3, %s6932_s27  ;;  %p6936_p9 = scmp.lt.u32.totalorder %s6932_s27, %s7573_s3 }
  0x1a   :  { %p6938_p10 = pnand %p6936_p9, %p6933_p8 }
  0x1c   :  { %6941 = shalt.err (!%p6938_p10)
}
  0x1d   :  { %s6942_s13 = scalar_lea.vmem %s7208_s12, 36864  ;;  %p6947_p12 = scmp.lt.s32.totalorder %s7208_s12, %s7208_s12 }
  0x1e   :  { %p6943_p11 = scmp.ne.s32.totalorder %s7208_s12, %s6942_s13  ;;  %p6948_p13 = scmp.lt.s32.totalorder %s6942_s13, %s6942_s13 }
  0x20   :  { %p6949_p0 = por %p6948_p13, %p6947_p12 }
  0x22   :  { %p6950_p1 = pnand %p6949_p0, %p6943_p11 }
  0x24   :  { %6953 = shalt.err (!%p6950_p1)
}
  0x25   :  { %65 = dma.hbm_to_vmem [thread:$0]  %s7573_s3, 36864, %s7208_s12, [#allocation9], %s7144_s21, %s7144_s21, %s7145_s22  }
  0x26   :  { %s7146_s14 = smov [#allocation11]   ;;  %s7147_s16 = smov [#allocation14]  }
  0x27   :  { %s81_s15 = sshll.u32 %s7146_s14, 4  ;;  %s103_s17 = sshll.u32 %s7147_s16, 4  ;;  %s82_s15 = int_to_ptr.vmem [resolvable:$true] %s81_s15  ;;  %s7245_s17 = int_to_ptr.vmem [resolvable:$true] %s103_s17 }
  0x28   :  { %s6954_s20 = scalar_lea.hbm %s7575_s5, 36864 }
  0x29   :  { %p6955_p2 = scmp.ne.s32.totalorder %s7575_s5, %s6954_s20  ;;  %p6958_p3 = scmp.lt.u32.totalorder %s6954_s20, %s7575_s5 }
  0x2b   :  { %p6960_p4 = pnand %p6958_p3, %p6955_p2 }
  0x2d   :  { %6963 = shalt.err (!%p6960_p4)
}
  0x2e   :  { %s6964_s3 = scalar_lea.vmem %s82_s15, 36864  ;;  %p6969_p6 = scmp.lt.s32.totalorder %s82_s15, %s82_s15 }
  0x2f   :  { %p6965_p5 = scmp.ne.s32.totalorder %s82_s15, %s6964_s3  ;;  %p6970_p7 = scmp.lt.s32.totalorder %s6964_s3, %s6964_s3 }
  0x31   :  { %p6971_p8 = por %p6970_p7, %p6969_p6 }
  0x33   :  { %p6972_p9 = pnand %p6971_p8, %p6965_p5 }
  0x35   :  { %6975 = shalt.err (!%p6972_p9)
}
  0x36   :  { %87 = dma.hbm_to_vmem [thread:$0]  %s7575_s5, 36864, %s82_s15, [#allocation12], %s7144_s21, %s7144_s21, %s7145_s22  }
  0x37   :  { %s6976_s30 = scalar_lea.hbm %s7577_s7, 6144 }
  0x38   :  { %p6977_p10 = scmp.ne.s32.totalorder %s7577_s7, %s6976_s30  ;;  %p6980_p11 = scmp.lt.u32.totalorder %s6976_s30, %s7577_s7 }
  0x3a   :  { %p6982_p12 = pnand %p6980_p11, %p6977_p10 }
  0x3c   :  { %6985 = shalt.err (!%p6982_p12)
}
  0x3d   :  { %s6986_s14 = scalar_lea.vmem %s7245_s17, 6144  ;;  %p6991_p0 = scmp.lt.s32.totalorder %s7245_s17, %s7245_s17 }
  0x3e   :  { %p6987_p13 = scmp.ne.s32.totalorder %s7245_s17, %s6986_s14  ;;  %p6992_p1 = scmp.lt.s32.totalorder %s6986_s14, %s6986_s14 }
  0x40   :  { %p6993_p2 = por %p6992_p1, %p6991_p0 }
  0x42   :  { %p6994_p3 = pnand %p6993_p2, %p6987_p13 }
  0x44   :  { %6997 = shalt.err (!%p6994_p3)
}
  0x45   :  { %s7148_s5 = smov 64   ;;  %s7149_s15 = smov 4  }
  0x46   :  { %109 = dma.hbm_to_vmem [thread:$0]  %s7577_s7, 6144, %s7245_s17, [#allocation15], %s7148_s5, %s7148_s5, %s7149_s15  }
  0x47   :  { %s7150_s19 = smov [#allocation2]   ;;  %s7151_s23 = smov [#allocation7]  }
  0x48   :  { %s25_s20 = sshll.u32 %s7150_s19, 4  ;;  %s50_s24 = sshll.u32 %s7151_s23, 4  ;;  %s26_s20 = int_to_ptr.vmem [resolvable:$true] %s25_s20  ;;  %s51_s24 = int_to_ptr.vmem [resolvable:$true] %s50_s24 }
  0x49   :  { %s6998_s3 = scalar_lea.hbm %s7570_s0, 768 }
  0x4a   :  { %p6999_p4 = scmp.ne.s32.totalorder %s7570_s0, %s6998_s3  ;;  %p7002_p5 = scmp.lt.u32.totalorder %s6998_s3, %s7570_s0 }
  0x4c   :  { %p7004_p6 = pnand %p7002_p5, %p6999_p4 }
  0x4e   :  { %7007 = shalt.err (!%p7004_p6)
}
  0x4f   :  { %s7008_s7 = scalar_lea.vmem %s26_s20, 768  ;;  %p7013_p8 = scmp.lt.s32.totalorder %s26_s20, %s26_s20 }
  0x50   :  { %p7009_p7 = scmp.ne.s32.totalorder %s26_s20, %s7008_s7  ;;  %p7014_p9 = scmp.lt.s32.totalorder %s7008_s7, %s7008_s7 }
  0x52   :  { %p7015_p10 = por %p7014_p9, %p7013_p8 }
  0x54   :  { %p7016_p11 = pnand %p7015_p10, %p7009_p7 }
  0x56   :  { %7019 = shalt.err (!%p7016_p11)
}
  0x57   :  { %31 = dma.hbm_to_vmem [thread:$0]  %s7570_s0, 768, %s26_s20, [#allocation3], %s7144_s21, %s7144_s21, %s7145_s22  }
  0x58   :  { %s7020_s1 = scalar_lea.hbm %s7572_s2, 96 }
  0x59   :  { %p7021_p12 = scmp.ne.s32.totalorder %s7572_s2, %s7020_s1  ;;  %p7024_p13 = scmp.lt.u32.totalorder %s7020_s1, %s7572_s2 }
  0x5b   :  { %p7026_p0 = pnand %p7024_p13, %p7021_p12 }
  0x5d   :  { %7029 = shalt.err (!%p7026_p0)
}
  0x5e   :  { %s7030_s16 = scalar_lea.vmem %s51_s24, 96  ;;  %p7035_p2 = scmp.lt.s32.totalorder %s51_s24, %s51_s24 }
  0x5f   :  { %p7031_p1 = scmp.ne.s32.totalorder %s51_s24, %s7030_s16  ;;  %p7036_p3 = scmp.lt.s32.totalorder %s7030_s16, %s7030_s16 }
  0x61   :  { %p7037_p4 = por %p7036_p3, %p7035_p2 }
  0x63   :  { %p7038_p5 = pnand %p7037_p4, %p7031_p1 }
  0x65   :  { %7041 = shalt.err (!%p7038_p5)
}
  0x66   :  { %53 = dma.hbm_to_vmem [thread:$0]  %s7572_s2, 96, %s51_s24, [#allocation6]  }
  0x67   :  { %s7152_s22 = smov [#allocation10]   ;;  %s7153_s19 = smov [#allocation13]  }
  0x68   :  { %s72_s18 = sshll.u32 %s7152_s22, 4  ;;  %s94_s20 = sshll.u32 %s7153_s19, 4  ;;  %s73_s18 = int_to_ptr.vmem [resolvable:$true] %s72_s18  ;;  %s95_s20 = int_to_ptr.vmem [resolvable:$true] %s94_s20 }
  0x69   :  { %s7042_s26 = scalar_lea.hbm %s7574_s4, 96 }
  0x6a   :  { %p7043_p6 = scmp.ne.s32.totalorder %s7574_s4, %s7042_s26  ;;  %p7046_p7 = scmp.lt.u32.totalorder %s7042_s26, %s7574_s4 }
  0x6c   :  { %p7048_p8 = pnand %p7046_p7, %p7043_p6 }
  0x6e   :  { %7051 = shalt.err (!%p7048_p8)
}
  0x6f   :  { %s7052_s2 = scalar_lea.vmem %s73_s18, 96  ;;  %p7057_p10 = scmp.lt.s32.totalorder %s73_s18, %s73_s18 }
  0x70   :  { %p7053_p9 = scmp.ne.s32.totalorder %s73_s18, %s7052_s2  ;;  %p7058_p11 = scmp.lt.s32.totalorder %s7052_s2, %s7052_s2 }
  0x72   :  { %p7059_p12 = por %p7058_p11, %p7057_p10 }
  0x74   :  { %p7060_p13 = pnand %p7059_p12, %p7053_p9 }
  0x76   :  { %7063 = shalt.err (!%p7060_p13)
}
  0x77   :  { %75 = dma.hbm_to_vmem [thread:$0]  %s7574_s4, 96, %s73_s18, [#allocation9]  }
  0x78   :  { %s7064_s30 = scalar_lea.hbm %s7576_s6, 96 }
  0x79   :  { %p7065_p0 = scmp.ne.s32.totalorder %s7576_s6, %s7064_s30  ;;  %p7068_p1 = scmp.lt.u32.totalorder %s7064_s30, %s7576_s6 }
  0x7b   :  { %p7070_p2 = pnand %p7068_p1, %p7065_p0 }
  0x7d   :  { %7073 = shalt.err (!%p7070_p2)
}
  0x7e   :  { %s7074_s14 = scalar_lea.vmem %s95_s20, 96  ;;  %p7079_p4 = scmp.lt.s32.totalorder %s95_s20, %s95_s20 }
  0x7f   :  { %p7075_p3 = scmp.ne.s32.totalorder %s95_s20, %s7074_s14  ;;  %p7080_p5 = scmp.lt.s32.totalorder %s7074_s14, %s7074_s14 }
  0x81   :  { %p7081_p6 = por %p7080_p5, %p7079_p4 }
  0x83   :  { %p7082_p7 = pnand %p7081_p6, %p7075_p3 }
  0x85   :  { %7085 = shalt.err (!%p7082_p7)
}
  0x86   :  { %97 = dma.hbm_to_vmem [thread:$0]  %s7576_s6, 96, %s95_s20, [#allocation12]  }
  0x87   :  { %s7154_s15 = smov [#allocation16]   ;;  %s7086_s22 = scalar_lea.hbm %s7578_s8, 16 }
  0x88   :  { %s116_s16 = sshll.u32 %s7154_s15, 4  ;;  %p7087_p8 = scmp.ne.s32.totalorder %s7578_s8, %s7086_s22  ;;  %s117_s16 = int_to_ptr.vmem [resolvable:$true] %s116_s16 }
  0x89   :  { %p7090_p9 = scmp.lt.u32.totalorder %s7086_s22, %s7578_s8 }
  0x8b   :  { %p7092_p10 = pnand %p7090_p9, %p7087_p8 }
  0x8d   :  { %7095 = shalt.err (!%p7092_p10)
}
  0x8e   :  { %s7096_s26 = scalar_lea.vmem %s117_s16, 16  ;;  %s7100_s6 = scalar_lea.vmem %s117_s16, 32 }
  0x8f   :  { %p7097_p11 = scmp.ne.s32.totalorder %s117_s16, %s7096_s26  ;;  %p7101_p12 = scmp.lt.s32.totalorder %s117_s16, %s117_s16 }
  0x90   :  { %p7102_p13 = scmp.lt.s32.totalorder %s7100_s6, %s7096_s26 }
  0x92   :  { %p7103_p0 = por %p7102_p13, %p7101_p12 }
  0x94   :  { %p7104_p1 = pnand %p7103_p0, %p7097_p11 }
  0x96   :  { %7107 = shalt.err (!%p7104_p1)
}
  0x97   :  { %119 = dma.hbm_to_vmem [thread:$0]  %s7578_s8, 16, %s117_s16, [#allocation15]  }
  0x98   :  { %7130 = dma.done.wait [#allocation3], 768  }
  0x99   :  { %7131 = vsyncadd [#allocation3], 4294966528 }
  0x9a   :  { %7132 = dma.done.wait [#allocation6], 864  }
  0x9b   :  { %7133 = vsyncadd [#allocation6], 4294966432 }
  0x9c   :  { %7134 = dma.done.wait [#allocation9], 36960  }
  0x9d   :  { %7135 = vsyncadd [#allocation9], 4294930336 }
  0x9e   :  { %7136 = dma.done.wait [#allocation12], 36960  }
  0x9f   :  { %7137 = vsyncadd [#allocation12], 4294930336 }
  0xa0   :  { %7138 = dma.done.wait [#allocation15], 6160  }
  0xa1   :  { %7139 = vsyncadd [#allocation15], 4294961136  ;;  %v5962_v0 = vld [vmem:[#allocation8 + $0x4] ss:$24 sps:$4 sm:$0xff]   ;;  %v5966_v2 = vld [vmem:[#allocation8] ss:$24 sps:$4 sm:$0xff]  }
  0xa2   :  { %v5964_v1 = vld [vmem:[#allocation8 + $0xc] ss:$24 sps:$4 sm:$0xff]   ;;  %2026 = vmatprep.subr.bf16.mxu0 %v5962_v0  ;;  %v5967_v3 = vld [vmem:[#allocation8 + $0x8] ss:$24 sps:$4 sm:$0xff]   ;;  %v5970_v5 = vld [vmem:[#allocation8 + $0x3c] ss:$24 sps:$4 sm:$0xff]  }
  0xa3   :  { %2155 = vmatprep.subr.bf16.mxu1 %v5964_v1  ;;  %v5968_v4 = vld [vmem:[#allocation8 + $0x34] ss:$24 sps:$4 sm:$0xff]   ;;  %2027 = vmatpush1.bf16.msra.mxu0 %v5966_v2  ;;  %v5972_v6 = vld [vmem:[#allocation8 + $0x30] ss:$24 sps:$4 sm:$0xff]   ;;  %v5974_v8 = vld [vmem:[#allocation8 + $0x64] ss:$24 sps:$4 sm:$0xff]  }
  0xa4   :  { %2156 = vmatpush1.bf16.msra.mxu1 %v5967_v3  ;;  %2028 = vmatprep.subr.bf16.mxu0 %v5968_v4  ;;  %v5973_v7 = vld [vmem:[#allocation8 + $0x38] ss:$24 sps:$4 sm:$0xff]   ;;  %v5976_v9 = vld [vmem:[#allocation8 + $0x6c] ss:$24 sps:$4 sm:$0xff]   ;;  %v5979_v11 = vld [vmem:[#allocation8 + $0x68] ss:$24 sps:$4 sm:$0xff]  }
  0xa5   :  { %2157 = vmatprep.subr.bf16.mxu1 %v5970_v5  ;;  %v5978_v10 = vld [vmem:[#allocation8 + $0x60] ss:$24 sps:$4 sm:$0xff]   ;;  %v5980_v12 = vld [vmem:[#allocation8 + $0x94] ss:$24 sps:$4 sm:$0xff]   ;;  %v5984_v14 = vld [vmem:[#allocation8 + $0x90] ss:$24 sps:$4 sm:$0xff]  }
  0xa6   :  { %v5982_v13 = vld [vmem:[#allocation8 + $0x9c] ss:$24 sps:$4 sm:$0xff]   ;;  %v5985_v15 = vld [vmem:[#allocation8 + $0x98] ss:$24 sps:$4 sm:$0xff]   ;;  %v5988_v17 = vld [vmem:[#allocation8 + $0xcc] ss:$24 sps:$4 sm:$0xff]  }
  0xa7   :  { %2029 = vmatpush1.bf16.msra.mxu0 %v5972_v6  ;;  %v5986_v16 = vld [vmem:[#allocation8 + $0xc4] ss:$24 sps:$4 sm:$0xff]   ;;  %v5990_v18 = vld [vmem:[#allocation8 + $0xc0] ss:$24 sps:$4 sm:$0xff]   ;;  %v5992_v20 = vld [vmem:[#allocation8 + $0xf4] ss:$24 sps:$4 sm:$0xff]  }
  0xa8   :  { %2158 = vmatpush1.bf16.msra.mxu1 %v5973_v7  ;;  %2030 = vmatprep.subr.bf16.mxu0 %v5974_v8  ;;  %v5991_v19 = vld [vmem:[#allocation8 + $0xc8] ss:$24 sps:$4 sm:$0xff]   ;;  %v5994_v21 = vld [vmem:[#allocation8 + $0xfc] ss:$24 sps:$4 sm:$0xff]   ;;  %v5997_v23 = vld [vmem:[#allocation8 + $0xf8] ss:$24 sps:$4 sm:$0xff]  }
  0xa9   :  { %2159 = vmatprep.subr.bf16.mxu1 %v5976_v9  ;;  %v5996_v22 = vld [vmem:[#allocation8 + $0xf0] ss:$24 sps:$4 sm:$0xff]   ;;  %v5998_v24 = vld [vmem:[#allocation8 + $0x124] ss:$24 sps:$4 sm:$0xff]   ;;  %v6002_v26 = vld [vmem:[#allocation8 + $0x120] ss:$24 sps:$4 sm:$0xff]  }
  0xaa   :  { %v6000_v25 = vld [vmem:[#allocation8 + $0x12c] ss:$24 sps:$4 sm:$0xff]   ;;  %v6003_v27 = vld [vmem:[#allocation8 + $0x128] ss:$24 sps:$4 sm:$0xff]   ;;  %v6006_v29 = vld [vmem:[#allocation8 + $0x15c] ss:$24 sps:$4 sm:$0xff]  }
  0xab   :  { %2031 = vmatpush1.bf16.msra.mxu0 %v5978_v10  ;;  %v6004_v28 = vld [vmem:[#allocation8 + $0x154] ss:$24 sps:$4 sm:$0xff]   ;;  %v6008_v30 = vld [vmem:[#allocation8 + $0x150] ss:$24 sps:$4 sm:$0xff]   ;;  %v6010_v32 = vld [vmem:[#allocation8 + $0x184] ss:$24 sps:$4 sm:$0xff]  }
  0xac   :  { %2160 = vmatpush1.bf16.msra.mxu1 %v5979_v11  ;;  %2032 = vmatprep.subr.bf16.mxu0 %v5980_v12  ;;  %v6009_v31 = vld [vmem:[#allocation8 + $0x158] ss:$24 sps:$4 sm:$0xff]   ;;  %v6012_v33 = vld [vmem:[#allocation8 + $0x18c] ss:$24 sps:$4 sm:$0xff]   ;;  %v6015_v35 = vld [vmem:[#allocation8 + $0x188] ss:$24 sps:$4 sm:$0xff]  }
  0xad   :  { %2161 = vmatprep.subr.bf16.mxu1 %v5982_v13  ;;  %v6014_v34 = vld [vmem:[#allocation8 + $0x180] ss:$24 sps:$4 sm:$0xff]   ;;  %v6016_v36 = vld [vmem:[#allocation8 + $0x1b4] ss:$24 sps:$4 sm:$0xff]   ;;  %v6020_v38 = vld [vmem:[#allocation8 + $0x1b0] ss:$24 sps:$4 sm:$0xff]  }
  0xae   :  { %v6018_v37 = vld [vmem:[#allocation8 + $0x1bc] ss:$24 sps:$4 sm:$0xff]   ;;  %v6021_v39 = vld [vmem:[#allocation8 + $0x1b8] ss:$24 sps:$4 sm:$0xff]   ;;  %v6024_v41 = vld [vmem:[#allocation8 + $0x1ec] ss:$24 sps:$4 sm:$0xff]  }
  0xaf   :  { %2033 = vmatpush1.bf16.msra.mxu0 %v5984_v14  ;;  %v6022_v40 = vld [vmem:[#allocation8 + $0x1e4] ss:$24 sps:$4 sm:$0xff]   ;;  %v6026_v42 = vld [vmem:[#allocation8 + $0x1e0] ss:$24 sps:$4 sm:$0xff]   ;;  %v6028_v44 = vld [vmem:[#allocation8 + $0x214] ss:$24 sps:$4 sm:$0xff]  }
  0xb0   :  { %2162 = vmatpush1.bf16.msra.mxu1 %v5985_v15  ;;  %2034 = vmatprep.subr.bf16.mxu0 %v5986_v16  ;;  %v6027_v43 = vld [vmem:[#allocation8 + $0x1e8] ss:$24 sps:$4 sm:$0xff]   ;;  %v6030_v45 = vld [vmem:[#allocation8 + $0x21c] ss:$24 sps:$4 sm:$0xff]   ;;  %v6033_v47 = vld [vmem:[#allocation8 + $0x218] ss:$24 sps:$4 sm:$0xff]  }
  0xb1   :  { %2163 = vmatprep.subr.bf16.mxu1 %v5988_v17  ;;  %v6032_v46 = vld [vmem:[#allocation8 + $0x210] ss:$24 sps:$4 sm:$0xff]   ;;  %v148_v48 = vld [vmem:[#allocation2] sm:$0xff]  ;;  %v6036_v57 = vld [vmem:[#allocation8 + $0x24c] ss:$24 sps:$4 sm:$0xff]   ;;  %s7155_s8 = smov [#allocation17]  }
  0xb2   :  { %v151_v49 = vld [vmem:[#allocation2 + $0x18] sm:$0xff]  ;;  %v155_v50 = vunpack.c.h.bf16 %v148_v48  ;;  %v166_v51 = vld [vmem:[#allocation5] sm:$0xff]  ;;  %v169_v52 = vld [vmem:[#allocation5 + $0x18] sm:$0xff]  ;;  %v154_v6 = vunpack.c.l.bf16 %v148_v48  ;;  %s5179_s12 = sshll.u32 %s7155_s8, 4  ;;  %s5180_s12 = int_to_ptr.vmem [resolvable:$true] %s5179_s12 }
  0xb3   :  { %2035 = vmatpush1.bf16.msra.mxu0 %v5990_v18  ;;  %v6034_v53 = vld [vmem:[#allocation8 + $0x244] ss:$24 sps:$4 sm:$0xff]   ;;  %v161_v54 = vunpack.c.h.bf16 %v151_v49  ;;  %v173_v55 = vunpack.c.h.bf16 %v166_v51  ;;  %v179_v56 = vunpack.c.h.bf16 %v169_v52  ;;  %v6038_v60 = vld [vmem:[#allocation8 + $0x240] ss:$24 sps:$4 sm:$0xff]   ;;  %v6040_v63 = vld [vmem:[#allocation8 + $0x274] ss:$24 sps:$4 sm:$0xff]   ;;  %v160_v7 = vunpack.c.l.bf16 %v151_v49  ;;  %p7113_p3 = scmp.lt.s32.totalorder %s5180_s12, %s5180_s12 }
  0xb4   :  { %2164 = vmatpush1.bf16.msra.mxu1 %v5991_v19  ;;  %2036 = vmatprep.subr.bf16.mxu0 %v5992_v20  ;;  %v6039_v61 = vld [vmem:[#allocation8 + $0x248] ss:$24 sps:$4 sm:$0xff]   ;;  %v6042_v0 = vld [vmem:[#allocation8 + $0x27c] ss:$24 sps:$4 sm:$0xff]   ;;  %v6045_v2 = vld [vmem:[#allocation8 + $0x278] ss:$24 sps:$4 sm:$0xff]   ;;  %v172_v8 = vunpack.c.l.bf16 %v166_v51  ;;  %v178_v9 = vunpack.c.l.bf16 %v169_v52 }
  0xb5   :  { %2165 = vmatprep.subr.bf16.mxu1 %v5994_v21  ;;  %v7342_v58 = vsub.f32 %v155_v50, %v173_v55  ;;  %v7344_v59 = vsub.f32 %v161_v54, %v179_v56  ;;  %v6044_v1 = vld [vmem:[#allocation8 + $0x270] ss:$24 sps:$4 sm:$0xff]   ;;  %v6046_v3 = vld [vmem:[#allocation8 + $0x2a4] ss:$24 sps:$4 sm:$0xff]   ;;  %v6050_v5 = vld [vmem:[#allocation8 + $0x2a0] ss:$24 sps:$4 sm:$0xff]  }
  0xb6   :  { %v6048_v4 = vld [vmem:[#allocation8 + $0x2ac] ss:$24 sps:$4 sm:$0xff]   ;;  %v6051_v10 = vld [vmem:[#allocation8 + $0x2a8] ss:$24 sps:$4 sm:$0xff]   ;;  %v6054_v12 = vld [vmem:[#allocation8 + $0x2dc] ss:$24 sps:$4 sm:$0xff]   ;;  %v7352_v14 = vsub.f32 %v154_v6, %v172_v8  ;;  %v7354_v15 = vsub.f32 %v160_v7, %v178_v9 }
  0xb7   :  { %2037 = vmatpush1.bf16.msra.mxu0 %v5996_v22  ;;  %v7348_v62 = vpack.c.bf16 %v7344_v59, %v7342_v58  ;;  %v6052_v11 = vld [vmem:[#allocation8 + $0x2d4] ss:$24 sps:$4 sm:$0xff]   ;;  %v6056_v13 = vld [vmem:[#allocation8 + $0x2d0] ss:$24 sps:$4 sm:$0xff]   ;;  %v6060_v17 = vld [vmem:[#allocation8 + $0x304] ss:$24 sps:$4 sm:$0xff]  }
  0xb8   :  { %2166 = vmatpush1.bf16.msra.mxu1 %v5997_v23  ;;  %2038 = vmatprep.subr.bf16.mxu0 %v5998_v24  ;;  %v6057_v16 = vld [vmem:[#allocation8 + $0x2d8] ss:$24 sps:$4 sm:$0xff]   ;;  %v6063_v18 = vld [vmem:[#allocation8 + $0x30c] ss:$24 sps:$4 sm:$0xff]   ;;  %v7358_v20 = vpack.c.bf16 %v7354_v15, %v7352_v14  ;;  %v6061_v21 = vld [vmem:[#allocation8 + $0x308] ss:$24 sps:$4 sm:$0xff]  }
  0xb9   :  { %2167 = vmatprep.subr.bf16.mxu1 %v6000_v25  ;;  %2058 = vmatprep.mubr.bf16.mxu0 %v7348_v62  ;;  %v6058_v19 = vld [vmem:[#allocation8 + $0x300] ss:$24 sps:$4 sm:$0xff]   ;;  %v6066_v22 = vld [vmem:[#allocation8 + $0x334] ss:$24 sps:$4 sm:$0xff]   ;;  %v6064_v24 = vld [vmem:[#allocation8 + $0x330] ss:$24 sps:$4 sm:$0xff]  }
  0xba   :  { %2187 = vmatprep.mubr.bf16.mxu1 %v7348_v62  ;;  %v6069_v23 = vld [vmem:[#allocation8 + $0x33c] ss:$24 sps:$4 sm:$0xff]   ;;  %v6067_v25 = vld [vmem:[#allocation8 + $0x338] ss:$24 sps:$4 sm:$0xff]   ;;  %v197_v6 = vsub.f32 1e-06, %v7342_v58 }
  0xbb   :  { %2039 = vmatpush1.bf16.msra.mxu0 %v6002_v26  ;;  %v6072_v26 = vld [vmem:[#allocation8 + $0x364] ss:$24 sps:$4 sm:$0xff]   ;;  %v7367_v50 = vld [vmem:[#allocation5 + $0x8] sm:$0xff]  ;;  %v7369_v51 = vld [vmem:[#allocation5 + $0x20] sm:$0xff]  ;;  %v196_v7 = vsub.f32 1e-06, %v7352_v14 }
  0xbc   :  { %2168 = vmatpush1.bf16.msra.mxu1 %v6003_v27  ;;  %2040 = vmatprep.subr.bf16.mxu0 %v6004_v28  ;;  %v6075_v27 = vld [vmem:[#allocation8 + $0x36c] ss:$24 sps:$4 sm:$0xff]   ;;  %v6070_v28 = vld [vmem:[#allocation8 + $0x360] ss:$24 sps:$4 sm:$0xff]   ;;  %v6105_v52 = vld [vmem:[#allocation8 + $0x45c] ss:$24 sps:$4 sm:$0xff]   ;;  %v175_v54 = vunpack.c.h.bf16 %v7367_v50  ;;  %v181_v55 = vunpack.c.h.bf16 %v7369_v51  ;;  %v209_v58 = vmul.f32 %v197_v6, %v197_v6 }
  0xbd   :  { %2169 = vmatprep.subr.bf16.mxu1 %v6006_v29  ;;  %v6073_v29 = vld [vmem:[#allocation8 + $0x368] ss:$24 sps:$4 sm:$0xff]   ;;  %v6115_v9 = vld [vmem:[#allocation8 + $0x4b8] ss:$24 sps:$4 sm:$0xff]   ;;  %v6129_v14 = vld [vmem:[#allocation8 + $0x51c] ss:$24 sps:$4 sm:$0xff]  }
  0xbe   :  { %v7364_v48 = vld [vmem:[#allocation2 + $0x20] sm:$0xff]  ;;  %v6100_v56 = vld [vmem:[#allocation8 + $0x450] ss:$24 sps:$4 sm:$0xff]   ;;  %s7108_s27 = scalar_lea.vmem %s5180_s12, 256 }
  0xbf   :  { %2041 = vmatpush1.bf16.msra.mxu0 %v6008_v30  ;;  %v6078_v30 = vld [vmem:[#allocation8 + $0x394] ss:$24 sps:$4 sm:$0xff]   ;;  %v6112_v8 = vld [vmem:[#allocation8 + $0x4b0] ss:$24 sps:$4 sm:$0xff]   ;;  %p7109_p2 = scmp.ne.s32.totalorder %s5180_s12, %s7108_s27  ;;  %p7114_p4 = scmp.lt.s32.totalorder %s7108_s27, %s7108_s27 }
  0xc0   :  { %2170 = vmatpush1.bf16.msra.mxu1 %v6009_v31  ;;  %2042 = vmatprep.subr.bf16.mxu0 %v6010_v32  ;;  %v6081_v31 = vld [vmem:[#allocation8 + $0x39c] ss:$24 sps:$4 sm:$0xff]   ;;  %v6076_v32 = vld [vmem:[#allocation8 + $0x390] ss:$24 sps:$4 sm:$0xff]  }
  0xc1   :  { %2171 = vmatprep.subr.bf16.mxu1 %v6012_v33  ;;  %v6079_v33 = vld [vmem:[#allocation8 + $0x398] ss:$24 sps:$4 sm:$0xff]   ;;  %p7115_p5 = por %p7114_p4, %p7113_p3 }
  0xc3   :  { %2043 = vmatpush1.bf16.msra.mxu0 %v6014_v34  ;;  %v6084_v34 = vld [vmem:[#allocation8 + $0x3c4] ss:$24 sps:$4 sm:$0xff]   ;;  %p7116_p6 = pnand %p7115_p5, %p7109_p2 }
  0xc4   :  { %2172 = vmatpush1.bf16.msra.mxu1 %v6015_v35  ;;  %2044 = vmatprep.subr.bf16.mxu0 %v6016_v36  ;;  %v6087_v35 = vld [vmem:[#allocation8 + $0x3cc] ss:$24 sps:$4 sm:$0xff]   ;;  %v6082_v36 = vld [vmem:[#allocation8 + $0x3c0] ss:$24 sps:$4 sm:$0xff]  }
  0xc5   :  { %2173 = vmatprep.subr.bf16.mxu1 %v6018_v37  ;;  %v6085_v37 = vld [vmem:[#allocation8 + $0x3c8] ss:$24 sps:$4 sm:$0xff]  }
  0xc7   :  { %2045 = vmatpush1.bf16.msra.mxu0 %v6020_v38  ;;  %v6090_v38 = vld [vmem:[#allocation8 + $0x3f4] ss:$24 sps:$4 sm:$0xff]  }
  0xc8   :  { %2174 = vmatpush1.bf16.msra.mxu1 %v6021_v39  ;;  %2046 = vmatprep.subr.bf16.mxu0 %v6022_v40  ;;  %v6093_v39 = vld [vmem:[#allocation8 + $0x3fc] ss:$24 sps:$4 sm:$0xff]   ;;  %v6088_v40 = vld [vmem:[#allocation8 + $0x3f0] ss:$24 sps:$4 sm:$0xff]  }
  0xc9   :  { %2175 = vmatprep.subr.bf16.mxu1 %v6024_v41  ;;  %v6091_v41 = vld [vmem:[#allocation8 + $0x3f8] ss:$24 sps:$4 sm:$0xff]  }
  0xcb   :  { %2047 = vmatpush1.bf16.msra.mxu0 %v6026_v42  ;;  %v6096_v42 = vld [vmem:[#allocation8 + $0x424] ss:$24 sps:$4 sm:$0xff]  }
  0xcc   :  { %2176 = vmatpush1.bf16.msra.mxu1 %v6027_v43  ;;  %2048 = vmatprep.subr.bf16.mxu0 %v6028_v44  ;;  %v6099_v43 = vld [vmem:[#allocation8 + $0x42c] ss:$24 sps:$4 sm:$0xff]   ;;  %v6094_v44 = vld [vmem:[#allocation8 + $0x420] ss:$24 sps:$4 sm:$0xff]  }
  0xcd   :  { %2177 = vmatprep.subr.bf16.mxu1 %v6030_v45  ;;  %v6097_v45 = vld [vmem:[#allocation8 + $0x428] ss:$24 sps:$4 sm:$0xff]  }
  0xcf   :  { %2049 = vmatpush1.bf16.msra.mxu0 %v6032_v46  ;;  %v6102_v46 = vld [vmem:[#allocation8 + $0x454] ss:$24 sps:$4 sm:$0xff]  }
  0xd0   :  { %2178 = vmatpush1.bf16.msra.mxu1 %v6033_v47  ;;  %2050 = vmatprep.subr.bf16.mxu0 %v6034_v53  ;;  %v7362_v47 = vld [vmem:[#allocation2 + $0x8] sm:$0xff]  ;;  %v163_v53 = vunpack.c.h.bf16 %v7364_v48 }
  0xd1   :  { %2179 = vmatprep.subr.bf16.mxu1 %v6036_v57  ;;  %v157_v49 = vunpack.c.h.bf16 %v7362_v47 }
  0xd3   :  { %2051 = vmatpush1.bf16.msra.mxu0 %v6038_v60  ;;  %v7374_v57 = vsub.f32 %v157_v49, %v175_v54  ;;  %v6103_v60 = vld [vmem:[#allocation8 + $0x458] ss:$24 sps:$4 sm:$0xff]   ;;  %v6156_v49 = vld [vmem:[#allocation8 + $0x604] ss:$24 sps:$4 sm:$0xff]  }
  0xd4   :  { %2180 = vmatpush1.bf16.msra.mxu1 %v6039_v61  ;;  %2052 = vmatprep.subr.bf16.mxu0 %v6040_v63  ;;  %v6108_v61 = vld [vmem:[#allocation8 + $0x484] ss:$24 sps:$4 sm:$0xff]   ;;  %v7376_v63 = vsub.f32 %v163_v53, %v181_v55  ;;  %v6162_v53 = vld [vmem:[#allocation8 + $0x634] ss:$24 sps:$4 sm:$0xff]  }
  0xd5   :  { %2181 = vmatprep.subr.bf16.mxu1 %v6042_v0  ;;  %v6111_v0 = vld [vmem:[#allocation8 + $0x48c] ss:$24 sps:$4 sm:$0xff]   ;;  %v199_v55 = vsub.f32 1e-06, %v7374_v57 }
  0xd7   :  { %2053 = vmatpush1.bf16.msra.mxu0 %v6044_v1  ;;  %v7380_v1 = vpack.c.bf16 %v7376_v63, %v7374_v57  ;;  %v171_v57 = vld [vmem:[#allocation5 + $0x28] sm:$0xff] }
  0xd8   :  { %2182 = vmatpush1.bf16.msra.mxu1 %v6045_v2  ;;  %2054 = vmatprep.subr.bf16.mxu0 %v6046_v3  ;;  %v6106_v2 = vld [vmem:[#allocation8 + $0x480] ss:$24 sps:$4 sm:$0xff]  }
  0xd9   :  { %2183 = vmatprep.subr.bf16.mxu1 %v6048_v4  ;;  %v6109_v3 = vld [vmem:[#allocation8 + $0x488] ss:$24 sps:$4 sm:$0xff]   ;;  %v6114_v4 = vld [vmem:[#allocation8 + $0x4b4] ss:$24 sps:$4 sm:$0xff]  }
  0xdb   :  { %2055 = vmatpush1.bf16.msra.mxu0 %v6050_v5  ;;  %v6117_v5 = vld [vmem:[#allocation8 + $0x4bc] ss:$24 sps:$4 sm:$0xff]  }
  0xdc   :  { %2184 = vmatpush1.bf16.msra.mxu1 %v6051_v10  ;;  %2056 = vmatprep.subr.bf16.mxu0 %v6052_v11  ;;  %v6120_v10 = vld [vmem:[#allocation8 + $0x4e4] ss:$24 sps:$4 sm:$0xff]  }
  0xdd   :  { %2185 = vmatprep.subr.bf16.mxu1 %v6054_v12  ;;  %v6123_v11 = vld [vmem:[#allocation8 + $0x4ec] ss:$24 sps:$4 sm:$0xff]   ;;  %v203_v12 = vsub.f32 1e-06, %v7344_v59 }
  0xdf   :  { %2057 = vmatpush1.bf16.msra.mxu0 %v6056_v13  ;;  %v202_v13 = vsub.f32 1e-06, %v7354_v15  ;;  %v6135_v15 = vld [vmem:[#allocation8 + $0x54c] ss:$24 sps:$4 sm:$0xff]  }
  0xe0   :  { %2186 = vmatpush1.bf16.msra.mxu1 %v6057_v16  ;;  %2069 = vmatprep.subr.bf16.mxu0 %v6060_v17  ;;  %v6118_v16 = vld [vmem:[#allocation8 + $0x4e0] ss:$24 sps:$4 sm:$0xff]   ;;  %v208_v17 = vmul.f32 %v196_v7, %v196_v7 }
  0xe1   :  { %2198 = vmatprep.subr.bf16.mxu1 %v6063_v18  ;;  %v6121_v18 = vld [vmem:[#allocation8 + $0x4e8] ss:$24 sps:$4 sm:$0xff]  }
  0xe2   :  { %2059 = vmatmul.mubr.bf16.vlgmr.msra.gmra.mrb[0].mxu0 %v7358_v20  ;;  %v220_v59 = vadd.f32 %v209_v58, %v208_v17  ;;  %v205_v58 = vsub.f32 1e-06, %v7376_v63  ;;  %v183_v17 = vunpack.c.h.bf16 %v171_v57 }
  0xe3   :  { %2188 = vmatmul.mubr.bf16.vlgmr.msra.gmra.mrb[0].mxu1 %v7358_v20  ;;  %2070 = vmatpush1.bf16.msra.mxu0 %v6058_v19  ;;  %v6126_v19 = vld [vmem:[#allocation8 + $0x514] ss:$24 sps:$4 sm:$0xff]  }
  0xe4   :  { %2199 = vmatpush1.bf16.msra.mxu1 %v6061_v21  ;;  %2071 = vmatprep.subr.bf16.mxu0 %v6066_v22  ;;  %v6124_v21 = vld [vmem:[#allocation8 + $0x510] ss:$24 sps:$4 sm:$0xff]   ;;  %v215_v22 = vmul.f32 %v203_v12, %v203_v12 }
  0xe5   :  { %2200 = vmatprep.subr.bf16.mxu1 %v6069_v23  ;;  %2101 = vmatprep.mubr.bf16.mxu0 %v7380_v1  ;;  %v214_v23 = vmul.f32 %v202_v13, %v202_v13 }
  0xe6   :  { %2230 = vmatprep.mubr.bf16.mxu1 %v7380_v1 }
  0xe7   :  { %2072 = vmatpush1.bf16.msra.mxu0 %v6064_v24  ;;  %v6127_v24 = vld [vmem:[#allocation8 + $0x518] ss:$24 sps:$4 sm:$0xff]  }
  0xe8   :  { %2201 = vmatpush1.bf16.msra.mxu1 %v6067_v25  ;;  %2073 = vmatprep.subr.bf16.mxu0 %v6072_v26  ;;  %v6132_v25 = vld [vmem:[#allocation8 + $0x544] ss:$24 sps:$4 sm:$0xff]   ;;  %v6130_v26 = vld [vmem:[#allocation8 + $0x540] ss:$24 sps:$4 sm:$0xff]  }
  0xe9   :  { %2202 = vmatprep.subr.bf16.mxu1 %v6075_v27  ;;  %v6133_v27 = vld [vmem:[#allocation8 + $0x548] ss:$24 sps:$4 sm:$0xff]  }
  0xeb   :  { %2074 = vmatpush1.bf16.msra.mxu0 %v6070_v28  ;;  %v6138_v28 = vld [vmem:[#allocation8 + $0x574] ss:$24 sps:$4 sm:$0xff]  }
  0xec   :  { %2203 = vmatpush1.bf16.msra.mxu1 %v6073_v29  ;;  %2075 = vmatprep.subr.bf16.mxu0 %v6078_v30  ;;  %v7388_v29 = vadd.f32 %v215_v22, %v214_v23  ;;  %v6141_v30 = vld [vmem:[#allocation8 + $0x57c] ss:$24 sps:$4 sm:$0xff]   ;;  %v6169_v23 = vld [vmem:[#allocation8 + $0x668] ss:$24 sps:$4 sm:$0xff]  }
  0xed   :  { %2204 = vmatprep.subr.bf16.mxu1 %v6081_v31  ;;  %v6136_v31 = vld [vmem:[#allocation8 + $0x570] ss:$24 sps:$4 sm:$0xff]  }
  0xef   :  { %2076 = vmatpush1.bf16.msra.mxu0 %v6076_v32  ;;  %v6139_v32 = vld [vmem:[#allocation8 + $0x578] ss:$24 sps:$4 sm:$0xff]  }
  0xf0   :  { %2205 = vmatpush1.bf16.msra.mxu1 %v6079_v33  ;;  %2077 = vmatprep.subr.bf16.mxu0 %v6084_v34  ;;  %v6144_v33 = vld [vmem:[#allocation8 + $0x5a4] ss:$24 sps:$4 sm:$0xff]  }
  0xf1   :  { %2206 = vmatprep.subr.bf16.mxu1 %v6087_v35  ;;  %v6147_v34 = vld [vmem:[#allocation8 + $0x5ac] ss:$24 sps:$4 sm:$0xff]   ;;  %v156_v35 = vunpack.c.l.bf16 %v7362_v47  ;;  %v6151_v47 = vld [vmem:[#allocation8 + $0x5d8] ss:$24 sps:$4 sm:$0xff]  }
  0xf3   :  { %2078 = vmatpush1.bf16.msra.mxu0 %v6082_v36  ;;  %v174_v36 = vunpack.c.l.bf16 %v7367_v50  ;;  %v6154_v50 = vld [vmem:[#allocation8 + $0x600] ss:$24 sps:$4 sm:$0xff]  }
  0xf4   :  { %2207 = vmatpush1.bf16.msra.mxu1 %v6085_v37  ;;  %2079 = vmatprep.subr.bf16.mxu0 %v6090_v38  ;;  %v6142_v37 = vld [vmem:[#allocation8 + $0x5a0] ss:$24 sps:$4 sm:$0xff]   ;;  %v162_v38 = vunpack.c.l.bf16 %v7364_v48  ;;  %v6159_v48 = vld [vmem:[#allocation8 + $0x60c] ss:$24 sps:$4 sm:$0xff]  }
  0xf5   :  { %2208 = vmatprep.subr.bf16.mxu1 %v6093_v39  ;;  %v180_v39 = vunpack.c.l.bf16 %v7369_v51  ;;  %v6157_v51 = vld [vmem:[#allocation8 + $0x608] ss:$24 sps:$4 sm:$0xff]  }
  0xf7   :  { %2080 = vmatpush1.bf16.msra.mxu0 %v6088_v40  ;;  %v6145_v40 = vld [vmem:[#allocation8 + $0x5a8] ss:$24 sps:$4 sm:$0xff]  }
  0xf8   :  { %2209 = vmatpush1.bf16.msra.mxu1 %v6091_v41  ;;  %2081 = vmatprep.subr.bf16.mxu0 %v6096_v42  ;;  %v6150_v41 = vld [vmem:[#allocation8 + $0x5d4] ss:$24 sps:$4 sm:$0xff]  }
  0xf9   :  { %2210 = vmatprep.subr.bf16.mxu1 %v6099_v43  ;;  %v6153_v42 = vld [vmem:[#allocation8 + $0x5dc] ss:$24 sps:$4 sm:$0xff]   ;;  %v186_v43 = vsub.f32 %v156_v35, %v174_v36 }
  0xfa   :  { %v6180_v35 = vld [vmem:[#allocation8 + $0x6c4] ss:$24 sps:$4 sm:$0xff]  }
  0xfb   :  { %2082 = vmatpush1.bf16.msra.mxu0 %v6094_v44  ;;  %v6148_v44 = vld [vmem:[#allocation8 + $0x5d0] ss:$24 sps:$4 sm:$0xff]  }
  0xfc   :  { %2211 = vmatpush1.bf16.msra.mxu1 %v6097_v45  ;;  %2083 = vmatprep.subr.bf16.mxu0 %v6102_v46  ;;  %v192_v45 = vsub.f32 %v162_v38, %v180_v39  ;;  %v198_v46 = vsub.f32 1e-06, %v186_v43 }
  0xfd   :  { %2212 = vmatprep.subr.bf16.mxu1 %v6105_v52 }
  0xfe   :  { %v7394_v52 = vpack.c.bf16 %v192_v45, %v186_v43  ;;  %v210_v54 = vmul.f32 %v198_v46, %v198_v46 }
  0xff   :  { %2084 = vmatpush1.bf16.msra.mxu0 %v6100_v56  ;;  %v204_v56 = vsub.f32 1e-06, %v192_v45  ;;  %v6186_v45 = vld [vmem:[#allocation8 + $0x6f4] ss:$24 sps:$4 sm:$0xff]  }
 0x100   :  { %2213 = vmatpush1.bf16.msra.mxu1 %v6103_v60  ;;  %2085 = vmatprep.subr.bf16.mxu0 %v6108_v61  ;;  %v6165_v60 = vld [vmem:[#allocation8 + $0x63c] ss:$24 sps:$4 sm:$0xff]   ;;  %v6160_v61 = vld [vmem:[#allocation8 + $0x630] ss:$24 sps:$4 sm:$0xff]  }
 0x101   :  { %2214 = vmatprep.subr.bf16.mxu1 %v6111_v0  ;;  %v6163_v0 = vld [vmem:[#allocation8 + $0x638] ss:$24 sps:$4 sm:$0xff]  }
 0x103   :  { %2086 = vmatpush1.bf16.msra.mxu0 %v6106_v2  ;;  %v6168_v2 = vld [vmem:[#allocation8 + $0x664] ss:$24 sps:$4 sm:$0xff]  }
 0x104   :  { %2215 = vmatpush1.bf16.msra.mxu1 %v6109_v3  ;;  %2087 = vmatprep.subr.bf16.mxu0 %v6114_v4  ;;  %v150_v3 = vld [vmem:[#allocation2 + $0x10] sm:$0xff]  ;;  %v221_v4 = vadd.f32 %v220_v59, %v210_v54  ;;  %v6177_v59 = vld [vmem:[#allocation8 + $0x69c] ss:$24 sps:$4 sm:$0xff]  }
 0x105   :  { %2216 = vmatprep.subr.bf16.mxu1 %v6117_v5  ;;  %v153_v5 = vld [vmem:[#allocation2 + $0x28] sm:$0xff]  ;;  %v158_v6 = vunpack.c.l.bf16 %v150_v3  ;;  %v159_v7 = vunpack.c.h.bf16 %v150_v3 }
 0x106   :  { %v165_v12 = vunpack.c.h.bf16 %v153_v5  ;;  %v6195_v54 = vld [vmem:[#allocation8 + $0x72c] ss:$24 sps:$4 sm:$0xff]  }
 0x107   :  { %2088 = vmatpush1.bf16.msra.mxu0 %v6112_v8  ;;  %v168_v8 = vld [vmem:[#allocation5 + $0x10] sm:$0xff] }
 0x108   :  { %2217 = vmatpush1.bf16.msra.mxu1 %v6115_v9  ;;  %2089 = vmatprep.subr.bf16.mxu0 %v6120_v10  ;;  %v211_v9 = vmul.f32 %v199_v55, %v199_v55  ;;  %v216_v10 = vmul.f32 %v204_v56, %v204_v56  ;;  %v176_v13 = vunpack.c.l.bf16 %v168_v8  ;;  %v6190_v55 = vld [vmem:[#allocation8 + $0x720] ss:$24 sps:$4 sm:$0xff]   ;;  %v6204_v3 = vld [vmem:[#allocation8 + $0x784] ss:$24 sps:$4 sm:$0xff]  }
 0x109   :  { %2218 = vmatprep.subr.bf16.mxu1 %v6123_v11  ;;  %v6171_v11 = vld [vmem:[#allocation8 + $0x66c] ss:$24 sps:$4 sm:$0xff]   ;;  %v6193_v56 = vld [vmem:[#allocation8 + $0x728] ss:$24 sps:$4 sm:$0xff]  }
 0x10a   :  { %v7400_v22 = vsub.f32 %v158_v6, %v176_v13  ;;  %v228_v63 = vadd.f32 %v7388_v29, %v216_v10  ;;  %v6205_v6 = vld [vmem:[#allocation8 + $0x788] ss:$24 sps:$4 sm:$0xff]   ;;  %v6216_v10 = vld [vmem:[#allocation8 + $0x7e4] ss:$24 sps:$4 sm:$0xff]  }
 0x10b   :  { %2090 = vmatpush1.bf16.msra.mxu0 %v6118_v16  ;;  %v177_v16 = vunpack.c.h.bf16 %v168_v8  ;;  %v6213_v8 = vld [vmem:[#allocation8 + $0x7bc] ss:$24 sps:$4 sm:$0xff]   ;;  %v6217_v13 = vld [vmem:[#allocation8 + $0x7e8] ss:$24 sps:$4 sm:$0xff]  }
 0x10c   :  { %2219 = vmatpush1.bf16.msra.mxu1 %v6121_v18  ;;  %2091 = vmatprep.subr.bf16.mxu0 %v6126_v19  ;;  %v6166_v18 = vld [vmem:[#allocation8 + $0x660] ss:$24 sps:$4 sm:$0xff]   ;;  %v164_v19 = vunpack.c.l.bf16 %v153_v5 }
 0x10d   :  { %2220 = vmatprep.subr.bf16.mxu1 %v6129_v14  ;;  %v182_v14 = vunpack.c.l.bf16 %v171_v57  ;;  %v6202_v5 = vld [vmem:[#allocation8 + $0x780] ss:$24 sps:$4 sm:$0xff]   ;;  %v6208_v57 = vld [vmem:[#allocation8 + $0x7b0] ss:$24 sps:$4 sm:$0xff]  }
 0x10f   :  { %2092 = vmatpush1.bf16.msra.mxu0 %v6124_v21  ;;  %v189_v21 = vsub.f32 %v159_v7, %v177_v16  ;;  %v6210_v7 = vld [vmem:[#allocation8 + $0x7b4] ss:$24 sps:$4 sm:$0xff]  }
 0x110   :  { %2221 = vmatpush1.bf16.msra.mxu1 %v6127_v24  ;;  %2093 = vmatprep.subr.bf16.mxu0 %v6132_v25  ;;  %v6174_v24 = vld [vmem:[#allocation8 + $0x694] ss:$24 sps:$4 sm:$0xff]   ;;  %v195_v25 = vsub.f32 %v165_v12, %v183_v17  ;;  %v6214_v12 = vld [vmem:[#allocation8 + $0x7e0] ss:$24 sps:$4 sm:$0xff]   ;;  %v6220_v17 = vld [vmem:[#allocation8 + $0x810] ss:$24 sps:$4 sm:$0xff]  }
 0x111   :  { %2222 = vmatprep.subr.bf16.mxu1 %v6135_v15  ;;  %v200_v15 = vsub.f32 1e-06, %v7400_v22  ;;  %v6222_v16 = vld [vmem:[#allocation8 + $0x814] ss:$24 sps:$4 sm:$0xff]  }
 0x112   :  { %v207_v29 = vsub.f32 1e-06, %v195_v25 }
 0x113   :  { %2094 = vmatpush1.bf16.msra.mxu0 %v6130_v26  ;;  %v222_v26 = vadd.f32 %v221_v4, %v211_v9  ;;  %v6207_v4 = vld [vmem:[#allocation8 + $0x78c] ss:$24 sps:$4 sm:$0xff]   ;;  %v6211_v9 = vld [vmem:[#allocation8 + $0x7b8] ss:$24 sps:$4 sm:$0xff]  }
 0x114   :  { %2223 = vmatpush1.bf16.msra.mxu1 %v6133_v27  ;;  %2095 = vmatprep.subr.bf16.mxu0 %v6138_v28  ;;  %v217_v27 = vmul.f32 %v205_v58, %v205_v58  ;;  %v7404_v28 = vpack.c.bf16 %v195_v25, %v189_v21  ;;  %v219_v46 = vmul.f32 %v207_v29, %v207_v29  ;;  %v6225_v58 = vld [vmem:[#allocation8 + $0x81c] ss:$24 sps:$4 sm:$0xff]  }
 0x115   :  { %2224 = vmatprep.subr.bf16.mxu1 %v6141_v30  ;;  %v201_v30 = vsub.f32 1e-06, %v189_v21  ;;  %v6226_v21 = vld [vmem:[#allocation8 + $0x840] ss:$24 sps:$4 sm:$0xff]   ;;  %v6237_v25 = vld [vmem:[#allocation8 + $0x87c] ss:$24 sps:$4 sm:$0xff]  }
 0x116   :  { %v6258_v29 = vld [vmem:[#allocation8 + $0x74] ss:$24 sps:$4 sm:$0xff]  }
 0x117   :  { %2096 = vmatpush1.bf16.msra.mxu0 %v6136_v31  ;;  %v6172_v31 = vld [vmem:[#allocation8 + $0x690] ss:$24 sps:$4 sm:$0xff]   ;;  %v213_v36 = vmul.f32 %v201_v30, %v201_v30 }
 0x118   :  { %2225 = vmatpush1.bf16.msra.mxu1 %v6139_v32  ;;  %2097 = vmatprep.subr.bf16.mxu0 %v6144_v33  ;;  %v7406_v32 = vsub.f32 %v164_v19, %v182_v14  ;;  %v212_v33 = vmul.f32 %v200_v15, %v200_v15  ;;  %v6228_v19 = vld [vmem:[#allocation8 + $0x844] ss:$24 sps:$4 sm:$0xff]   ;;  %v6235_v15 = vld [vmem:[#allocation8 + $0x878] ss:$24 sps:$4 sm:$0xff]   ;;  %v6241_v30 = vld [vmem:[#allocation8 + $0x8a8] ss:$24 sps:$4 sm:$0xff]  }
 0x119   :  { %2226 = vmatprep.subr.bf16.mxu1 %v6147_v34  ;;  %v6175_v34 = vld [vmem:[#allocation8 + $0x698] ss:$24 sps:$4 sm:$0xff]   ;;  %v6231_v14 = vld [vmem:[#allocation8 + $0x84c] ss:$24 sps:$4 sm:$0xff]  }
 0x11a   :  { %v223_v38 = vadd.f32 %v222_v26, %v212_v33  ;;  %v206_v39 = vsub.f32 1e-06, %v7406_v32  ;;  %v6240_v26 = vld [vmem:[#allocation8 + $0x8a4] ss:$24 sps:$4 sm:$0xff]  }
 0x11b   :  { %2098 = vmatpush1.bf16.msra.mxu0 %v6142_v37  ;;  %v6183_v37 = vld [vmem:[#allocation8 + $0x6cc] ss:$24 sps:$4 sm:$0xff]   ;;  %v6249_v33 = vld [vmem:[#allocation8 + $0x8dc] ss:$24 sps:$4 sm:$0xff]  }
 0x11c   :  { %2227 = vmatpush1.bf16.msra.mxu1 %v6145_v40  ;;  %2099 = vmatprep.subr.bf16.mxu0 %v6150_v41  ;;  %v229_v40 = vadd.f32 %v228_v63, %v217_v27  ;;  %v6178_v41 = vld [vmem:[#allocation8 + $0x6c0] ss:$24 sps:$4 sm:$0xff]   ;;  %v218_v43 = vmul.f32 %v206_v39, %v206_v39  ;;  %v6243_v27 = vld [vmem:[#allocation8 + $0x8ac] ss:$24 sps:$4 sm:$0xff]  }
 0x11d   :  { %2228 = vmatprep.subr.bf16.mxu1 %v6153_v42  ;;  %v224_v42 = vadd.f32 %v223_v38, %v213_v36  ;;  %v6238_v63 = vld [vmem:[#allocation8 + $0x8a0] ss:$24 sps:$4 sm:$0xff]   ;;  %v6252_v36 = vld [vmem:[#allocation8 + $0x14] ss:$24 sps:$4 sm:$0xff]   ;;  %v6250_v38 = vld [vmem:[#allocation8 + $0x10] ss:$24 sps:$4 sm:$0xff]  }
 0x11e   :  { %v6255_v39 = vld [vmem:[#allocation8 + $0x44] ss:$24 sps:$4 sm:$0xff]  }
 0x11f   :  { %2100 = vmatpush1.bf16.msra.mxu0 %v6148_v44  ;;  %v6181_v44 = vld [vmem:[#allocation8 + $0x6c8] ss:$24 sps:$4 sm:$0xff]   ;;  %225 = vadd.xlane.f32.xlu0 %v224_v42  ;;  %v6261_v42 = vld [vmem:[#allocation8 + $0xa4] ss:$24 sps:$4 sm:$0xff]  }
 0x120   :  { %2229 = vmatpush1.bf16.msra.mxu1 %v6151_v47  ;;  %2112 = vmatprep.subr.bf16.mxu0 %v6156_v49  ;;  %v6189_v47 = vld [vmem:[#allocation8 + $0x6fc] ss:$24 sps:$4 sm:$0xff]   ;;  %v230_v49 = vadd.f32 %v229_v40, %v218_v43  ;;  %v6253_v40 = vld [vmem:[#allocation8 + $0x40] ss:$24 sps:$4 sm:$0xff]   ;;  %v6262_v43 = vld [vmem:[#allocation8 + $0xd0] ss:$24 sps:$4 sm:$0xff]  }
 0x121   :  { %2241 = vmatprep.subr.bf16.mxu1 %v6159_v48  ;;  %v6184_v48 = vld [vmem:[#allocation8 + $0x6f0] ss:$24 sps:$4 sm:$0xff]  }
 0x122   :  { %2102 = vmatmul.mubr.bf16.vlgmr.msra.gmra.mrb[0].mxu0 %v7394_v52 }
 0x123   :  { %2231 = vmatmul.mubr.bf16.vlgmr.msra.gmra.mrb[0].mxu1 %v7394_v52  ;;  %2113 = vmatpush1.bf16.msra.mxu0 %v6154_v50  ;;  %v231_v50 = vadd.f32 %v230_v49, %v219_v46  ;;  %v6270_v46 = vld [vmem:[#allocation8 + $0x134] ss:$24 sps:$4 sm:$0xff]   ;;  %v6271_v49 = vld [vmem:[#allocation8 + $0x160] ss:$24 sps:$4 sm:$0xff]  }
 0x124   :  { %2242 = vmatpush1.bf16.msra.mxu1 %v6157_v51  ;;  %2114 = vmatprep.subr.bf16.mxu0 %v6162_v53  ;;  %v6187_v51 = vld [vmem:[#allocation8 + $0x6f8] ss:$24 sps:$4 sm:$0xff]   ;;  %v6192_v53 = vld [vmem:[#allocation8 + $0x724] ss:$24 sps:$4 sm:$0xff]  }
 0x125   :  { %2243 = vmatprep.subr.bf16.mxu1 %v6165_v60  ;;  %2144 = vmatprep.mubr.bf16.mxu0 %v7404_v28  ;;  %v6198_v60 = vld [vmem:[#allocation8 + $0x754] ss:$24 sps:$4 sm:$0xff]  }
 0x126   :  { %2273 = vmatprep.mubr.bf16.mxu1 %v7404_v28  ;;  %232 = vadd.xlane.f32.xlu0 %v231_v50  ;;  %v6274_v50 = vld [vmem:[#allocation8 + $0x190] ss:$24 sps:$4 sm:$0xff]  }
 0x127   :  { %2115 = vmatpush1.bf16.msra.mxu0 %v6160_v61  ;;  %v6201_v61 = vld [vmem:[#allocation8 + $0x75c] ss:$24 sps:$4 sm:$0xff]  }
 0x128   :  { %2244 = vmatpush1.bf16.msra.mxu1 %v6163_v0  ;;  %2116 = vmatprep.subr.bf16.mxu0 %v6168_v2  ;;  %v6196_v0 = vld [vmem:[#allocation8 + $0x750] ss:$24 sps:$4 sm:$0xff]  }
 0x129   :  { %2245 = vmatprep.subr.bf16.mxu1 %v6171_v11  ;;  %v6199_v2 = vld [vmem:[#allocation8 + $0x758] ss:$24 sps:$4 sm:$0xff]   ;;  %v6219_v11 = vld [vmem:[#allocation8 + $0x7ec] ss:$24 sps:$4 sm:$0xff]  }
 0x12b   :  { %2117 = vmatpush1.bf16.msra.mxu0 %v6166_v18  ;;  %v6223_v18 = vld [vmem:[#allocation8 + $0x818] ss:$24 sps:$4 sm:$0xff]  }
 0x12c   :  { %2246 = vmatpush1.bf16.msra.mxu1 %v6169_v23  ;;  %2118 = vmatprep.subr.bf16.mxu0 %v6174_v24  ;;  %v6229_v23 = vld [vmem:[#allocation8 + $0x848] ss:$24 sps:$4 sm:$0xff]   ;;  %v6234_v24 = vld [vmem:[#allocation8 + $0x874] ss:$24 sps:$4 sm:$0xff]  }
 0x12d   :  { %2247 = vmatprep.subr.bf16.mxu1 %v6177_v59  ;;  %v6232_v59 = vld [vmem:[#allocation8 + $0x870] ss:$24 sps:$4 sm:$0xff]  }
 0x12f   :  { %2119 = vmatpush1.bf16.msra.mxu0 %v6172_v31  ;;  %v6246_v31 = vld [vmem:[#allocation8 + $0x8d4] ss:$24 sps:$4 sm:$0xff]  }
 0x130   :  { %2248 = vmatpush1.bf16.msra.mxu1 %v6175_v34  ;;  %2120 = vmatprep.subr.bf16.mxu0 %v6180_v35  ;;  %v6244_v34 = vld [vmem:[#allocation8 + $0x8d0] ss:$24 sps:$4 sm:$0xff]  }
 0x131   :  { %2249 = vmatprep.subr.bf16.mxu1 %v6183_v37  ;;  %v6247_v35 = vld [vmem:[#allocation8 + $0x8d8] ss:$24 sps:$4 sm:$0xff]   ;;  %v7413_v37 = vpack.c.bf16 %v7406_v32, %v7400_v22  ;;  %v6264_v32 = vld [vmem:[#allocation8 + $0xd4] ss:$24 sps:$4 sm:$0xff]  }
 0x132   :  { %v6259_v22 = vld [vmem:[#allocation8 + $0xa0] ss:$24 sps:$4 sm:$0xff]  }
 0x133   :  { %2121 = vmatpush1.bf16.msra.mxu0 %v6178_v41  ;;  %v6256_v41 = vld [vmem:[#allocation8 + $0x70] ss:$24 sps:$4 sm:$0xff]  }
 0x134   :  { %2250 = vmatpush1.bf16.msra.mxu1 %v6181_v44  ;;  %2122 = vmatprep.subr.bf16.mxu0 %v6186_v45  ;;  %v6267_v44 = vld [vmem:[#allocation8 + $0x104] ss:$24 sps:$4 sm:$0xff]   ;;  %v6265_v45 = vld [vmem:[#allocation8 + $0x100] ss:$24 sps:$4 sm:$0xff]  }
 0x135   :  { %2251 = vmatprep.subr.bf16.mxu1 %v6189_v47  ;;  %v6268_v47 = vld [vmem:[#allocation8 + $0x130] ss:$24 sps:$4 sm:$0xff]  }
 0x137   :  { %2123 = vmatpush1.bf16.msra.mxu0 %v6184_v48  ;;  %v6276_v48 = vld [vmem:[#allocation8 + $0x194] ss:$24 sps:$4 sm:$0xff]  }
 0x138   :  { %2252 = vmatpush1.bf16.msra.mxu1 %v6187_v51  ;;  %2124 = vmatprep.subr.bf16.mxu0 %v6192_v53  ;;  %v6279_v51 = vld [vmem:[#allocation8 + $0x1c4] ss:$24 sps:$4 sm:$0xff]   ;;  %v6277_v53 = vld [vmem:[#allocation8 + $0x1c0] ss:$24 sps:$4 sm:$0xff]  }
 0x139   :  { %2253 = vmatprep.subr.bf16.mxu1 %v6195_v54  ;;  %v6282_v54 = vld [vmem:[#allocation8 + $0x1f4] ss:$24 sps:$4 sm:$0xff]  }
 0x13b   :  { %2125 = vmatpush1.bf16.msra.mxu0 %v6190_v55  ;;  %v6280_v55 = vld [vmem:[#allocation8 + $0x1f0] ss:$24 sps:$4 sm:$0xff]  }
 0x13c   :  { %2254 = vmatpush1.bf16.msra.mxu1 %v6193_v56  ;;  %2126 = vmatprep.subr.bf16.mxu0 %v6198_v60  ;;  %v6285_v56 = vld [vmem:[#allocation8 + $0x224] ss:$24 sps:$4 sm:$0xff]  }
 0x13d   :  { %2255 = vmatprep.subr.bf16.mxu1 %v6201_v61  ;;  %v6381_v60 = vld [vmem:[#allocation11 + $0x4] ss:$24 sps:$4 sm:$0xff]   ;;  %v6379_v61 = vld [vmem:[#allocation11] ss:$24 sps:$4 sm:$0xff]  }
 0x13f   :  { %2127 = vmatpush1.bf16.msra.mxu0 %v6196_v0  ;;  %v6283_v0 = vld [vmem:[#allocation8 + $0x220] ss:$24 sps:$4 sm:$0xff]  }
 0x140   :  { %2256 = vmatpush1.bf16.msra.mxu1 %v6199_v2  ;;  %2128 = vmatprep.subr.bf16.mxu0 %v6204_v3  ;;  %v6288_v2 = vld [vmem:[#allocation8 + $0x254] ss:$24 sps:$4 sm:$0xff]  }
 0x141   :  { %2257 = vmatprep.subr.bf16.mxu1 %v6207_v4  ;;  %v6387_v3 = vld [vmem:[#allocation11 + $0x34] ss:$24 sps:$4 sm:$0xff]   ;;  %v6385_v4 = vld [vmem:[#allocation11 + $0x30] ss:$24 sps:$4 sm:$0xff]  }
 0x143   :  { %2129 = vmatpush1.bf16.msra.mxu0 %v6202_v5  ;;  %v6286_v5 = vld [vmem:[#allocation8 + $0x250] ss:$24 sps:$4 sm:$0xff]  }
 0x144   :  { %2258 = vmatpush1.bf16.msra.mxu1 %v6205_v6  ;;  %2130 = vmatprep.subr.bf16.mxu0 %v6210_v7  ;;  %v6291_v6 = vld [vmem:[#allocation8 + $0x284] ss:$24 sps:$4 sm:$0xff]  }
 0x145   :  { %2259 = vmatprep.subr.bf16.mxu1 %v6213_v8  ;;  %v6393_v7 = vld [vmem:[#allocation11 + $0x64] ss:$24 sps:$4 sm:$0xff]   ;;  %v6391_v8 = vld [vmem:[#allocation11 + $0x60] ss:$24 sps:$4 sm:$0xff]  }
 0x147   :  { %2131 = vmatpush1.bf16.msra.mxu0 %v6208_v57  ;;  %v6289_v57 = vld [vmem:[#allocation8 + $0x280] ss:$24 sps:$4 sm:$0xff]  }
 0x148   :  { %2260 = vmatpush1.bf16.msra.mxu1 %v6211_v9  ;;  %2132 = vmatprep.subr.bf16.mxu0 %v6216_v10  ;;  %v6294_v9 = vld [vmem:[#allocation8 + $0x2b4] ss:$24 sps:$4 sm:$0xff]  }
 0x149   :  { %2261 = vmatprep.subr.bf16.mxu1 %v6219_v11  ;;  %v6399_v10 = vld [vmem:[#allocation11 + $0x94] ss:$24 sps:$4 sm:$0xff]   ;;  %v6397_v11 = vld [vmem:[#allocation11 + $0x90] ss:$24 sps:$4 sm:$0xff]  }
 0x14b   :  { %2133 = vmatpush1.bf16.msra.mxu0 %v6214_v12  ;;  %v6292_v12 = vld [vmem:[#allocation8 + $0x2b0] ss:$24 sps:$4 sm:$0xff]  }
 0x14c   :  { %2262 = vmatpush1.bf16.msra.mxu1 %v6217_v13  ;;  %2134 = vmatprep.subr.bf16.mxu0 %v6222_v16  ;;  %v6297_v13 = vld [vmem:[#allocation8 + $0x2e4] ss:$24 sps:$4 sm:$0xff]  }
 0x14d   :  { %2263 = vmatprep.subr.bf16.mxu1 %v6225_v58  ;;  %v6405_v16 = vld [vmem:[#allocation11 + $0xc4] ss:$24 sps:$4 sm:$0xff]   ;;  %v6403_v58 = vld [vmem:[#allocation11 + $0xc0] ss:$24 sps:$4 sm:$0xff]  }
 0x14f   :  { %2135 = vmatpush1.bf16.msra.mxu0 %v6220_v17  ;;  %v6295_v17 = vld [vmem:[#allocation8 + $0x2e0] ss:$24 sps:$4 sm:$0xff]  }
 0x150   :  { %2264 = vmatpush1.bf16.msra.mxu1 %v6223_v18  ;;  %2136 = vmatprep.subr.bf16.mxu0 %v6228_v19  ;;  %v6300_v18 = vld [vmem:[#allocation8 + $0x314] ss:$24 sps:$4 sm:$0xff]   ;;  %v6298_v19 = vld [vmem:[#allocation8 + $0x310] ss:$24 sps:$4 sm:$0xff]  }
 0x151   :  { %2265 = vmatprep.subr.bf16.mxu1 %v6231_v14  ;;  %v6411_v14 = vld [vmem:[#allocation11 + $0xf4] ss:$24 sps:$4 sm:$0xff]  }
 0x153   :  { %2137 = vmatpush1.bf16.msra.mxu0 %v6226_v21  ;;  %v6409_v21 = vld [vmem:[#allocation11 + $0xf0] ss:$24 sps:$4 sm:$0xff]  }
 0x154   :  { %2266 = vmatpush1.bf16.msra.mxu1 %v6229_v23  ;;  %2138 = vmatprep.subr.bf16.mxu0 %v6234_v24  ;;  %v6303_v23 = vld [vmem:[#allocation8 + $0x344] ss:$24 sps:$4 sm:$0xff]  }
 0x155   :  { %2267 = vmatprep.subr.bf16.mxu1 %v6237_v25  ;;  %v6417_v24 = vld [vmem:[#allocation11 + $0x124] ss:$24 sps:$4 sm:$0xff]   ;;  %v6415_v25 = vld [vmem:[#allocation11 + $0x120] ss:$24 sps:$4 sm:$0xff]  }
 0x157   :  { %2139 = vmatpush1.bf16.msra.mxu0 %v6232_v59  ;;  %v6301_v59 = vld [vmem:[#allocation8 + $0x340] ss:$24 sps:$4 sm:$0xff]  }
 0x158   :  { %2268 = vmatpush1.bf16.msra.mxu1 %v6235_v15  ;;  %2140 = vmatprep.subr.bf16.mxu0 %v6240_v26  ;;  %v6306_v15 = vld [vmem:[#allocation8 + $0x374] ss:$24 sps:$4 sm:$0xff]  }
 0x159   :  { %2269 = vmatprep.subr.bf16.mxu1 %v6243_v27  ;;  %v6421_v26 = vld [vmem:[#allocation11 + $0x150] ss:$24 sps:$4 sm:$0xff]   ;;  %v6423_v27 = vld [vmem:[#allocation11 + $0x154] ss:$24 sps:$4 sm:$0xff]  }
 0x15b   :  { %2141 = vmatpush1.bf16.msra.mxu0 %v6238_v63  ;;  %v6304_v63 = vld [vmem:[#allocation8 + $0x370] ss:$24 sps:$4 sm:$0xff]  }
 0x15c   :  { %2270 = vmatpush1.bf16.msra.mxu1 %v6241_v30  ;;  %2142 = vmatprep.subr.bf16.mxu0 %v6246_v31  ;;  %v6309_v30 = vld [vmem:[#allocation8 + $0x3a4] ss:$24 sps:$4 sm:$0xff]  }
 0x15d   :  { %2271 = vmatprep.subr.bf16.mxu1 %v6249_v33  ;;  %v6427_v31 = vld [vmem:[#allocation11 + $0x180] ss:$24 sps:$4 sm:$0xff]   ;;  %v6429_v33 = vld [vmem:[#allocation11 + $0x184] ss:$24 sps:$4 sm:$0xff]  }
 0x15f   :  { %2143 = vmatpush1.bf16.msra.mxu0 %v6244_v34  ;;  %v6312_v34 = vld [vmem:[#allocation8 + $0x3d4] ss:$24 sps:$4 sm:$0xff]  }
 0x160   :  { %2272 = vmatpush1.bf16.msra.mxu1 %v6247_v35  ;;  %2284 = vmatprep.subr.bf16.mxu0 %v6252_v36  ;;  %v6433_v35 = vld [vmem:[#allocation11 + $0x1b0] ss:$24 sps:$4 sm:$0xff]  }
 0x161   :  { %4241 = vmatprep.subr.bf16.mxu1 %v6381_v60  ;;  %v6310_v36 = vld [vmem:[#allocation8 + $0x3d0] ss:$24 sps:$4 sm:$0xff]   ;;  %v6325_v60 = vld [vmem:[#allocation8 + $0x4c0] ss:$24 sps:$4 sm:$0xff]  }
 0x162   :  { %2145 = vmatmul.mubr.bf16.vlgmr.msra.gmra.mrb[0].mxu0 %v7413_v37 }
 0x163   :  { %2274 = vmatmul.mubr.bf16.vlgmr.msra.gmra.mrb[0].mxu1 %v7413_v37  ;;  %2285 = vmatpush1.bf16.msra.mxu0 %v6250_v38  ;;  %v6315_v38 = vld [vmem:[#allocation8 + $0x404] ss:$24 sps:$4 sm:$0xff]  }
 0x164   :  { %2316 = vmatprep.mubr.bf16.mxu0 %v7348_v62  ;;  %2286 = vmatprep.subr.bf16.mxu0 %v6255_v39  ;;  %v6273_v62 = vld [vmem:[#allocation8 + $0x164] ss:$24 sps:$4 sm:$0xff]  }
 0x165   :  { %4242 = vmatpush1.bf16.msra.mxu1 %v6379_v61  ;;  %v6441_v39 = vld [vmem:[#allocation11 + $0x1e4] ss:$24 sps:$4 sm:$0xff]   ;;  %v6463_v61 = vld [vmem:[#allocation11 + $0x2a0] ss:$24 sps:$4 sm:$0xff]  }
 0x166   :  { %4243 = vmatprep.subr.bf16.mxu1 %v6387_v3  ;;  %v6328_v3 = vld [vmem:[#allocation8 + $0x4f0] ss:$24 sps:$4 sm:$0xff]  }
 0x167   :  { %2287 = vmatpush1.bf16.msra.mxu0 %v6253_v40  ;;  %v6313_v40 = vld [vmem:[#allocation8 + $0x400] ss:$24 sps:$4 sm:$0xff]  }
 0x168   :  { %2288 = vmatprep.subr.bf16.mxu0 %v6258_v29  ;;  %v6439_v29 = vld [vmem:[#allocation11 + $0x1e0] ss:$24 sps:$4 sm:$0xff]  }
 0x169   :  { %4244 = vmatpush1.bf16.msra.mxu1 %v6385_v4  ;;  %v6333_v4 = vld [vmem:[#allocation8 + $0x524] ss:$24 sps:$4 sm:$0xff]  }
 0x16a   :  { %4245 = vmatprep.subr.bf16.mxu1 %v6393_v7  ;;  %v6469_v7 = vld [vmem:[#allocation11 + $0x2d0] ss:$24 sps:$4 sm:$0xff]  }
 0x16b   :  { %2289 = vmatpush1.bf16.msra.mxu0 %v6256_v41  ;;  %v6318_v41 = vld [vmem:[#allocation8 + $0x434] ss:$24 sps:$4 sm:$0xff]  }
 0x16c   :  { %2290 = vmatprep.subr.bf16.mxu0 %v6261_v42  ;;  %v6316_v42 = vld [vmem:[#allocation8 + $0x430] ss:$24 sps:$4 sm:$0xff]  }
 0x16d   :  { %4246 = vmatpush1.bf16.msra.mxu1 %v6391_v8 }
 0x16e   :  { %4247 = vmatprep.subr.bf16.mxu1 %v6399_v10 }
 0x16f   :  { %2291 = vmatpush1.bf16.msra.mxu0 %v6259_v22  ;;  %v6321_v22 = vld [vmem:[#allocation8 + $0x464] ss:$24 sps:$4 sm:$0xff]  }
 0x170   :  { %2292 = vmatprep.subr.bf16.mxu0 %v6264_v32  ;;  %v6447_v32 = vld [vmem:[#allocation11 + $0x214] ss:$24 sps:$4 sm:$0xff]  }
 0x171   :  { %4248 = vmatpush1.bf16.msra.mxu1 %v6397_v11 }
 0x172   :  { %4249 = vmatprep.subr.bf16.mxu1 %v6405_v16 }
 0x173   :  { %2293 = vmatpush1.bf16.msra.mxu0 %v6262_v43  ;;  %v6445_v43 = vld [vmem:[#allocation11 + $0x210] ss:$24 sps:$4 sm:$0xff]  }
 0x174   :  { %2294 = vmatprep.subr.bf16.mxu0 %v6267_v44  ;;  %v6319_v44 = vld [vmem:[#allocation8 + $0x460] ss:$24 sps:$4 sm:$0xff]  }
 0x175   :  { %4250 = vmatpush1.bf16.msra.mxu1 %v6403_v58 }
 0x176   :  { %4251 = vmatprep.subr.bf16.mxu1 %v6411_v14 }
 0x177   :  { %2295 = vmatpush1.bf16.msra.mxu0 %v6265_v45  ;;  %v6324_v45 = vld [vmem:[#allocation8 + $0x494] ss:$24 sps:$4 sm:$0xff]  }
 0x178   :  { %2296 = vmatprep.subr.bf16.mxu0 %v6270_v46  ;;  %v6453_v46 = vld [vmem:[#allocation11 + $0x244] ss:$24 sps:$4 sm:$0xff]  }
 0x179   :  { %4252 = vmatpush1.bf16.msra.mxu1 %v6409_v21 }
 0x17a   :  { %4253 = vmatprep.subr.bf16.mxu1 %v6417_v24 }
 0x17b   :  { %2297 = vmatpush1.bf16.msra.mxu0 %v6268_v47  ;;  %v6451_v47 = vld [vmem:[#allocation11 + $0x240] ss:$24 sps:$4 sm:$0xff]  }
 0x17c   :  { %2298 = vmatprep.subr.bf16.mxu0 %v6273_v62 }
 0x17d   :  { %4254 = vmatpush1.bf16.msra.mxu1 %v6415_v25 }
 0x17e   :  { %4255 = vmatprep.subr.bf16.mxu1 %v6423_v27  ;;  %v6340_v27 = vld [vmem:[#allocation8 + $0x5b0] ss:$24 sps:$4 sm:$0xff]  }
 0x17f   :  { %2299 = vmatpush1.bf16.msra.mxu0 %v6271_v49  ;;  %v250_v49 = vlaneseq }
 0x180   :  { %2300 = vmatprep.subr.bf16.mxu0 %v6276_v48  ;;  %v6322_v48 = vld [vmem:[#allocation8 + $0x490] ss:$24 sps:$4 sm:$0xff]  }
 0x181   :  { %4256 = vmatpush1.bf16.msra.mxu1 %v6421_v26  ;;  %v6342_v26 = vld [vmem:[#allocation8 + $0x5b4] ss:$24 sps:$4 sm:$0xff]  }
 0x182   :  { %4257 = vmatprep.subr.bf16.mxu1 %v6429_v33  ;;  %v6346_v33 = vld [vmem:[#allocation8 + $0x610] ss:$24 sps:$4 sm:$0xff]  }
 0x183   :  { %2301 = vmatpush1.bf16.msra.mxu0 %v6274_v50  ;;  %v6327_v50 = vld [vmem:[#allocation8 + $0x4c4] ss:$24 sps:$4 sm:$0xff]  }
 0x184   :  { %2302 = vmatprep.subr.bf16.mxu0 %v6279_v51  ;;  %v6457_v51 = vld [vmem:[#allocation11 + $0x270] ss:$24 sps:$4 sm:$0xff]  }
 0x185   :  { %4258 = vmatpush1.bf16.msra.mxu1 %v6427_v31  ;;  %v6348_v31 = vld [vmem:[#allocation8 + $0x614] ss:$24 sps:$4 sm:$0xff]  }
 0x187   :  { %2303 = vmatpush1.bf16.msra.mxu0 %v6277_v53  ;;  %v6459_v53 = vld [vmem:[#allocation11 + $0x274] ss:$24 sps:$4 sm:$0xff]  }
 0x188   :  { %2304 = vmatprep.subr.bf16.mxu0 %v6282_v54 }
 0x18b   :  { %2305 = vmatpush1.bf16.msra.mxu0 %v6280_v55  ;;  %v7420_v55 = vshrl.u32 %v250_v49, 7  ;;  %v6367_v49 = vld [vmem:[#allocation8 + $0x760] ss:$24 sps:$4 sm:$0xff]  }
 0x18c   :  { %2306 = vmatprep.subr.bf16.mxu0 %v6285_v56  ;;  %v6465_v56 = vld [vmem:[#allocation11 + $0x2a4] ss:$24 sps:$4 sm:$0xff]  }
 0x18f   :  { %2307 = vmatpush1.bf16.msra.mxu0 %v6283_v0  ;;  %v6330_v0 = vld [vmem:[#allocation8 + $0x4f4] ss:$24 sps:$4 sm:$0xff]  }
 0x190   :  { %2308 = vmatprep.subr.bf16.mxu0 %v6288_v2  ;;  %v6471_v2 = vld [vmem:[#allocation11 + $0x2d4] ss:$24 sps:$4 sm:$0xff]  }
 0x193   :  { %2309 = vmatpush1.bf16.msra.mxu0 %v6286_v5  ;;  %v7423_v5 = vsub.s32 2, %v7420_v55 }
 0x194   :  { %2310 = vmatprep.subr.bf16.mxu0 %v6291_v6  ;;  %v7425_v6 = vld [vmem:[#allocation7] sm:$0x3f] }
 0x195   :  { %v261_v11 = vrot.slane %v7425_v6, %v7423_v5 }
 0x197   :  { %2311 = vmatpush1.bf16.msra.mxu0 %v6289_v57  ;;  %v6331_v57 = vld [vmem:[#allocation8 + $0x520] ss:$24 sps:$4 sm:$0xff]  }
 0x198   :  { %2312 = vmatprep.subr.bf16.mxu0 %v6294_v9 }
 0x19b   :  { %2313 = vmatpush1.bf16.msra.mxu0 %v6292_v12  ;;  %v6477_v12 = vld [vmem:[#allocation11 + $0x304] ss:$24 sps:$4 sm:$0xff]  }
 0x19c   :  { %2314 = vmatprep.subr.bf16.mxu0 %v6297_v13  ;;  %v6336_v13 = vld [vmem:[#allocation8 + $0x554] ss:$24 sps:$4 sm:$0xff]  }
 0x19f   :  { %2315 = vmatpush1.bf16.msra.mxu0 %v6295_v17 }
 0x1a0   :  { %2327 = vmatprep.subr.bf16.mxu0 %v6300_v18 }
 0x1a2   :  { %2317 = vmatmul.mubr.bf16.vlgmr.msra.gmra.mrb[4].mxu0 %v7358_v20  ;;  %v6307_v20 = vld [vmem:[#allocation8 + $0x3a0] ss:$24 sps:$4 sm:$0xff]  }
 0x1a3   :  { %2328 = vmatpush1.bf16.msra.mxu0 %v6298_v19  ;;  %2359 = vmatprep.mubr.bf16.mxu0 %v7380_v1  ;;  %v6435_v1 = vld [vmem:[#allocation11 + $0x1b4] ss:$24 sps:$4 sm:$0xff]  }
 0x1a4   :  { %2329 = vmatprep.subr.bf16.mxu0 %v6303_v23  ;;  %4259 = vmatprep.subr.bf16.mxu1 %v6435_v1  ;;  %v6334_v19 = vld [vmem:[#allocation8 + $0x550] ss:$24 sps:$4 sm:$0xff]   ;;  %v6339_v23 = vld [vmem:[#allocation8 + $0x584] ss:$24 sps:$4 sm:$0xff]   ;;  %v7442_v1 = vsub.s32 4, %v7420_v55 }
 0x1a5   :  { %4260 = vmatpush1.bf16.msra.mxu1 %v6433_v35  ;;  %v6354_v35 = vld [vmem:[#allocation8 + $0x674] ss:$24 sps:$4 sm:$0xff]  }
 0x1a6   :  { %4261 = vmatprep.subr.bf16.mxu1 %v6441_v39  ;;  %v269_v39 = vrot.slane %v7425_v6, %v7442_v1 }
 0x1a7   :  { %2330 = vmatpush1.bf16.msra.mxu0 %v6301_v59  ;;  %v6337_v59 = vld [vmem:[#allocation8 + $0x580] ss:$24 sps:$4 sm:$0xff]  }
 0x1a8   :  { %2331 = vmatprep.subr.bf16.mxu0 %v6306_v15 }
 0x1a9   :  { %4262 = vmatpush1.bf16.msra.mxu1 %v6439_v29 }
 0x1aa   :  { %4263 = vmatprep.subr.bf16.mxu1 %v6447_v32 }
 0x1ab   :  { %2332 = vmatpush1.bf16.msra.mxu0 %v6304_v63  ;;  %v6345_v63 = vld [vmem:[#allocation8 + $0x5e4] ss:$24 sps:$4 sm:$0xff]  }
 0x1ac   :  { %2333 = vmatprep.subr.bf16.mxu0 %v6309_v30  ;;  %v226_v62 = vpop.xlane.xlu0 %225  ;;  %v6343_v30 = vld [vmem:[#allocation8 + $0x5e0] ss:$24 sps:$4 sm:$0xff]  }
 0x1ad   :  { %4264 = vmatpush1.bf16.msra.mxu1 %v6445_v43  ;;  %6874 = vrsqrt.f32 %v226_v62  ;;  %vm236_vm0 = vcmp.eq.f32.partialorder %v226_v62, inf  ;;  %v239_v9 = vand.u32 2147483648, %v226_v62  ;;  %vm238_vm1 = vcmp.eq.f32.partialorder %v226_v62, 0.0  ;;  %v6358_v43 = vld [vmem:[#allocation8 + $0x6d0] ss:$24 sps:$4 sm:$0xff]  }
 0x1ae   :  { %4265 = vmatprep.subr.bf16.mxu1 %v6453_v46  ;;  %v6366_v46 = vld [vmem:[#allocation8 + $0x734] ss:$24 sps:$4 sm:$0xff]  }
 0x1af   :  { %2334 = vmatpush1.bf16.msra.mxu0 %v6307_v20  ;;  %v6351_v20 = vld [vmem:[#allocation8 + $0x644] ss:$24 sps:$4 sm:$0xff]  }
 0x1b0   :  { %2335 = vmatprep.subr.bf16.mxu0 %v6312_v34  ;;  %v6349_v34 = vld [vmem:[#allocation8 + $0x640] ss:$24 sps:$4 sm:$0xff]  }
 0x1b1   :  { %4266 = vmatpush1.bf16.msra.mxu1 %v6451_v47  ;;  %v6364_v47 = vld [vmem:[#allocation8 + $0x730] ss:$24 sps:$4 sm:$0xff]  }
 0x1b2   :  { %4267 = vmatprep.subr.bf16.mxu1 %v6459_v53  ;;  %v6373_v53 = vld [vmem:[#allocation8 + $0x7c0] ss:$24 sps:$4 sm:$0xff]  }
 0x1b3   :  { %2336 = vmatpush1.bf16.msra.mxu0 %v6310_v36  ;;  %v233_v54 = vpop.xlane.xlu0 %232  ;;  %v7445_v36 = vsub.s32 5, %v7420_v55 }
 0x1b4   :  { %2337 = vmatprep.subr.bf16.mxu0 %v6315_v38  ;;  %6876 = vrsqrt.f32 %v233_v54  ;;  %vm243_vm2 = vcmp.eq.f32.partialorder %v233_v54, inf  ;;  %v246_v17 = vand.u32 2147483648, %v233_v54  ;;  %vm245_vm3 = vcmp.eq.f32.partialorder %v233_v54, 0.0  ;;  %v6352_v38 = vld [vmem:[#allocation8 + $0x670] ss:$24 sps:$4 sm:$0xff]  }
 0x1b5   :  { %4268 = vmatpush1.bf16.msra.mxu1 %v6457_v51  ;;  %v6375_v51 = vld [vmem:[#allocation8 + $0x7c4] ss:$24 sps:$4 sm:$0xff]  }
 0x1b6   :  { %4269 = vmatprep.subr.bf16.mxu1 %v6465_v56  ;;  %v6376_v56 = vld [vmem:[#allocation8 + $0x7f0] ss:$24 sps:$4 sm:$0xff]  }
 0x1b7   :  { %2338 = vmatpush1.bf16.msra.mxu0 %v6313_v40  ;;  %v6875_v8 = vpop.eup %6874  ;;  %v273_v40 = vrot.slane %v7425_v6, %v7445_v36 }
 0x1b8   :  { %2339 = vmatprep.subr.bf16.mxu0 %v6318_v41  ;;  %v235_v10 = vmul.f32 %v6875_v8, %v226_v62  ;;  %v6355_v41 = vld [vmem:[#allocation8 + $0x6a0] ss:$24 sps:$4 sm:$0xff]   ;;  %v6400_v8 = vld [vmem:[#allocation8 + $0x8b0] ss:$24 sps:$4 sm:$0xff]  }
 0x1b9   :  { %4270 = vmatpush1.bf16.msra.mxu1 %v6463_v61  ;;  %v6382_v61 = vld [vmem:[#allocation8 + $0x820] ss:$24 sps:$4 sm:$0xff]  }
 0x1ba   :  { %4271 = vmatprep.subr.bf16.mxu1 %v6471_v2  ;;  %v237_v16 = vsel %vm236_vm0, %v226_v62, %v235_v10  ;;  %v6369_v62 = vld [vmem:[#allocation8 + $0x764] ss:$24 sps:$4 sm:$0xff]   ;;  %v6388_v2 = vld [vmem:[#allocation8 + $0x850] ss:$24 sps:$4 sm:$0xff]  }
 0x1bb   :  { %2340 = vmatpush1.bf16.msra.mxu0 %v6316_v42  ;;  %v7429_v18 = vsel %vm238_vm1, %v239_v9, %v237_v16  ;;  %v6360_v42 = vld [vmem:[#allocation8 + $0x6d4] ss:$24 sps:$4 sm:$0xff]   ;;  %v6406_v9 = vld [vmem:[#allocation8 + $0x8e0] ss:$24 sps:$4 sm:$0xff]  }
 0x1bc   :  { %2341 = vmatprep.subr.bf16.mxu0 %v6321_v22  ;;  %v7432_v21 = vmul.f32 %v261_v11, %v7429_v18  ;;  %v7452_v29 = vmul.f32 %v269_v39, %v7429_v18  ;;  %v6414_v10 = vld [vmem:[#allocation11 + $0xc] ss:$24 sps:$4 sm:$0xff]  }
 0x1bd   :  { %4272 = vmatpush1.bf16.msra.mxu1 %v6469_v7  ;;  %v6402_v7 = vld [vmem:[#allocation8 + $0x8b4] ss:$24 sps:$4 sm:$0xff]  }
 0x1be   :  { %v6877_v58 = vpop.eup %6876  ;;  %4284 = vmatprep.subr.bf16.mxu1 %v6477_v12  ;;  %v6420_v12 = vld [vmem:[#allocation11 + $0x3c] ss:$24 sps:$4 sm:$0xff]   ;;  %v6426_v16 = vld [vmem:[#allocation11 + $0x6c] ss:$24 sps:$4 sm:$0xff]  }
 0x1bf   :  { %2342 = vmatpush1.bf16.msra.mxu0 %v6319_v44  ;;  %v242_v14 = vmul.f32 %v6877_v58, %v233_v54  ;;  %v6363_v44 = vld [vmem:[#allocation8 + $0x704] ss:$24 sps:$4 sm:$0xff]  }
 0x1c0   :  { %2343 = vmatprep.subr.bf16.mxu0 %v6324_v45  ;;  %v6361_v45 = vld [vmem:[#allocation8 + $0x700] ss:$24 sps:$4 sm:$0xff]   ;;  %v6424_v58 = vld [vmem:[#allocation11 + $0x68] ss:$24 sps:$4 sm:$0xff]  }
 0x1c1   :  { %v244_v24 = vsel %vm243_vm2, %v233_v54, %v242_v14  ;;  %v6378_v54 = vld [vmem:[#allocation8 + $0x7f4] ss:$24 sps:$4 sm:$0xff]  }
 0x1c2   :  { %v7434_v25 = vsel %vm245_vm3, %v246_v17, %v244_v24  ;;  %v6432_v17 = vld [vmem:[#allocation11 + $0x9c] ss:$24 sps:$4 sm:$0xff]   ;;  %v6430_v14 = vld [vmem:[#allocation11 + $0x98] ss:$24 sps:$4 sm:$0xff]   ;;  %v7471_v24 = vsub.s32 3, %v7420_v55 }
 0x1c3   :  { %2344 = vmatpush1.bf16.msra.mxu0 %v6322_v48  ;;  %v7437_v15 = vmul.f32 %v261_v11, %v7434_v25  ;;  %v7458_v22 = vmul.f32 %v269_v39, %v7434_v25  ;;  %v7461_v32 = vmul.f32 %v273_v40, %v7434_v25  ;;  %v6372_v48 = vld [vmem:[#allocation8 + $0x794] ss:$24 sps:$4 sm:$0xff]  }
 0x1c4   :  { %2345 = vmatprep.subr.bf16.mxu0 %v6327_v50  ;;  %v6370_v50 = vld [vmem:[#allocation8 + $0x790] ss:$24 sps:$4 sm:$0xff]  }
 0x1c5   :  { %v6412_v11 = vld [vmem:[#allocation11 + $0x8] ss:$24 sps:$4 sm:$0xff]   ;;  %v6450_v39 = vld [vmem:[#allocation11 + $0x12c] ss:$24 sps:$4 sm:$0xff]  }
 0x1c7   :  { %2346 = vmatpush1.bf16.msra.mxu0 %v6325_v60  ;;  %v6384_v60 = vld [vmem:[#allocation8 + $0x824] ss:$24 sps:$4 sm:$0xff]  }
 0x1c8   :  { %2347 = vmatprep.subr.bf16.mxu0 %v6330_v0  ;;  %v6390_v0 = vld [vmem:[#allocation8 + $0x854] ss:$24 sps:$4 sm:$0xff]  }
 0x1cb   :  { %2348 = vmatpush1.bf16.msra.mxu0 %v6328_v3  ;;  %v6396_v3 = vld [vmem:[#allocation8 + $0x884] ss:$24 sps:$4 sm:$0xff]  }
 0x1cc   :  { %2349 = vmatprep.subr.bf16.mxu0 %v6333_v4  ;;  %v6394_v4 = vld [vmem:[#allocation8 + $0x880] ss:$24 sps:$4 sm:$0xff]  }
 0x1cf   :  { %2350 = vmatpush1.bf16.msra.mxu0 %v6331_v57  ;;  %v6408_v57 = vld [vmem:[#allocation8 + $0x8e4] ss:$24 sps:$4 sm:$0xff]  }
 0x1d0   :  { %2351 = vmatprep.subr.bf16.mxu0 %v6336_v13  ;;  %v6418_v13 = vld [vmem:[#allocation11 + $0x38] ss:$24 sps:$4 sm:$0xff]  }
 0x1d3   :  { %2352 = vmatpush1.bf16.msra.mxu0 %v6334_v19  ;;  %v7465_v19 = vsub.s32 0, %v7420_v55 }
 0x1d4   :  { %2353 = vmatprep.subr.bf16.mxu0 %v6339_v23  ;;  %v7468_v23 = vsub.s32 1, %v7420_v55 }
 0x1d7   :  { %2354 = vmatpush1.bf16.msra.mxu0 %v6337_v59  ;;  %v253_v59 = vrot.slane %v7425_v6, %v7465_v19 }
 0x1d8   :  { %2355 = vmatprep.subr.bf16.mxu0 %v6342_v26  ;;  %v6436_v26 = vld [vmem:[#allocation11 + $0xc8] ss:$24 sps:$4 sm:$0xff]  }
 0x1d9   :  { %v280_v55 = vmul.f32 %v253_v59, %v7429_v18 }
 0x1db   :  { %2356 = vmatpush1.bf16.msra.mxu0 %v6340_v27  ;;  %v257_v27 = vrot.slane %v7425_v6, %v7468_v23 }
 0x1dc   :  { %2357 = vmatprep.subr.bf16.mxu0 %v6345_v63  ;;  %v265_v63 = vrot.slane %v7425_v6, %v7471_v24 }
 0x1df   :  { %2358 = vmatpush1.bf16.msra.mxu0 %v6343_v30  ;;  %v6444_v30 = vld [vmem:[#allocation11 + $0xfc] ss:$24 sps:$4 sm:$0xff]  }
 0x1e0   :  { %2370 = vmatprep.subr.bf16.mxu0 %v6348_v31  ;;  %v7479_v31 = vld [vmem:[#allocation10] sm:$0x3f] }
 0x1e2   :  { %2360 = vmatmul.mubr.bf16.vlgmr.msra.gmra.mrb[4].mxu0 %v7394_v52  ;;  %v6357_v52 = vld [vmem:[#allocation8 + $0x6a4] ss:$24 sps:$4 sm:$0xff]  }
 0x1e3   :  { %2371 = vmatpush1.bf16.msra.mxu0 %v6346_v33  ;;  %2402 = vmatprep.mubr.bf16.mxu0 %v7404_v28  ;;  %v7455_v28 = vmul.f32 %v273_v40, %v7429_v18  ;;  %v281_v33 = vmul.f32 %v257_v27, %v7429_v18 }
 0x1e4   :  { %2372 = vmatprep.subr.bf16.mxu0 %v6351_v20  ;;  %v283_v20 = vmul.f32 %v265_v63, %v7429_v18 }
 0x1e7   :  { %2373 = vmatpush1.bf16.msra.mxu0 %v6349_v34  ;;  %v6442_v34 = vld [vmem:[#allocation11 + $0xf8] ss:$24 sps:$4 sm:$0xff]  }
 0x1e8   :  { %2374 = vmatprep.subr.bf16.mxu0 %v6354_v35  ;;  %v2438_v35 = vrot.slane %v7479_v31, %v7423_v5 }
 0x1eb   :  { %2375 = vmatpush1.bf16.msra.mxu0 %v6352_v38  ;;  %v286_v38 = vmul.f32 %v253_v59, %v7434_v25  ;;  %v6472_v59 = vld [vmem:[#allocation11 + $0x1e8] ss:$24 sps:$4 sm:$0xff]  }
 0x1ec   :  { %2376 = vmatprep.subr.bf16.mxu0 %v6357_v52  ;;  %v287_v52 = vmul.f32 %v257_v27, %v7434_v25  ;;  %v6475_v27 = vld [vmem:[#allocation11 + $0x300] ss:$24 sps:$4 sm:$0xff]  }
 0x1ef   :  { %2377 = vmatpush1.bf16.msra.mxu0 %v6355_v41  ;;  %v289_v41 = vmul.f32 %v265_v63, %v7434_v25  ;;  %v6448_v25 = vld [vmem:[#allocation11 + $0x128] ss:$24 sps:$4 sm:$0xff]  }
 0x1f0   :  { %2378 = vmatprep.subr.bf16.mxu0 %v6360_v42 }
 0x1f3   :  { %2379 = vmatpush1.bf16.msra.mxu0 %v6358_v43  ;;  %v2430_v43 = vrot.slane %v7479_v31, %v7465_v19 }
 0x1f4   :  { %2380 = vmatprep.subr.bf16.mxu0 %v6363_v44 }
 0x1f7   :  { %2381 = vmatpush1.bf16.msra.mxu0 %v6361_v45 }
 0x1f8   :  { %2382 = vmatprep.subr.bf16.mxu0 %v6366_v46 }
 0x1fb   :  { %2383 = vmatpush1.bf16.msra.mxu0 %v6364_v47  ;;  %v2434_v47 = vrot.slane %v7479_v31, %v7468_v23 }
 0x1fc   :  { %2384 = vmatprep.subr.bf16.mxu0 %v6369_v62 }
 0x1ff   :  { %2385 = vmatpush1.bf16.msra.mxu0 %v6367_v49  ;;  %v2442_v49 = vrot.slane %v7479_v31, %v7471_v24 }
 0x200   :  { %2386 = vmatprep.subr.bf16.mxu0 %v6372_v48 }
 0x203   :  { %2387 = vmatpush1.bf16.msra.mxu0 %v6370_v50 }
 0x204   :  { %2388 = vmatprep.subr.bf16.mxu0 %v6375_v51 }
 0x207   :  { %2389 = vmatpush1.bf16.msra.mxu0 %v6373_v53 }
 0x208   :  { %2390 = vmatprep.subr.bf16.mxu0 %v6378_v54 }
 0x20b   :  { %2391 = vmatpush1.bf16.msra.mxu0 %v6376_v56 }
 0x20c   :  { %2392 = vmatprep.subr.bf16.mxu0 %v6384_v60  ;;  %v6456_v60 = vld [vmem:[#allocation11 + $0x15c] ss:$24 sps:$4 sm:$0xff]  }
 0x20f   :  { %2393 = vmatpush1.bf16.msra.mxu0 %v6382_v61 }
 0x210   :  { %2394 = vmatprep.subr.bf16.mxu0 %v6390_v0 }
 0x213   :  { %2395 = vmatpush1.bf16.msra.mxu0 %v6388_v2 }
 0x214   :  { %2396 = vmatprep.subr.bf16.mxu0 %v6396_v3 }
 0x217   :  { %2397 = vmatpush1.bf16.msra.mxu0 %v6394_v4 }
 0x218   :  { %2398 = vmatprep.subr.bf16.mxu0 %v6402_v7 }
 0x21b   :  { %2399 = vmatpush1.bf16.msra.mxu0 %v6400_v8 }
 0x21c   :  { %2400 = vmatprep.subr.bf16.mxu0 %v6408_v57 }
 0x21f   :  { %2401 = vmatpush1.bf16.msra.mxu0 %v6406_v9 }
 0x220   :  { %4370 = vmatprep.subr.bf16.mxu0 %v6414_v10  ;;  %v6454_v10 = vld [vmem:[#allocation11 + $0x158] ss:$24 sps:$4 sm:$0xff]  }
 0x222   :  { %2403 = vmatmul.mubr.bf16.vlgmr.msra.gmra.mrb[4].mxu0 %v7413_v37  ;;  %v6438_v37 = vld [vmem:[#allocation11 + $0xcc] ss:$24 sps:$4 sm:$0xff]  }
 0x223   :  { %4371 = vmatpush1.bf16.msra.mxu0 %v6412_v11 }
 0x224   :  { %4372 = vmatprep.subr.bf16.mxu0 %v6420_v12  ;;  %v6462_v12 = vld [vmem:[#allocation11 + $0x18c] ss:$24 sps:$4 sm:$0xff]  }
 0x227   :  { %4373 = vmatpush1.bf16.msra.mxu0 %v6418_v13 }
 0x228   :  { %4374 = vmatprep.subr.bf16.mxu0 %v6426_v16 }
 0x22b   :  { %4375 = vmatpush1.bf16.msra.mxu0 %v6424_v58  ;;  %v6460_v58 = vld [vmem:[#allocation11 + $0x188] ss:$24 sps:$4 sm:$0xff]  }
 0x22c   :  { %4376 = vmatprep.subr.bf16.mxu0 %v6432_v17  ;;  %v6468_v17 = vld [vmem:[#allocation11 + $0x1bc] ss:$24 sps:$4 sm:$0xff]  }
 0x22f   :  { %4377 = vmatpush1.bf16.msra.mxu0 %v6430_v14  ;;  %v6466_v14 = vld [vmem:[#allocation11 + $0x1b8] ss:$24 sps:$4 sm:$0xff]  }
 0x230   :  { %4378 = vmatprep.subr.bf16.mxu0 %v6438_v37  ;;  %v6474_v37 = vld [vmem:[#allocation11 + $0x1ec] ss:$24 sps:$4 sm:$0xff]  }
 0x233   :  { %4379 = vmatpush1.bf16.msra.mxu0 %v6436_v26  ;;  %v6480_v26 = vld [vmem:[#allocation11 + $0x21c] ss:$24 sps:$4 sm:$0xff]  }
 0x234   :  { %4380 = vmatprep.subr.bf16.mxu0 %v6444_v30  ;;  %v6478_v30 = vld [vmem:[#allocation11 + $0x218] ss:$24 sps:$4 sm:$0xff]  }
 0x235   :  { %v2146_v6 = vpop.f32.mrb[0].mxu0 }
 0x236   :  { %v2275_v40 = vpop.f32.mrb[0].mxu1  ;;  %v2413_v42 = vadd.f32 %v2146_v6, %v280_v55  ;;  %v2148_v44 = vpop.f32.mrb[1].mxu0  ;;  %v6483_v55 = vld [vmem:[#allocation11 + $0x334] ss:$24 sps:$4 sm:$0xff]  }
 0x237   :  { %v2415_v18 = vadd.f32 %v2275_v40, %v7432_v21  ;;  %v2277_v45 = vpop.f32.mrb[1].mxu1  ;;  %v2414_v46 = vadd.f32 %v2148_v44, %v281_v33  ;;  %v2150_v48 = vpop.f32.mrb[2].mxu0  ;;  %4381 = vmatpush1.bf16.msra.mxu0 %v6442_v34  ;;  %v6492_v6 = vld [vmem:[#allocation11 + $0x27c] ss:$24 sps:$4 sm:$0xff]   ;;  %v6487_v40 = vld [vmem:[#allocation11 + $0x360] ss:$24 sps:$4 sm:$0xff]  }
 0x238   :  { %v2416_v62 = vadd.f32 %v2277_v45, %v283_v20  ;;  %v2279_v50 = vpop.f32.mrb[2].mxu1  ;;  %v2419_v53 = vadd.f32 %v2150_v48, %v286_v38  ;;  %v2152_v21 = vpop.f32.mrb[3].mxu0  ;;  %4382 = vmatprep.subr.bf16.mxu0 %v6450_v39  ;;  %v2457_v2 = vadd.f32 %v2430_v43, %v2413_v42  ;;  %v6486_v20 = vld [vmem:[#allocation11 + $0x24c] ss:$24 sps:$4 sm:$0xff]   ;;  %v6484_v38 = vld [vmem:[#allocation11 + $0x248] ss:$24 sps:$4 sm:$0xff]  }
 0x239   :  { %v7496_v51 = vadd.f32 %v2438_v35, %v2415_v18  ;;  %v2421_v54 = vadd.f32 %v2279_v50, %v7437_v15  ;;  %v2281_v56 = vpop.f32.mrb[3].mxu1  ;;  %v2420_v61 = vadd.f32 %v2152_v21, %v287_v52  ;;  %v2458_v7 = vadd.f32 %v2434_v47, %v2414_v46  ;;  %v6489_v39 = vld [vmem:[#allocation11 + $0x364] ss:$24 sps:$4 sm:$0xff]   ;;  %v6490_v52 = vld [vmem:[#allocation11 + $0x278] ss:$24 sps:$4 sm:$0xff]  }
 0x23a   :  { %v2422_v0 = vadd.f32 %v2281_v56, %v289_v41  ;;  %v2463_v3 = vadd.f32 %v2430_v43, %v2419_v53  ;;  %v2460_v8 = vadd.f32 %v2442_v49, %v2416_v62  ;;  %v6495_v41 = vld [vmem:[#allocation11 + $0x394] ss:$24 sps:$4 sm:$0xff]   ;;  %v6493_v43 = vld [vmem:[#allocation11 + $0x390] ss:$24 sps:$4 sm:$0xff]   ;;  %v6501_v44 = vld [vmem:[#allocation11 + $0x3c4] ss:$24 sps:$4 sm:$0xff]  }
 0x23b   :  { %v7499_v4 = vadd.f32 %v2438_v35, %v2421_v54  ;;  %v2464_v57 = vadd.f32 %v2434_v47, %v2420_v61  ;;  %4383 = vmatpush1.bf16.msra.mxu0 %v6448_v25  ;;  %v6481_v35 = vld [vmem:[#allocation11 + $0x330] ss:$24 sps:$4 sm:$0xff]   ;;  %v6498_v42 = vld [vmem:[#allocation11 + $0x2ac] ss:$24 sps:$4 sm:$0xff]   ;;  %v6504_v45 = vld [vmem:[#allocation11 + $0x2dc] ss:$24 sps:$4 sm:$0xff]  }
 0x23c   :  { %v2466_v9 = vadd.f32 %v2442_v49, %v2422_v0  ;;  %v2469_v11 = vpack.c.bf16 %v2463_v3, %v2457_v2  ;;  %4384 = vmatprep.subr.bf16.mxu0 %v6456_v60  ;;  %v6496_v18 = vld [vmem:[#allocation11 + $0x2a8] ss:$24 sps:$4 sm:$0xff]   ;;  %v6502_v47 = vld [vmem:[#allocation11 + $0x2d8] ss:$24 sps:$4 sm:$0xff]   ;;  %v6507_v62 = vld [vmem:[#allocation11 + $0x3f4] ss:$24 sps:$4 sm:$0xff]  }
 0x23d   :  { %v2471_v15 = vpack.c.bf16 %v7499_v4, %v7496_v51  ;;  %v2470_v13 = vpack.c.bf16 %v2464_v57, %v2458_v7  ;;  %v6499_v46 = vld [vmem:[#allocation11 + $0x3c0] ss:$24 sps:$4 sm:$0xff]   ;;  %v6510_v49 = vld [vmem:[#allocation11 + $0x30c] ss:$24 sps:$4 sm:$0xff]   ;;  %v6505_v48 = vld [vmem:[#allocation11 + $0x3f0] ss:$24 sps:$4 sm:$0xff]  }
 0x23e   :  { %v2472_v16 = vpack.c.bf16 %v2466_v9, %v2460_v8  ;;  %v6508_v50 = vld [vmem:[#allocation11 + $0x308] ss:$24 sps:$4 sm:$0xff]   ;;  %v6513_v25 = vld [vmem:[#allocation11 + $0x424] ss:$24 sps:$4 sm:$0xff]   ;;  %v6514_v21 = vld [vmem:[#allocation11 + $0x338] ss:$24 sps:$4 sm:$0xff]  }
 0x23f   :  { %4385 = vmatpush1.bf16.msra.mxu0 %v6454_v10  ;;  %6878 = vtanh.bf16 %v2470_v13  ;;  %v6516_v53 = vld [vmem:[#allocation11 + $0x33c] ss:$24 sps:$4 sm:$0xff]   ;;  %v6511_v54 = vld [vmem:[#allocation11 + $0x420] ss:$24 sps:$4 sm:$0xff]   ;;  %v6522_v60 = vld [vmem:[#allocation11 + $0x36c] ss:$24 sps:$4 sm:$0xff]  }
 0x240   :  { %4386 = vmatprep.subr.bf16.mxu0 %v6462_v12  ;;  %6880 = vtanh.bf16 %v2469_v11  ;;  %v6519_v56 = vld [vmem:[#allocation11 + $0x454] ss:$24 sps:$4 sm:$0xff]   ;;  %v6517_v61 = vld [vmem:[#allocation11 + $0x450] ss:$24 sps:$4 sm:$0xff]   ;;  %v6525_v2 = vld [vmem:[#allocation11 + $0x484] ss:$24 sps:$4 sm:$0xff]  }
 0x241   :  { %6882 = vtanh.bf16 %v2472_v16  ;;  %v6520_v0 = vld [vmem:[#allocation11 + $0x368] ss:$24 sps:$4 sm:$0xff]   ;;  %v6528_v3 = vld [vmem:[#allocation11 + $0x39c] ss:$24 sps:$4 sm:$0xff]   ;;  %v6526_v8 = vld [vmem:[#allocation11 + $0x398] ss:$24 sps:$4 sm:$0xff]  }
 0x242   :  { %v6523_v7 = vld [vmem:[#allocation11 + $0x480] ss:$24 sps:$4 sm:$0xff]   ;;  %v6531_v57 = vld [vmem:[#allocation11 + $0x4b4] ss:$24 sps:$4 sm:$0xff]   ;;  %v6529_v10 = vld [vmem:[#allocation11 + $0x4b0] ss:$24 sps:$4 sm:$0xff]   ;;  %6884 = vtanh.bf16 %v2471_v15 }
 0x243   :  { %4387 = vmatpush1.bf16.msra.mxu0 %v6460_v58  ;;  %v6534_v9 = vld [vmem:[#allocation11 + $0x3cc] ss:$24 sps:$4 sm:$0xff]   ;;  %v6532_v11 = vld [vmem:[#allocation11 + $0x3c8] ss:$24 sps:$4 sm:$0xff]   ;;  %v6540_v13 = vld [vmem:[#allocation11 + $0x3fc] ss:$24 sps:$4 sm:$0xff]  }
 0x244   :  { %4388 = vmatprep.subr.bf16.mxu0 %v6468_v17  ;;  %v6537_v12 = vld [vmem:[#allocation11 + $0x4e4] ss:$24 sps:$4 sm:$0xff]   ;;  %v6535_v16 = vld [vmem:[#allocation11 + $0x4e0] ss:$24 sps:$4 sm:$0xff]   ;;  %v6543_v17 = vld [vmem:[#allocation11 + $0x514] ss:$24 sps:$4 sm:$0xff]  }
 0x245   :  { %v6538_v58 = vld [vmem:[#allocation11 + $0x3f8] ss:$24 sps:$4 sm:$0xff]   ;;  %v6594_v4 = vld [vmem:[#allocation11 + $0x634] ss:$24 sps:$4 sm:$0xff]  }
 0x246   :  { %v6571_v51 = vld [vmem:[#allocation11 + $0x518] ss:$24 sps:$4 sm:$0xff]  }
 0x247   :  { %4389 = vmatpush1.bf16.msra.mxu0 %v6466_v14  ;;  %v6546_v14 = vld [vmem:[#allocation11 + $0x42c] ss:$24 sps:$4 sm:$0xff]  }
 0x248   :  { %4390 = vmatprep.subr.bf16.mxu0 %v6474_v37  ;;  %v6541_v37 = vld [vmem:[#allocation11 + $0x510] ss:$24 sps:$4 sm:$0xff]  }
 0x24a   :  { %v7503_v63 = vpop.eup %6878 }
 0x24b   :  { %4391 = vmatpush1.bf16.msra.mxu0 %v6472_v59  ;;  %v7505_v33 = vpop.eup %6880  ;;  %4273 = vmatprep.mubr.bf16.mxu1 %v7503_v63  ;;  %v6544_v59 = vld [vmem:[#allocation11 + $0x428] ss:$24 sps:$4 sm:$0xff]  }
 0x24c   :  { %4402 = vmatprep.mubr.bf16.mxu0 %v7503_v63  ;;  %v7509_v34 = vpop.eup %6882  ;;  %4274 = vmatmul.mubr.bf16.vlgmr.msra.gmra.mrb[4].mxu1 %v7505_v33 }
 0x24d   :  { %4392 = vmatprep.subr.bf16.mxu0 %v6480_v26  ;;  %4285 = vmatpush1.bf16.msra.mxu1 %v6475_v27  ;;  %v6549_v26 = vld [vmem:[#allocation11 + $0x544] ss:$24 sps:$4 sm:$0xff]   ;;  %v7518_v15 = vpop.eup %6884 }
 0x24e   :  { %4316 = vmatprep.mubr.bf16.mxu1 %v7509_v34  ;;  %4286 = vmatprep.subr.bf16.mxu1 %v6483_v55  ;;  %v6552_v27 = vld [vmem:[#allocation11 + $0x45c] ss:$24 sps:$4 sm:$0xff]   ;;  %v6550_v55 = vld [vmem:[#allocation11 + $0x458] ss:$24 sps:$4 sm:$0xff]  }
 0x24f   :  { %4393 = vmatpush1.bf16.msra.mxu0 %v6478_v30  ;;  %v6547_v30 = vld [vmem:[#allocation11 + $0x540] ss:$24 sps:$4 sm:$0xff]  }
 0x250   :  { %4394 = vmatprep.subr.bf16.mxu0 %v6486_v20  ;;  %v6555_v20 = vld [vmem:[#allocation11 + $0x574] ss:$24 sps:$4 sm:$0xff]  }
 0x251   :  { %4287 = vmatpush1.bf16.msra.mxu1 %v6481_v35  ;;  %v6558_v35 = vld [vmem:[#allocation11 + $0x48c] ss:$24 sps:$4 sm:$0xff]  }
 0x252   :  { %4288 = vmatprep.subr.bf16.mxu1 %v6489_v39  ;;  %v6556_v39 = vld [vmem:[#allocation11 + $0x488] ss:$24 sps:$4 sm:$0xff]  }
 0x253   :  { %4395 = vmatpush1.bf16.msra.mxu0 %v6484_v38  ;;  %v6553_v38 = vld [vmem:[#allocation11 + $0x570] ss:$24 sps:$4 sm:$0xff]  }
 0x254   :  { %4396 = vmatprep.subr.bf16.mxu0 %v6492_v6  ;;  %v6561_v6 = vld [vmem:[#allocation11 + $0x5a4] ss:$24 sps:$4 sm:$0xff]  }
 0x255   :  { %4289 = vmatpush1.bf16.msra.mxu1 %v6487_v40  ;;  %v6564_v40 = vld [vmem:[#allocation11 + $0x4bc] ss:$24 sps:$4 sm:$0xff]  }
 0x256   :  { %4290 = vmatprep.subr.bf16.mxu1 %v6495_v41  ;;  %v6562_v41 = vld [vmem:[#allocation11 + $0x4b8] ss:$24 sps:$4 sm:$0xff]  }
 0x257   :  { %4397 = vmatpush1.bf16.msra.mxu0 %v6490_v52  ;;  %v6559_v52 = vld [vmem:[#allocation11 + $0x5a0] ss:$24 sps:$4 sm:$0xff]  }
 0x258   :  { %4398 = vmatprep.subr.bf16.mxu0 %v6498_v42  ;;  %v6567_v42 = vld [vmem:[#allocation11 + $0x5d4] ss:$24 sps:$4 sm:$0xff]  }
 0x259   :  { %4291 = vmatpush1.bf16.msra.mxu1 %v6493_v43  ;;  %v6570_v43 = vld [vmem:[#allocation11 + $0x4ec] ss:$24 sps:$4 sm:$0xff]  }
 0x25a   :  { %4292 = vmatprep.subr.bf16.mxu1 %v6501_v44  ;;  %v6568_v44 = vld [vmem:[#allocation11 + $0x4e8] ss:$24 sps:$4 sm:$0xff]  }
 0x25b   :  { %4399 = vmatpush1.bf16.msra.mxu0 %v6496_v18  ;;  %v6565_v18 = vld [vmem:[#allocation11 + $0x5d0] ss:$24 sps:$4 sm:$0xff]  }
 0x25c   :  { %4400 = vmatprep.subr.bf16.mxu0 %v6504_v45  ;;  %v6588_v45 = vld [vmem:[#allocation11 + $0x604] ss:$24 sps:$4 sm:$0xff]  }
 0x25d   :  { %4293 = vmatpush1.bf16.msra.mxu1 %v6499_v46  ;;  %v6573_v46 = vld [vmem:[#allocation11 + $0x51c] ss:$24 sps:$4 sm:$0xff]  }
 0x25e   :  { %4294 = vmatprep.subr.bf16.mxu1 %v6507_v62  ;;  %v6576_v62 = vld [vmem:[#allocation11 + $0x54c] ss:$24 sps:$4 sm:$0xff]  }
 0x25f   :  { %4401 = vmatpush1.bf16.msra.mxu0 %v6502_v47  ;;  %v6586_v47 = vld [vmem:[#allocation11 + $0x600] ss:$24 sps:$4 sm:$0xff]  }
 0x260   :  { %4413 = vmatprep.subr.bf16.mxu0 %v6510_v49  ;;  %v6592_v49 = vld [vmem:[#allocation11 + $0x630] ss:$24 sps:$4 sm:$0xff]  }
 0x261   :  { %4295 = vmatpush1.bf16.msra.mxu1 %v6505_v48  ;;  %v6574_v48 = vld [vmem:[#allocation11 + $0x548] ss:$24 sps:$4 sm:$0xff]  }
 0x262   :  { %4403 = vmatmul.mubr.bf16.vlgmr.msra.gmra.mrb[8].mxu0 %v7505_v33  ;;  %4296 = vmatprep.subr.bf16.mxu1 %v6513_v25  ;;  %v6579_v25 = vld [vmem:[#allocation11 + $0x57c] ss:$24 sps:$4 sm:$0xff]  }
 0x263   :  { %4414 = vmatpush1.bf16.msra.mxu0 %v6508_v50  ;;  %4445 = vmatprep.mubr.bf16.mxu0 %v7509_v34  ;;  %v6600_v50 = vld [vmem:[#allocation11 + $0x664] ss:$24 sps:$4 sm:$0xff]  }
 0x264   :  { %4415 = vmatprep.subr.bf16.mxu0 %v6516_v53  ;;  %v6598_v53 = vld [vmem:[#allocation11 + $0x660] ss:$24 sps:$4 sm:$0xff]  }
 0x265   :  { %4297 = vmatpush1.bf16.msra.mxu1 %v6511_v54  ;;  %v6577_v54 = vld [vmem:[#allocation11 + $0x578] ss:$24 sps:$4 sm:$0xff]  }
 0x266   :  { %4298 = vmatprep.subr.bf16.mxu1 %v6519_v56  ;;  %v6582_v56 = vld [vmem:[#allocation11 + $0x5ac] ss:$24 sps:$4 sm:$0xff]  }
 0x267   :  { %4416 = vmatpush1.bf16.msra.mxu0 %v6514_v21  ;;  %v6606_v21 = vld [vmem:[#allocation11 + $0x694] ss:$24 sps:$4 sm:$0xff]  }
 0x268   :  { %4417 = vmatprep.subr.bf16.mxu0 %v6522_v60  ;;  %v6604_v60 = vld [vmem:[#allocation11 + $0x690] ss:$24 sps:$4 sm:$0xff]  }
 0x269   :  { %4299 = vmatpush1.bf16.msra.mxu1 %v6517_v61  ;;  %v6580_v61 = vld [vmem:[#allocation11 + $0x5a8] ss:$24 sps:$4 sm:$0xff]  }
 0x26a   :  { %4300 = vmatprep.subr.bf16.mxu1 %v6525_v2  ;;  %v6585_v2 = vld [vmem:[#allocation11 + $0x5dc] ss:$24 sps:$4 sm:$0xff]  }
 0x26b   :  { %4418 = vmatpush1.bf16.msra.mxu0 %v6520_v0  ;;  %v6612_v0 = vld [vmem:[#allocation11 + $0x6c4] ss:$24 sps:$4 sm:$0xff]  }
 0x26c   :  { %4419 = vmatprep.subr.bf16.mxu0 %v6528_v3  ;;  %v6610_v3 = vld [vmem:[#allocation11 + $0x6c0] ss:$24 sps:$4 sm:$0xff]  }
 0x26d   :  { %4301 = vmatpush1.bf16.msra.mxu1 %v6523_v7  ;;  %v6583_v7 = vld [vmem:[#allocation11 + $0x5d8] ss:$24 sps:$4 sm:$0xff]  }
 0x26e   :  { %4302 = vmatprep.subr.bf16.mxu1 %v6531_v57  ;;  %v6591_v57 = vld [vmem:[#allocation11 + $0x60c] ss:$24 sps:$4 sm:$0xff]  }
 0x26f   :  { %4420 = vmatpush1.bf16.msra.mxu0 %v6526_v8  ;;  %v6618_v8 = vld [vmem:[#allocation11 + $0x6f4] ss:$24 sps:$4 sm:$0xff]  }
 0x270   :  { %4421 = vmatprep.subr.bf16.mxu0 %v6534_v9  ;;  %v6616_v9 = vld [vmem:[#allocation11 + $0x6f0] ss:$24 sps:$4 sm:$0xff]  }
 0x271   :  { %4303 = vmatpush1.bf16.msra.mxu1 %v6529_v10  ;;  %v6589_v10 = vld [vmem:[#allocation11 + $0x608] ss:$24 sps:$4 sm:$0xff]  }
 0x272   :  { %4304 = vmatprep.subr.bf16.mxu1 %v6537_v12  ;;  %v6597_v12 = vld [vmem:[#allocation11 + $0x63c] ss:$24 sps:$4 sm:$0xff]  }
 0x273   :  { %4422 = vmatpush1.bf16.msra.mxu0 %v6532_v11  ;;  %v6624_v11 = vld [vmem:[#allocation11 + $0x724] ss:$24 sps:$4 sm:$0xff]  }
 0x274   :  { %4423 = vmatprep.subr.bf16.mxu0 %v6540_v13  ;;  %v6622_v13 = vld [vmem:[#allocation11 + $0x720] ss:$24 sps:$4 sm:$0xff]  }
 0x275   :  { %4305 = vmatpush1.bf16.msra.mxu1 %v6535_v16  ;;  %v6595_v16 = vld [vmem:[#allocation11 + $0x638] ss:$24 sps:$4 sm:$0xff]  }
 0x276   :  { %4306 = vmatprep.subr.bf16.mxu1 %v6543_v17  ;;  %v6603_v17 = vld [vmem:[#allocation11 + $0x66c] ss:$24 sps:$4 sm:$0xff]  }
 0x277   :  { %4424 = vmatpush1.bf16.msra.mxu0 %v6538_v58  ;;  %v6630_v58 = vld [vmem:[#allocation11 + $0x754] ss:$24 sps:$4 sm:$0xff]  }
 0x278   :  { %4425 = vmatprep.subr.bf16.mxu0 %v6546_v14  ;;  %v6628_v14 = vld [vmem:[#allocation11 + $0x750] ss:$24 sps:$4 sm:$0xff]  }
 0x279   :  { %4307 = vmatpush1.bf16.msra.mxu1 %v6541_v37  ;;  %v6601_v37 = vld [vmem:[#allocation11 + $0x668] ss:$24 sps:$4 sm:$0xff]  }
 0x27a   :  { %4308 = vmatprep.subr.bf16.mxu1 %v6549_v26  ;;  %v6609_v26 = vld [vmem:[#allocation11 + $0x69c] ss:$24 sps:$4 sm:$0xff]  }
 0x27b   :  { %4426 = vmatpush1.bf16.msra.mxu0 %v6544_v59  ;;  %v6636_v59 = vld [vmem:[#allocation11 + $0x784] ss:$24 sps:$4 sm:$0xff]  }
 0x27c   :  { %4427 = vmatprep.subr.bf16.mxu0 %v6552_v27  ;;  %v6634_v27 = vld [vmem:[#allocation11 + $0x780] ss:$24 sps:$4 sm:$0xff]  }
 0x27d   :  { %4309 = vmatpush1.bf16.msra.mxu1 %v6547_v30  ;;  %v6607_v30 = vld [vmem:[#allocation11 + $0x698] ss:$24 sps:$4 sm:$0xff]  }
 0x27e   :  { %4310 = vmatprep.subr.bf16.mxu1 %v6555_v20  ;;  %v6615_v20 = vld [vmem:[#allocation11 + $0x6cc] ss:$24 sps:$4 sm:$0xff]  }
 0x27f   :  { %4428 = vmatpush1.bf16.msra.mxu0 %v6550_v55  ;;  %v6642_v55 = vld [vmem:[#allocation11 + $0x7b4] ss:$24 sps:$4 sm:$0xff]  }
 0x280   :  { %4429 = vmatprep.subr.bf16.mxu0 %v6558_v35  ;;  %v6640_v35 = vld [vmem:[#allocation11 + $0x7b0] ss:$24 sps:$4 sm:$0xff]  }
 0x281   :  { %4311 = vmatpush1.bf16.msra.mxu1 %v6553_v38  ;;  %v6613_v38 = vld [vmem:[#allocation11 + $0x6c8] ss:$24 sps:$4 sm:$0xff]  }
 0x282   :  { %4312 = vmatprep.subr.bf16.mxu1 %v6561_v6  ;;  %v6621_v6 = vld [vmem:[#allocation11 + $0x6fc] ss:$24 sps:$4 sm:$0xff]  }
 0x283   :  { %4430 = vmatpush1.bf16.msra.mxu0 %v6556_v39  ;;  %v6648_v39 = vld [vmem:[#allocation11 + $0x7e4] ss:$24 sps:$4 sm:$0xff]  }
 0x284   :  { %4431 = vmatprep.subr.bf16.mxu0 %v6564_v40  ;;  %v6646_v40 = vld [vmem:[#allocation11 + $0x7e0] ss:$24 sps:$4 sm:$0xff]  }
 0x285   :  { %4313 = vmatpush1.bf16.msra.mxu1 %v6559_v52  ;;  %v6619_v52 = vld [vmem:[#allocation11 + $0x6f8] ss:$24 sps:$4 sm:$0xff]  }
 0x286   :  { %4314 = vmatprep.subr.bf16.mxu1 %v6567_v42  ;;  %v6627_v42 = vld [vmem:[#allocation11 + $0x72c] ss:$24 sps:$4 sm:$0xff]  }
 0x287   :  { %4432 = vmatpush1.bf16.msra.mxu0 %v6562_v41  ;;  %v6654_v41 = vld [vmem:[#allocation11 + $0x814] ss:$24 sps:$4 sm:$0xff]  }
 0x288   :  { %4433 = vmatprep.subr.bf16.mxu0 %v6570_v43  ;;  %v6652_v43 = vld [vmem:[#allocation11 + $0x810] ss:$24 sps:$4 sm:$0xff]  }
 0x289   :  { %4315 = vmatpush1.bf16.msra.mxu1 %v6565_v18  ;;  %v6625_v18 = vld [vmem:[#allocation11 + $0x728] ss:$24 sps:$4 sm:$0xff]  }
 0x28a   :  { %4327 = vmatprep.subr.bf16.mxu1 %v6588_v45  ;;  %v6633_v45 = vld [vmem:[#allocation11 + $0x75c] ss:$24 sps:$4 sm:$0xff]  }
 0x28b   :  { %4434 = vmatpush1.bf16.msra.mxu0 %v6568_v44  ;;  %v6660_v44 = vld [vmem:[#allocation11 + $0x844] ss:$24 sps:$4 sm:$0xff]  }
 0x28c   :  { %4435 = vmatprep.subr.bf16.mxu0 %v6573_v46  ;;  %4317 = vmatmul.mubr.bf16.vlgmr.msra.gmra.mrb[4].mxu1 %v7518_v15  ;;  %v6658_v46 = vld [vmem:[#allocation11 + $0x840] ss:$24 sps:$4 sm:$0xff]  }
 0x28d   :  { %4328 = vmatpush1.bf16.msra.mxu1 %v6586_v47  ;;  %v6631_v47 = vld [vmem:[#allocation11 + $0x758] ss:$24 sps:$4 sm:$0xff]  }
 0x28e   :  { %4329 = vmatprep.subr.bf16.mxu1 %v6594_v4  ;;  %v6639_v4 = vld [vmem:[#allocation11 + $0x78c] ss:$24 sps:$4 sm:$0xff]  }
 0x28f   :  { %4436 = vmatpush1.bf16.msra.mxu0 %v6571_v51  ;;  %v6666_v51 = vld [vmem:[#allocation11 + $0x874] ss:$24 sps:$4 sm:$0xff]  }
 0x290   :  { %4437 = vmatprep.subr.bf16.mxu0 %v6576_v62  ;;  %v6664_v62 = vld [vmem:[#allocation11 + $0x870] ss:$24 sps:$4 sm:$0xff]  }
 0x291   :  { %4330 = vmatpush1.bf16.msra.mxu1 %v6592_v49  ;;  %v6637_v49 = vld [vmem:[#allocation11 + $0x788] ss:$24 sps:$4 sm:$0xff]  }
 0x292   :  { %4331 = vmatprep.subr.bf16.mxu1 %v6600_v50  ;;  %v6645_v50 = vld [vmem:[#allocation11 + $0x7bc] ss:$24 sps:$4 sm:$0xff]  }
 0x293   :  { %4438 = vmatpush1.bf16.msra.mxu0 %v6574_v48  ;;  %v6672_v48 = vld [vmem:[#allocation11 + $0x8a4] ss:$24 sps:$4 sm:$0xff]  }
 0x294   :  { %4439 = vmatprep.subr.bf16.mxu0 %v6579_v25  ;;  %v6670_v25 = vld [vmem:[#allocation11 + $0x8a0] ss:$24 sps:$4 sm:$0xff]  }
 0x295   :  { %4332 = vmatpush1.bf16.msra.mxu1 %v6598_v53  ;;  %v6643_v53 = vld [vmem:[#allocation11 + $0x7b8] ss:$24 sps:$4 sm:$0xff]  }
 0x296   :  { %4333 = vmatprep.subr.bf16.mxu1 %v6606_v21  ;;  %v6651_v21 = vld [vmem:[#allocation11 + $0x7ec] ss:$24 sps:$4 sm:$0xff]  }
 0x297   :  { %4440 = vmatpush1.bf16.msra.mxu0 %v6577_v54  ;;  %v6678_v54 = vld [vmem:[#allocation11 + $0x8d4] ss:$24 sps:$4 sm:$0xff]  }
 0x298   :  { %4441 = vmatprep.subr.bf16.mxu0 %v6582_v56  ;;  %v6676_v56 = vld [vmem:[#allocation11 + $0x8d0] ss:$24 sps:$4 sm:$0xff]  }
 0x299   :  { %4334 = vmatpush1.bf16.msra.mxu1 %v6604_v60  ;;  %v6649_v60 = vld [vmem:[#allocation11 + $0x7e8] ss:$24 sps:$4 sm:$0xff]  }
 0x29a   :  { %4335 = vmatprep.subr.bf16.mxu1 %v6612_v0  ;;  %v6657_v0 = vld [vmem:[#allocation11 + $0x81c] ss:$24 sps:$4 sm:$0xff]  }
 0x29b   :  { %4442 = vmatpush1.bf16.msra.mxu0 %v6580_v61  ;;  %v6684_v61 = vld [vmem:[#allocation11 + $0x14] ss:$24 sps:$4 sm:$0xff]  }
 0x29c   :  { %4443 = vmatprep.subr.bf16.mxu0 %v6585_v2  ;;  %v6655_v2 = vld [vmem:[#allocation11 + $0x818] ss:$24 sps:$4 sm:$0xff]  }
 0x29d   :  { %4336 = vmatpush1.bf16.msra.mxu1 %v6610_v3  ;;  %v6663_v3 = vld [vmem:[#allocation11 + $0x84c] ss:$24 sps:$4 sm:$0xff]  }
 0x29e   :  { %4337 = vmatprep.subr.bf16.mxu1 %v6618_v8  ;;  %v6669_v8 = vld [vmem:[#allocation11 + $0x87c] ss:$24 sps:$4 sm:$0xff]  }
 0x29f   :  { %4444 = vmatpush1.bf16.msra.mxu0 %v6583_v7  ;;  %v6661_v7 = vld [vmem:[#allocation11 + $0x848] ss:$24 sps:$4 sm:$0xff]  }
 0x2a0   :  { %4456 = vmatprep.subr.bf16.mxu0 %v6591_v57  ;;  %v6667_v57 = vld [vmem:[#allocation11 + $0x878] ss:$24 sps:$4 sm:$0xff]  }
 0x2a1   :  { %4338 = vmatpush1.bf16.msra.mxu1 %v6616_v9  ;;  %v6675_v9 = vld [vmem:[#allocation11 + $0x8ac] ss:$24 sps:$4 sm:$0xff]  }
 0x2a2   :  { %4446 = vmatmul.mubr.bf16.vlgmr.msra.gmra.mrb[8].mxu0 %v7518_v15  ;;  %4339 = vmatprep.subr.bf16.mxu1 %v6624_v11  ;;  %v6681_v11 = vld [vmem:[#allocation11 + $0x8dc] ss:$24 sps:$4 sm:$0xff]  }
 0x2a3   :  { %4457 = vmatpush1.bf16.msra.mxu0 %v6589_v10  ;;  %v6673_v10 = vld [vmem:[#allocation11 + $0x8a8] ss:$24 sps:$4 sm:$0xff]  }
 0x2a4   :  { %4458 = vmatprep.subr.bf16.mxu0 %v6597_v12  ;;  %v6679_v12 = vld [vmem:[#allocation11 + $0x8d8] ss:$24 sps:$4 sm:$0xff]  }
 0x2a5   :  { %4340 = vmatpush1.bf16.msra.mxu1 %v6622_v13 }
 0x2a6   :  { %4341 = vmatprep.subr.bf16.mxu1 %v6630_v58  ;;  %v2446_v58 = vrot.slane %v7479_v31, %v7442_v1 }
 0x2a7   :  { %4459 = vmatpush1.bf16.msra.mxu0 %v6595_v16 }
 0x2a8   :  { %4460 = vmatprep.subr.bf16.mxu0 %v6603_v17 }
 0x2a9   :  { %4342 = vmatpush1.bf16.msra.mxu1 %v6628_v14 }
 0x2aa   :  { %4343 = vmatprep.subr.bf16.mxu1 %v6636_v59 }
 0x2ab   :  { %4461 = vmatpush1.bf16.msra.mxu0 %v6601_v37  ;;  %v2450_v37 = vrot.slane %v7479_v31, %v7445_v36  ;;  %v6688_v31 = vld [vmem:[#allocation11 + $0x70] ss:$24 sps:$4 sm:$0xff]  }
 0x2ac   :  { %4462 = vmatprep.subr.bf16.mxu0 %v6609_v26 }
 0x2ad   :  { %4344 = vmatpush1.bf16.msra.mxu1 %v6634_v27 }
 0x2ae   :  { %4345 = vmatprep.subr.bf16.mxu1 %v6642_v55 }
 0x2af   :  { %4463 = vmatpush1.bf16.msra.mxu0 %v6607_v30 }
 0x2b0   :  { %4464 = vmatprep.subr.bf16.mxu0 %v6615_v20 }
 0x2b1   :  { %4346 = vmatpush1.bf16.msra.mxu1 %v6640_v35 }
 0x2b2   :  { %4347 = vmatprep.subr.bf16.mxu1 %v6648_v39 }
 0x2b3   :  { %4465 = vmatpush1.bf16.msra.mxu0 %v6613_v38 }
 0x2b4   :  { %4466 = vmatprep.subr.bf16.mxu0 %v6621_v6  ;;  %v6682_v6 = vld [vmem:[#allocation11 + $0x10] ss:$24 sps:$4 sm:$0xff]  }
 0x2b5   :  { %4348 = vmatpush1.bf16.msra.mxu1 %v6646_v40 }
 0x2b6   :  { %4349 = vmatprep.subr.bf16.mxu1 %v6654_v41  ;;  %v6693_v41 = vld [vmem:[#allocation11 + $0xa4] ss:$24 sps:$4 sm:$0xff]  }
 0x2b7   :  { %4467 = vmatpush1.bf16.msra.mxu0 %v6619_v52 }
 0x2b8   :  { %4468 = vmatprep.subr.bf16.mxu0 %v6627_v42  ;;  %v6691_v42 = vld [vmem:[#allocation11 + $0xa0] ss:$24 sps:$4 sm:$0xff]  }
 0x2b9   :  { %4350 = vmatpush1.bf16.msra.mxu1 %v6652_v43  ;;  %v6696_v43 = vld [vmem:[#allocation11 + $0xd4] ss:$24 sps:$4 sm:$0xff]  }
 0x2ba   :  { %4351 = vmatprep.subr.bf16.mxu1 %v6660_v44  ;;  %v6699_v44 = vld [vmem:[#allocation11 + $0x104] ss:$24 sps:$4 sm:$0xff]  }
 0x2bb   :  { %4469 = vmatpush1.bf16.msra.mxu0 %v6625_v18  ;;  %v6694_v18 = vld [vmem:[#allocation11 + $0xd0] ss:$24 sps:$4 sm:$0xff]  }
 0x2bc   :  { %4470 = vmatprep.subr.bf16.mxu0 %v6633_v45  ;;  %v6697_v45 = vld [vmem:[#allocation11 + $0x100] ss:$24 sps:$4 sm:$0xff]  }
 0x2bd   :  { %4352 = vmatpush1.bf16.msra.mxu1 %v6658_v46  ;;  %v6702_v46 = vld [vmem:[#allocation11 + $0x134] ss:$24 sps:$4 sm:$0xff]  }
 0x2be   :  { %4353 = vmatprep.subr.bf16.mxu1 %v6666_v51  ;;  %v6703_v51 = vld [vmem:[#allocation11 + $0x160] ss:$24 sps:$4 sm:$0xff]  }
 0x2bf   :  { %4471 = vmatpush1.bf16.msra.mxu0 %v6631_v47  ;;  %v6705_v47 = vld [vmem:[#allocation11 + $0x164] ss:$24 sps:$4 sm:$0xff]  }
 0x2c0   :  { %4472 = vmatprep.subr.bf16.mxu0 %v6639_v4  ;;  %v6708_v4 = vld [vmem:[#allocation11 + $0x194] ss:$24 sps:$4 sm:$0xff]  }
 0x2c1   :  { %4354 = vmatpush1.bf16.msra.mxu1 %v6664_v62  ;;  %v6706_v62 = vld [vmem:[#allocation11 + $0x190] ss:$24 sps:$4 sm:$0xff]  }
 0x2c2   :  { %4355 = vmatprep.subr.bf16.mxu1 %v6672_v48  ;;  %v6709_v48 = vld [vmem:[#allocation11 + $0x1c0] ss:$24 sps:$4 sm:$0xff]  }
 0x2c3   :  { %4473 = vmatpush1.bf16.msra.mxu0 %v6637_v49  ;;  %v6711_v49 = vld [vmem:[#allocation11 + $0x1c4] ss:$24 sps:$4 sm:$0xff]  }
 0x2c4   :  { %4474 = vmatprep.subr.bf16.mxu0 %v6645_v50  ;;  %v6714_v50 = vld [vmem:[#allocation11 + $0x1f4] ss:$24 sps:$4 sm:$0xff]  }
 0x2c5   :  { %4356 = vmatpush1.bf16.msra.mxu1 %v6670_v25  ;;  %v6712_v25 = vld [vmem:[#allocation11 + $0x1f0] ss:$24 sps:$4 sm:$0xff]  }
 0x2c6   :  { %4357 = vmatprep.subr.bf16.mxu1 %v6678_v54  ;;  %v6715_v54 = vld [vmem:[#allocation11 + $0x220] ss:$24 sps:$4 sm:$0xff]  }
 0x2c7   :  { %4475 = vmatpush1.bf16.msra.mxu0 %v6643_v53  ;;  %v6717_v53 = vld [vmem:[#allocation11 + $0x224] ss:$24 sps:$4 sm:$0xff]  }
 0x2c8   :  { %4476 = vmatprep.subr.bf16.mxu0 %v6651_v21  ;;  %v6720_v21 = vld [vmem:[#allocation11 + $0x254] ss:$24 sps:$4 sm:$0xff]  }
 0x2c9   :  { %4358 = vmatpush1.bf16.msra.mxu1 %v6676_v56  ;;  %v6718_v56 = vld [vmem:[#allocation11 + $0x250] ss:$24 sps:$4 sm:$0xff]  }
 0x2ca   :  { %4499 = vmatprep.subr.bf16.mxu1 %v6684_v61  ;;  %v6721_v61 = vld [vmem:[#allocation11 + $0x280] ss:$24 sps:$4 sm:$0xff]  }
 0x2cb   :  { %4477 = vmatpush1.bf16.msra.mxu0 %v6649_v60  ;;  %v6723_v60 = vld [vmem:[#allocation11 + $0x284] ss:$24 sps:$4 sm:$0xff]  }
 0x2cc   :  { %4478 = vmatprep.subr.bf16.mxu0 %v6657_v0  ;;  %v6726_v0 = vld [vmem:[#allocation11 + $0x2b4] ss:$24 sps:$4 sm:$0xff]  }
 0x2cf   :  { %4479 = vmatpush1.bf16.msra.mxu0 %v6655_v2  ;;  %v6724_v2 = vld [vmem:[#allocation11 + $0x2b0] ss:$24 sps:$4 sm:$0xff]  }
 0x2d0   :  { %4480 = vmatprep.subr.bf16.mxu0 %v6663_v3  ;;  %v6729_v3 = vld [vmem:[#allocation11 + $0x2e4] ss:$24 sps:$4 sm:$0xff]  }
 0x2d3   :  { %4481 = vmatpush1.bf16.msra.mxu0 %v6661_v7  ;;  %v6727_v7 = vld [vmem:[#allocation11 + $0x2e0] ss:$24 sps:$4 sm:$0xff]  }
 0x2d4   :  { %4482 = vmatprep.subr.bf16.mxu0 %v6669_v8  ;;  %v6732_v8 = vld [vmem:[#allocation11 + $0x314] ss:$24 sps:$4 sm:$0xff]  }
 0x2d7   :  { %4483 = vmatpush1.bf16.msra.mxu0 %v6667_v57  ;;  %v6730_v57 = vld [vmem:[#allocation11 + $0x310] ss:$24 sps:$4 sm:$0xff]  }
 0x2d8   :  { %4484 = vmatprep.subr.bf16.mxu0 %v6675_v9  ;;  %v6735_v9 = vld [vmem:[#allocation11 + $0x344] ss:$24 sps:$4 sm:$0xff]  }
 0x2db   :  { %4485 = vmatpush1.bf16.msra.mxu0 %v6673_v10  ;;  %v6826_v10 = vld [vmem:[#allocation14 + $0x40] sm:$0xff]  }
 0x2dc   :  { %4486 = vmatprep.subr.bf16.mxu0 %v6681_v11  ;;  %v6828_v11 = vld [vmem:[#allocation14] sm:$0xff]  }
 0x2df   :  { %4487 = vmatpush1.bf16.msra.mxu0 %v6679_v12  ;;  %v6733_v12 = vld [vmem:[#allocation11 + $0x340] ss:$24 sps:$4 sm:$0xff]  }
 0x2e0   :  { %5820 = vmatprep.subr.bf16.mxu0 %v6826_v10  ;;  %v6790_v10 = vld [vmem:[#allocation11 + $0x6d0] ss:$24 sps:$4 sm:$0xff]  }
 0x2f5   :  { %v2404_v13 = vpop.f32.mrb[4].mxu0 }
 0x2f6   :  { %v2417_v16 = vadd.f32 %v2404_v13, %v7452_v29  ;;  %v2406_v17 = vpop.f32.mrb[5].mxu0  ;;  %v6830_v13 = vld [vmem:[#allocation14 + $0x48] sm:$0xff]  }
 0x2f7   :  { %v2418_v14 = vadd.f32 %v2406_v17, %v7455_v28  ;;  %v2408_v59 = vpop.f32.mrb[6].mxu0  ;;  %v6687_v28 = vld [vmem:[#allocation11 + $0x44] ss:$24 sps:$4 sm:$0xff]   ;;  %v6736_v17 = vld [vmem:[#allocation11 + $0x370] ss:$24 sps:$4 sm:$0xff]  }
 0x2f8   :  { %v2423_v26 = vadd.f32 %v2408_v59, %v7458_v22  ;;  %v2410_v27 = vpop.f32.mrb[7].mxu0  ;;  %v2461_v55 = vadd.f32 %v2446_v58, %v2417_v16  ;;  %v6685_v22 = vld [vmem:[#allocation11 + $0x40] ss:$24 sps:$4 sm:$0xff]   ;;  %v6738_v16 = vld [vmem:[#allocation11 + $0x374] ss:$24 sps:$4 sm:$0xff]  }
 0x2f9   :  { %v2424_v30 = vadd.f32 %v2410_v27, %v7461_v32  ;;  %v2462_v35 = vadd.f32 %v2450_v37, %v2418_v14  ;;  %v6690_v32 = vld [vmem:[#allocation11 + $0x74] ss:$24 sps:$4 sm:$0xff]   ;;  %v6739_v59 = vld [vmem:[#allocation11 + $0x3a0] ss:$24 sps:$4 sm:$0xff]   ;;  %v6747_v27 = vld [vmem:[#allocation11 + $0x404] ss:$24 sps:$4 sm:$0xff]  }
 0x2fa   :  { %v2467_v20 = vadd.f32 %v2446_v58, %v2423_v26  ;;  %v6832_v58 = vld [vmem:[#allocation14 + $0x8] sm:$0xff]   ;;  %v6834_v14 = vld [vmem:[#allocation14 + $0x50] sm:$0xff]  }
 0x2fb   :  { %v2468_v38 = vadd.f32 %v2450_v37, %v2424_v30  ;;  %v6741_v37 = vld [vmem:[#allocation11 + $0x3a4] ss:$24 sps:$4 sm:$0xff]   ;;  %v6742_v26 = vld [vmem:[#allocation11 + $0x3d0] ss:$24 sps:$4 sm:$0xff]   ;;  %v6745_v30 = vld [vmem:[#allocation11 + $0x400] ss:$24 sps:$4 sm:$0xff]  }
 0x2fc   :  { %v2473_v29 = vpack.c.bf16 %v2467_v20, %v2461_v55  ;;  %v6750_v55 = vld [vmem:[#allocation11 + $0x434] ss:$24 sps:$4 sm:$0xff]   ;;  %v6838_v20 = vld [vmem:[#allocation14 + $0x58] sm:$0xff]  }
 0x2fd   :  { %v2474_v39 = vpack.c.bf16 %v2468_v38, %v2462_v35  ;;  %v6748_v35 = vld [vmem:[#allocation11 + $0x430] ss:$24 sps:$4 sm:$0xff]   ;;  %v6840_v38 = vld [vmem:[#allocation14 + $0x18] sm:$0xff]  }
 0x2ff   :  { %6886 = vtanh.bf16 %v2474_v39  ;;  %v6842_v39 = vld [vmem:[#allocation14 + $0x60] sm:$0xff]  }
 0x300   :  { %6888 = vtanh.bf16 %v2473_v29  ;;  %v6753_v29 = vld [vmem:[#allocation11 + $0x464] ss:$24 sps:$4 sm:$0xff]  }
 0x30a   :  { %v7530_v40 = vpop.eup %6886 }
 0x30b   :  { %v7532_v52 = vpop.eup %6888  ;;  %4359 = vmatprep.mubr.bf16.mxu1 %v7530_v40  ;;  %4488 = vmatprep.mubr.bf16.mxu0 %v7530_v40 }
 0x30c   :  { %4360 = vmatmul.mubr.bf16.vlgmr.msra.gmra.mrb[4].mxu1 %v7532_v52  ;;  %4489 = vmatmul.mubr.bf16.vlgmr.msra.gmra.mrb[8].mxu0 %v7532_v52 }
 0x30d   :  { %4500 = vmatpush1.bf16.msra.mxu1 %v6682_v6  ;;  %4531 = vmatprep.mubr.bf16.mxu1 %v7503_v63  ;;  %v6700_v63 = vld [vmem:[#allocation11 + $0x130] ss:$24 sps:$4 sm:$0xff]   ;;  %v6751_v6 = vld [vmem:[#allocation11 + $0x460] ss:$24 sps:$4 sm:$0xff]  }
 0x30e   :  { %4501 = vmatprep.subr.bf16.mxu1 %v6687_v28  ;;  %5821 = vmatpush3.bf16.msra.mxu0 %v6828_v11  ;;  %v6844_v28 = vld [vmem:[#allocation14 + $0x20] sm:$0xff]  }
 0x30f   :  { %5822 = vmatprep.subr.bf16.mxu0 %v6830_v13  ;;  %v6795_v11 = vld [vmem:[#allocation11 + $0x704] ss:$24 sps:$4 sm:$0xff]  }
 0x310   :  { %v6801_v13 = vld [vmem:[#allocation11 + $0x764] ss:$24 sps:$4 sm:$0xff]  }
 0x311   :  { %4502 = vmatpush1.bf16.msra.mxu1 %v6685_v22  ;;  %v6756_v22 = vld [vmem:[#allocation11 + $0x494] ss:$24 sps:$4 sm:$0xff]  }
 0x312   :  { %4503 = vmatprep.subr.bf16.mxu1 %v6690_v32  ;;  %5823 = vmatpush3.bf16.msra.mxu0 %v6832_v58  ;;  %v6846_v32 = vld [vmem:[#allocation14 + $0x68] sm:$0xff]  }
 0x313   :  { %5824 = vmatprep.subr.bf16.mxu0 %v6834_v14  ;;  %v6804_v58 = vld [vmem:[#allocation11 + $0x794] ss:$24 sps:$4 sm:$0xff]   ;;  %v6807_v14 = vld [vmem:[#allocation11 + $0x7c4] ss:$24 sps:$4 sm:$0xff]  }
 0x315   :  { %4504 = vmatpush1.bf16.msra.mxu1 %v6688_v31  ;;  %v6754_v31 = vld [vmem:[#allocation11 + $0x490] ss:$24 sps:$4 sm:$0xff]  }
 0x316   :  { %4505 = vmatprep.subr.bf16.mxu1 %v6693_v41  ;;  %v6848_v41 = vld [vmem:[#allocation14 + $0x28] sm:$0xff]  }
 0x319   :  { %4506 = vmatpush1.bf16.msra.mxu1 %v6691_v42  ;;  %v6850_v42 = vld [vmem:[#allocation14 + $0x70] sm:$0xff]  }
 0x31a   :  { %4507 = vmatprep.subr.bf16.mxu1 %v6696_v43  ;;  %v6759_v43 = vld [vmem:[#allocation11 + $0x4c4] ss:$24 sps:$4 sm:$0xff]  }
 0x31d   :  { %4508 = vmatpush1.bf16.msra.mxu1 %v6694_v18  ;;  %v6852_v18 = vld [vmem:[#allocation14 + $0x30] sm:$0xff]  }
 0x31e   :  { %4509 = vmatprep.subr.bf16.mxu1 %v6699_v44  ;;  %v6854_v44 = vld [vmem:[#allocation14 + $0x78] sm:$0xff]  }
 0x321   :  { %4510 = vmatpush1.bf16.msra.mxu1 %v6697_v45  ;;  %v6757_v45 = vld [vmem:[#allocation11 + $0x4c0] ss:$24 sps:$4 sm:$0xff]  }
 0x322   :  { %4511 = vmatprep.subr.bf16.mxu1 %v6702_v46  ;;  %v6762_v46 = vld [vmem:[#allocation11 + $0x4f4] ss:$24 sps:$4 sm:$0xff]  }
 0x325   :  { %4512 = vmatpush1.bf16.msra.mxu1 %v6700_v63  ;;  %v6856_v63 = vld [vmem:[#allocation14 + $0x38] sm:$0xff]  }
 0x326   :  { %4513 = vmatprep.subr.bf16.mxu1 %v6705_v47  ;;  %v6760_v47 = vld [vmem:[#allocation11 + $0x4f0] ss:$24 sps:$4 sm:$0xff]  }
 0x329   :  { %4514 = vmatpush1.bf16.msra.mxu1 %v6703_v51  ;;  %v6765_v51 = vld [vmem:[#allocation11 + $0x524] ss:$24 sps:$4 sm:$0xff]  }
 0x32a   :  { %4515 = vmatprep.subr.bf16.mxu1 %v6708_v4  ;;  %v6763_v4 = vld [vmem:[#allocation11 + $0x520] ss:$24 sps:$4 sm:$0xff]  }
 0x32d   :  { %4516 = vmatpush1.bf16.msra.mxu1 %v6706_v62  ;;  %v6768_v62 = vld [vmem:[#allocation11 + $0x554] ss:$24 sps:$4 sm:$0xff]  }
 0x32e   :  { %4517 = vmatprep.subr.bf16.mxu1 %v6711_v49  ;;  %v6858_v49 = vld [vmem:[#allocation14 + $0x140] sm:$0xff]  }
 0x331   :  { %4518 = vmatpush1.bf16.msra.mxu1 %v6709_v48  ;;  %v6766_v48 = vld [vmem:[#allocation11 + $0x550] ss:$24 sps:$4 sm:$0xff]  }
 0x332   :  { %4519 = vmatprep.subr.bf16.mxu1 %v6714_v50  ;;  %v6771_v50 = vld [vmem:[#allocation11 + $0x584] ss:$24 sps:$4 sm:$0xff]  }
 0x335   :  { %4520 = vmatpush1.bf16.msra.mxu1 %v6712_v25  ;;  %v6769_v25 = vld [vmem:[#allocation11 + $0x580] ss:$24 sps:$4 sm:$0xff]  }
 0x336   :  { %4521 = vmatprep.subr.bf16.mxu1 %v6717_v53  ;;  %v6774_v53 = vld [vmem:[#allocation11 + $0x5b4] ss:$24 sps:$4 sm:$0xff]  }
 0x339   :  { %4522 = vmatpush1.bf16.msra.mxu1 %v6715_v54  ;;  %v6772_v54 = vld [vmem:[#allocation11 + $0x5b0] ss:$24 sps:$4 sm:$0xff]  }
 0x33a   :  { %4523 = vmatprep.subr.bf16.mxu1 %v6720_v21  ;;  %v6777_v21 = vld [vmem:[#allocation11 + $0x5e4] ss:$24 sps:$4 sm:$0xff]  }
 0x33d   :  { %4524 = vmatpush1.bf16.msra.mxu1 %v6718_v56  ;;  %v6775_v56 = vld [vmem:[#allocation11 + $0x5e0] ss:$24 sps:$4 sm:$0xff]  }
 0x33e   :  { %4525 = vmatprep.subr.bf16.mxu1 %v6723_v60  ;;  %v6780_v60 = vld [vmem:[#allocation11 + $0x614] ss:$24 sps:$4 sm:$0xff]  }
 0x341   :  { %4526 = vmatpush1.bf16.msra.mxu1 %v6721_v61  ;;  %v6778_v61 = vld [vmem:[#allocation11 + $0x610] ss:$24 sps:$4 sm:$0xff]  }
 0x342   :  { %4527 = vmatprep.subr.bf16.mxu1 %v6726_v0  ;;  %v6783_v0 = vld [vmem:[#allocation11 + $0x644] ss:$24 sps:$4 sm:$0xff]  }
 0x345   :  { %4528 = vmatpush1.bf16.msra.mxu1 %v6724_v2  ;;  %v6781_v2 = vld [vmem:[#allocation11 + $0x640] ss:$24 sps:$4 sm:$0xff]  }
 0x346   :  { %4529 = vmatprep.subr.bf16.mxu1 %v6729_v3  ;;  %v6786_v3 = vld [vmem:[#allocation11 + $0x674] ss:$24 sps:$4 sm:$0xff]  }
 0x349   :  { %4530 = vmatpush1.bf16.msra.mxu1 %v6727_v7  ;;  %v6784_v7 = vld [vmem:[#allocation11 + $0x670] ss:$24 sps:$4 sm:$0xff]  }
 0x34a   :  { %4542 = vmatprep.subr.bf16.mxu1 %v6732_v8  ;;  %v6789_v8 = vld [vmem:[#allocation11 + $0x6a4] ss:$24 sps:$4 sm:$0xff]  }
 0x34c   :  { %4532 = vmatmul.mubr.bf16.vlgmr.msra.gmra.mrb[8].mxu1 %v7505_v33  ;;  %v6836_v33 = vld [vmem:[#allocation14 + $0x10] sm:$0xff]  }
 0x34d   :  { %4543 = vmatpush1.bf16.msra.mxu1 %v6730_v57  ;;  %4574 = vmatprep.mubr.bf16.mxu1 %v7509_v34  ;;  %v6744_v34 = vld [vmem:[#allocation11 + $0x3d4] ss:$24 sps:$4 sm:$0xff]   ;;  %v6787_v57 = vld [vmem:[#allocation11 + $0x6a0] ss:$24 sps:$4 sm:$0xff]  }
 0x34e   :  { %4544 = vmatprep.subr.bf16.mxu1 %v6735_v9  ;;  %5825 = vmatpush3.bf16.msra.mxu0 %v6836_v33  ;;  %v6792_v9 = vld [vmem:[#allocation11 + $0x6d4] ss:$24 sps:$4 sm:$0xff]  }
 0x34f   :  { %5826 = vmatprep.subr.bf16.mxu0 %v6838_v20  ;;  %v6810_v33 = vld [vmem:[#allocation11 + $0x7f4] ss:$24 sps:$4 sm:$0xff]   ;;  %v6817_v20 = vld [vmem:[#allocation11 + $0x880] ss:$24 sps:$4 sm:$0xff]  }
 0x351   :  { %4545 = vmatpush1.bf16.msra.mxu1 %v6733_v12  ;;  %v6798_v12 = vld [vmem:[#allocation11 + $0x734] ss:$24 sps:$4 sm:$0xff]  }
 0x352   :  { %4546 = vmatprep.subr.bf16.mxu1 %v6738_v16  ;;  %5827 = vmatpush3.bf16.msra.mxu0 %v6840_v38  ;;  %v6799_v16 = vld [vmem:[#allocation11 + $0x760] ss:$24 sps:$4 sm:$0xff]   ;;  %v6820_v38 = vld [vmem:[#allocation11 + $0x8b0] ss:$24 sps:$4 sm:$0xff]  }
 0x353   :  { %5828 = vmatprep.subr.bf16.mxu0 %v6842_v39  ;;  %v6823_v39 = vld [vmem:[#allocation11 + $0x8e0] ss:$24 sps:$4 sm:$0xff]  }
 0x355   :  { %4547 = vmatpush1.bf16.msra.mxu1 %v6736_v17  ;;  %v6802_v17 = vld [vmem:[#allocation11 + $0x790] ss:$24 sps:$4 sm:$0xff]  }
 0x356   :  { %4548 = vmatprep.subr.bf16.mxu1 %v6741_v37  ;;  %5829 = vmatpush3.bf16.msra.mxu0 %v6844_v28  ;;  %v6805_v37 = vld [vmem:[#allocation11 + $0x7c0] ss:$24 sps:$4 sm:$0xff]   ;;  %v6829_v28 = vld [vmem:[#allocation14 + $0x80] sm:$0xff]  }
 0x357   :  { %5830 = vmatprep.subr.bf16.mxu0 %v6846_v32  ;;  %v6833_v32 = vld [vmem:[#allocation14 + $0x88] sm:$0xff]  }
 0x359   :  { %4549 = vmatpush1.bf16.msra.mxu1 %v6739_v59  ;;  %v6808_v59 = vld [vmem:[#allocation11 + $0x7f0] ss:$24 sps:$4 sm:$0xff]  }
 0x35a   :  { %4550 = vmatprep.subr.bf16.mxu1 %v6744_v34  ;;  %5831 = vmatpush3.bf16.msra.mxu0 %v6848_v41  ;;  %v6813_v34 = vld [vmem:[#allocation11 + $0x824] ss:$24 sps:$4 sm:$0xff]  }
 0x35b   :  { %5832 = vmatprep.subr.bf16.mxu0 %v6850_v42  ;;  %v6837_v41 = vld [vmem:[#allocation14 + $0x90] sm:$0xff]   ;;  %v6839_v42 = vld [vmem:[#allocation14 + $0xd8] sm:$0xff]  }
 0x35d   :  { %4551 = vmatpush1.bf16.msra.mxu1 %v6742_v26  ;;  %v6811_v26 = vld [vmem:[#allocation11 + $0x820] ss:$24 sps:$4 sm:$0xff]  }
 0x35e   :  { %4552 = vmatprep.subr.bf16.mxu1 %v6747_v27  ;;  %5833 = vmatpush3.bf16.msra.mxu0 %v6852_v18  ;;  %v6816_v27 = vld [vmem:[#allocation11 + $0x854] ss:$24 sps:$4 sm:$0xff]  }
 0x35f   :  { %5834 = vmatprep.subr.bf16.mxu0 %v6854_v44  ;;  %v6843_v18 = vld [vmem:[#allocation14 + $0xe0] sm:$0xff]  }
 0x360   :  { %v6845_v44 = vld [vmem:[#allocation14 + $0xa0] sm:$0xff]  }
 0x361   :  { %4553 = vmatpush1.bf16.msra.mxu1 %v6745_v30  ;;  %v6814_v30 = vld [vmem:[#allocation11 + $0x850] ss:$24 sps:$4 sm:$0xff]  }
 0x362   :  { %4554 = vmatprep.subr.bf16.mxu1 %v6750_v55  ;;  %5835 = vmatpush3.bf16.msra.mxu0 %v6856_v63  ;;  %v6819_v55 = vld [vmem:[#allocation11 + $0x884] ss:$24 sps:$4 sm:$0xff]  }
 0x363   :  { %5864 = vmatprep.subr.bf16.mxu0 %v6858_v49 }
 0x365   :  { %4555 = vmatpush1.bf16.msra.mxu1 %v6748_v35  ;;  %v6822_v35 = vld [vmem:[#allocation11 + $0x8b4] ss:$24 sps:$4 sm:$0xff]  }
 0x366   :  { %4556 = vmatprep.subr.bf16.mxu1 %v6753_v29  ;;  %v6825_v29 = vld [vmem:[#allocation11 + $0x8e4] ss:$24 sps:$4 sm:$0xff]  }
 0x369   :  { %4557 = vmatpush1.bf16.msra.mxu1 %v6751_v6  ;;  %v6827_v6 = vld [vmem:[#allocation14 + $0xc0] sm:$0xff]  }
 0x36a   :  { %4558 = vmatprep.subr.bf16.mxu1 %v6756_v22  ;;  %v6831_v22 = vld [vmem:[#allocation14 + $0xc8] sm:$0xff]  }
 0x36d   :  { %4559 = vmatpush1.bf16.msra.mxu1 %v6754_v31  ;;  %v6835_v31 = vld [vmem:[#allocation14 + $0xd0] sm:$0xff]  }
 0x36e   :  { %4560 = vmatprep.subr.bf16.mxu1 %v6759_v43  ;;  %v6841_v43 = vld [vmem:[#allocation14 + $0x98] sm:$0xff]  }
 0x371   :  { %4561 = vmatpush1.bf16.msra.mxu1 %v6757_v45  ;;  %v6847_v45 = vld [vmem:[#allocation14 + $0xe8] sm:$0xff]  }
 0x372   :  { %4562 = vmatprep.subr.bf16.mxu1 %v6762_v46  ;;  %v7544_v46 = vld [vmem:[#allocation13] sm:$0x3f] }
 0x373   :  { %v2774_v63 = vrot.slane %v7544_v46, %v7465_v19  ;;  %v2778_v49 = vrot.slane %v7544_v46, %v7468_v23 }
 0x375   :  { %4563 = vmatpush1.bf16.msra.mxu1 %v6760_v47  ;;  %v2782_v47 = vrot.slane %v7544_v46, %v7423_v5 }
 0x376   :  { %4564 = vmatprep.subr.bf16.mxu1 %v6765_v51  ;;  %v6851_v51 = vld [vmem:[#allocation14 + $0xf0] sm:$0xff]  }
 0x379   :  { %4565 = vmatpush1.bf16.msra.mxu1 %v6763_v4 }
 0x37a   :  { %4566 = vmatprep.subr.bf16.mxu1 %v6768_v62 }
 0x37d   :  { %4567 = vmatpush1.bf16.msra.mxu1 %v6766_v48  ;;  %v2786_v48 = vrot.slane %v7544_v46, %v7471_v24 }
 0x37e   :  { %4568 = vmatprep.subr.bf16.mxu1 %v6771_v50 }
 0x381   :  { %4569 = vmatpush1.bf16.msra.mxu1 %v6769_v25 }
 0x382   :  { %4570 = vmatprep.subr.bf16.mxu1 %v6774_v53 }
 0x385   :  { %4571 = vmatpush1.bf16.msra.mxu1 %v6772_v54 }
 0x386   :  { %4572 = vmatprep.subr.bf16.mxu1 %v6777_v21  ;;  %v6853_v21 = vld [vmem:[#allocation14 + $0xb0] sm:$0xff]  }
 0x389   :  { %4573 = vmatpush1.bf16.msra.mxu1 %v6775_v56 }
 0x38a   :  { %4585 = vmatprep.subr.bf16.mxu1 %v6780_v60 }
 0x38c   :  { %4575 = vmatmul.mubr.bf16.vlgmr.msra.gmra.mrb[8].mxu1 %v7518_v15  ;;  %v6793_v15 = vld [vmem:[#allocation11 + $0x700] ss:$24 sps:$4 sm:$0xff]  }
 0x38d   :  { %4586 = vmatpush1.bf16.msra.mxu1 %v6778_v61  ;;  %4617 = vmatprep.mubr.bf16.mxu1 %v7530_v40  ;;  %v6796_v40 = vld [vmem:[#allocation11 + $0x730] ss:$24 sps:$4 sm:$0xff]  }
 0x38e   :  { %4587 = vmatprep.subr.bf16.mxu1 %v6783_v0 }
 0x391   :  { %4588 = vmatpush1.bf16.msra.mxu1 %v6781_v2  ;;  %v6855_v2 = vld [vmem:[#allocation14 + $0xf8] sm:$0xff]  }
 0x392   :  { %4589 = vmatprep.subr.bf16.mxu1 %v6786_v3 }
 0x395   :  { %4590 = vmatpush1.bf16.msra.mxu1 %v6784_v7 }
 0x396   :  { %4591 = vmatprep.subr.bf16.mxu1 %v6789_v8 }
 0x399   :  { %4592 = vmatpush1.bf16.msra.mxu1 %v6787_v57 }
 0x39a   :  { %4593 = vmatprep.subr.bf16.mxu1 %v6792_v9 }
 0x39d   :  { %4594 = vmatpush1.bf16.msra.mxu1 %v6790_v10 }
 0x39e   :  { %4595 = vmatprep.subr.bf16.mxu1 %v6795_v11  ;;  %v6857_v11 = vld [vmem:[#allocation14 + $0xb8] sm:$0xff]  }
 0x3a1   :  { %4596 = vmatpush1.bf16.msra.mxu1 %v6793_v15 }
 0x3a2   :  { %4597 = vmatprep.subr.bf16.mxu1 %v6798_v12  ;;  %v6859_v12 = vld [vmem:[#allocation14 + $0x100] sm:$0xff]  }
 0x3a5   :  { %4598 = vmatpush1.bf16.msra.mxu1 %v6796_v40 }
 0x3a6   :  { %4599 = vmatprep.subr.bf16.mxu1 %v6801_v13  ;;  %v6860_v13 = vld [vmem:[#allocation14 + $0x148] sm:$0xff]  }
 0x3a9   :  { %4600 = vmatpush1.bf16.msra.mxu1 %v6799_v16 }
 0x3aa   :  { %4601 = vmatprep.subr.bf16.mxu1 %v6804_v58 }
 0x3ad   :  { %4602 = vmatpush1.bf16.msra.mxu1 %v6802_v17  ;;  %v6861_v17 = vld [vmem:[#allocation14 + $0x108] sm:$0xff]  }
 0x3ae   :  { %4603 = vmatprep.subr.bf16.mxu1 %v6807_v14  ;;  %v6862_v14 = vld [vmem:[#allocation14 + $0x150] sm:$0xff]  }
 0x3b1   :  { %4604 = vmatpush1.bf16.msra.mxu1 %v6805_v37  ;;  %v6863_v37 = vld [vmem:[#allocation14 + $0x110] sm:$0xff]  }
 0x3b2   :  { %4605 = vmatprep.subr.bf16.mxu1 %v6810_v33  ;;  %v6864_v33 = vld [vmem:[#allocation14 + $0x158] sm:$0xff]  }
 0x3b5   :  { %4606 = vmatpush1.bf16.msra.mxu1 %v6808_v59  ;;  %v6865_v59 = vld [vmem:[#allocation14 + $0x118] sm:$0xff]  }
 0x3b6   :  { %4607 = vmatprep.subr.bf16.mxu1 %v6813_v34  ;;  %v6866_v34 = vld [vmem:[#allocation14 + $0x160] sm:$0xff]  }
 0x3b9   :  { %4608 = vmatpush1.bf16.msra.mxu1 %v6811_v26  ;;  %v6867_v26 = vld [vmem:[#allocation14 + $0x120] sm:$0xff]  }
 0x3ba   :  { %4609 = vmatprep.subr.bf16.mxu1 %v6816_v27  ;;  %v6868_v27 = vld [vmem:[#allocation14 + $0x168] sm:$0xff]  }
 0x3bd   :  { %4610 = vmatpush1.bf16.msra.mxu1 %v6814_v30  ;;  %v6869_v30 = vld [vmem:[#allocation14 + $0x128] sm:$0xff]  }
 0x3be   :  { %4611 = vmatprep.subr.bf16.mxu1 %v6819_v55  ;;  %v6870_v55 = vld [vmem:[#allocation14 + $0x170] sm:$0xff]  }
 0x3c1   :  { %4612 = vmatpush1.bf16.msra.mxu1 %v6817_v20  ;;  %v6871_v20 = vld [vmem:[#allocation14 + $0x130] sm:$0xff]  }
 0x3c2   :  { %4613 = vmatprep.subr.bf16.mxu1 %v6822_v35  ;;  %v6872_v35 = vld [vmem:[#allocation14 + $0x178] sm:$0xff]  }
 0x3c5   :  { %4614 = vmatpush1.bf16.msra.mxu1 %v6820_v38  ;;  %v6873_v38 = vld [vmem:[#allocation14 + $0x138] sm:$0xff]  }
 0x3c6   :  { %4615 = vmatprep.subr.bf16.mxu1 %v6825_v29  ;;  %v2790_v29 = vrot.slane %v7544_v46, %v7442_v1 }
 0x3c9   :  { %4616 = vmatpush1.bf16.msra.mxu1 %v6823_v39 }
 0x3ca   :  { %5842 = vmatprep.subr.bf16.mxu1 %v6827_v6  ;;  %v2794_v6 = vrot.slane %v7544_v46, %v7445_v36 }
 0x3cc   :  { %4618 = vmatmul.mubr.bf16.vlgmr.msra.gmra.mrb[8].mxu1 %v7532_v52  ;;  %v6849_v52 = vld [vmem:[#allocation14 + $0xa8] sm:$0xff]  }
 0x3cd   :  { %5843 = vmatpush3.bf16.msra.mxu1 %v6829_v28 }
 0x3ce   :  { %5844 = vmatprep.subr.bf16.mxu1 %v6831_v22 }
 0x3d1   :  { %5845 = vmatpush3.bf16.msra.mxu1 %v6833_v32 }
 0x3d2   :  { %5846 = vmatprep.subr.bf16.mxu1 %v6835_v31 }
 0x3d5   :  { %5847 = vmatpush3.bf16.msra.mxu1 %v6837_v41 }
 0x3d6   :  { %5848 = vmatprep.subr.bf16.mxu1 %v6839_v42 }
 0x3d9   :  { %5849 = vmatpush3.bf16.msra.mxu1 %v6841_v43 }
 0x3da   :  { %5850 = vmatprep.subr.bf16.mxu1 %v6843_v18 }
 0x3dd   :  { %5851 = vmatpush3.bf16.msra.mxu1 %v6845_v44 }
 0x3de   :  { %5852 = vmatprep.subr.bf16.mxu1 %v6847_v45 }
 0x3df   :  { %v4361_v4 = vpop.f32.mrb[4].mxu1  ;;  %v4490_v62 = vpop.f32.mrb[8].mxu0 }
 0x3e0   :  { %v4363_v50 = vpop.f32.mrb[5].mxu1  ;;  %v4492_v25 = vpop.f32.mrb[9].mxu0  ;;  %v5886_v19 = vadd.f32 %v4361_v4, %v2774_v63  ;;  %v5890_v56 = vadd.f32 %v4490_v62, %v2782_v47 }
 0x3e1   :  { %v4365_v53 = vpop.f32.mrb[6].mxu1  ;;  %v4494_v54 = vpop.f32.mrb[10].mxu0  ;;  %5853 = vmatpush3.bf16.msra.mxu1 %v6849_v52  ;;  %v5887_v3 = vadd.f32 %v4363_v50, %v2778_v49  ;;  %v5891_v7 = vadd.f32 %v4492_v25, %v2786_v48 }
 0x3e2   :  { %v5888_v60 = vadd.f32 %v4365_v53, %v2774_v63  ;;  %v5892_v5 = vadd.f32 %v4494_v54, %v2782_v47  ;;  %v4367_v61 = vpop.f32.mrb[7].mxu1  ;;  %v4496_v0 = vpop.f32.mrb[11].mxu0  ;;  %5854 = vmatprep.subr.bf16.mxu1 %v6851_v51  ;;  %v5771_v47 = vld [vmem:[#allocation16] ss:$0 sm:$0xff] }
 0x3e3   :  { %v5889_v23 = vadd.f32 %v4367_v61, %v2778_v49  ;;  %v5893_v8 = vadd.f32 %v4496_v0, %v2786_v48 }
 0x3e4   :  { %v4628_v57 = vpack.c.bf16 %v5888_v60, %v5886_v19  ;;  %v4630_v24 = vpack.c.bf16 %v5892_v5, %v5890_v56 }
 0x3e5   :  { %v4629_v9 = vpack.c.bf16 %v5889_v23, %v5887_v3  ;;  %v4631_v10 = vpack.c.bf16 %v5893_v8, %v5891_v7  ;;  %5855 = vmatpush3.bf16.msra.mxu1 %v6853_v21 }
 0x3e6   :  { %5856 = vmatprep.subr.bf16.mxu1 %v6855_v2  ;;  %6890 = vtanh.bf16 %v4628_v57 }
 0x3e7   :  { %6892 = vtanh.bf16 %v4629_v9 }
 0x3e8   :  { %6894 = vtanh.bf16 %v4631_v10 }
 0x3e9   :  { %5857 = vmatpush3.bf16.msra.mxu1 %v6857_v11  ;;  %6896 = vtanh.bf16 %v4630_v24 }
 0x3f1   :  { %v6891_v15 = vpop.eup %6890 }
 0x3f2   :  { %v6893_v40 = vpop.eup %6892 }
 0x3f3   :  { %v6895_v16 = vpop.eup %6894  ;;  %5063 = vmatprep.mubr.bf16.mxu0 %v6893_v40 }
 0x3f4   :  { %v6897_v58 = vpop.eup %6896  ;;  %5104 = vmatprep.mubr.bf16.mxu1 %v6895_v16  ;;  %5064 = vmatmul.mubr.bf16.vlgmr.msra.gmra.mrb[12].mxu0 %v6891_v15 }
 0x3f5   :  { %5105 = vmatmul.mubr.bf16.vlgmr.msra.gmra.mrb[12].mxu1 %v6897_v58  ;;  %5865 = vmatpush3.bf16.msra.mxu0 %v6859_v12 }
 0x3f6   :  { %5866 = vmatprep.subr.bf16.mxu0 %v6860_v13 }
 0x3f9   :  { %5867 = vmatpush3.bf16.msra.mxu0 %v6861_v17 }
 0x3fa   :  { %5868 = vmatprep.subr.bf16.mxu0 %v6862_v14 }
 0x3fd   :  { %5869 = vmatpush3.bf16.msra.mxu0 %v6863_v37 }
 0x3fe   :  { %5870 = vmatprep.subr.bf16.mxu0 %v6864_v33 }
 0x401   :  { %5871 = vmatpush3.bf16.msra.mxu0 %v6865_v59 }
 0x402   :  { %5872 = vmatprep.subr.bf16.mxu0 %v6866_v34 }
 0x405   :  { %5873 = vmatpush3.bf16.msra.mxu0 %v6867_v26 }
 0x406   :  { %5874 = vmatprep.subr.bf16.mxu0 %v6868_v27 }
 0x409   :  { %5875 = vmatpush3.bf16.msra.mxu0 %v6869_v30 }
 0x40a   :  { %5876 = vmatprep.subr.bf16.mxu0 %v6870_v55 }
 0x40d   :  { %5877 = vmatpush3.bf16.msra.mxu0 %v6871_v20 }
 0x40e   :  { %5878 = vmatprep.subr.bf16.mxu0 %v6872_v35 }
 0x411   :  { %5879 = vmatpush3.bf16.msra.mxu0 %v6873_v38 }
 0x49f   :  { %v4619_v39 = vpop.f32.mrb[8].mxu1 }
 0x4a0   :  { %v4621_v28 = vpop.f32.mrb[9].mxu1  ;;  %v5894_v32 = vadd.f32 %v4619_v39, %v2790_v29 }
 0x4a1   :  { %v4623_v22 = vpop.f32.mrb[10].mxu1  ;;  %v5895_v42 = vadd.f32 %v4621_v28, %v2794_v6 }
 0x4a2   :  { %v5896_v31 = vadd.f32 %v4623_v22, %v2790_v29  ;;  %v4625_v41 = vpop.f32.mrb[11].mxu1 }
 0x4a3   :  { %v5897_v43 = vadd.f32 %v4625_v41, %v2794_v6 }
 0x4a4   :  { %v4632_v18 = vpack.c.bf16 %v5896_v31, %v5894_v32 }
 0x4a5   :  { %v4633_v44 = vpack.c.bf16 %v5897_v43, %v5895_v42 }
 0x4a7   :  { %6898 = vtanh.bf16 %v4633_v44 }
 0x4a8   :  { %6900 = vtanh.bf16 %v4632_v18 }
 0x4b2   :  { %v6899_v45 = vpop.eup %6898 }
 0x4b3   :  { %v6901_v52 = vpop.eup %6900  ;;  %5145 = vmatprep.mubr.bf16.mxu0 %v6899_v45 }
 0x4b4   :  { %5146 = vmatmul.mubr.bf16.vlgmr.msra.gmra.mrb[16].mxu0 %v6901_v52 }
 0x4c7   :  { %v5836_v1 = vpop.f32.mrb[12].mxu0 }
 0x4c8   :  { %v5858_v63 = vpop.f32.mrb[12].mxu1  ;;  %v5837_v51 = vpop.f32.mrb[13].mxu0 }
 0x4c9   :  { %v5838_v36 = vadd.f32 %v5837_v51, %v5836_v1  ;;  %v5859_v46 = vpop.f32.mrb[13].mxu1  ;;  %v5839_v4 = vpop.f32.mrb[14].mxu0 }
 0x4ca   :  { %v5860_v62 = vadd.f32 %v5859_v46, %v5858_v63  ;;  %v5861_v49 = vpop.f32.mrb[14].mxu1  ;;  %v5840_v48 = vpop.f32.mrb[15].mxu0 }
 0x4cb   :  { %v5066_v50 = vadd.f32 %v5838_v36, %v5771_v47  ;;  %v5841_v25 = vadd.f32 %v5840_v48, %v5839_v4  ;;  %v5862_v53 = vpop.f32.mrb[15].mxu1 }
 0x4cc   :  { %v5863_v54 = vadd.f32 %v5862_v53, %v5861_v49 }
 0x4cd   :  { %v5107_v21 = vadd.f32 %v5860_v62, %v5066_v50  ;;  %v5069_v19 = vadd.f32 %v5841_v25, %v5771_v47 }
 0x4cf   :  { %v5110_v56 = vadd.f32 %v5863_v54, %v5069_v19 }
 0x587   :  { %v5880_v60 = vpop.f32.mrb[16].mxu0 }
 0x588   :  { %v5881_v5 = vpop.f32.mrb[17].mxu0 }
 0x589   :  { %v5882_v61 = vadd.f32 %v5881_v5, %v5880_v60  ;;  %v5883_v0 = vpop.f32.mrb[18].mxu0 }
 0x58a   :  { %v5884_v2 = vpop.f32.mrb[19].mxu0 }
 0x58b   :  { %v5885_v3 = vadd.f32 %v5884_v2, %v5883_v0  ;;  %v5148_v7 = vadd.f32 %v5882_v61, %v5107_v21 }
 0x58d   :  { %5154 = vmax.xlane.f32.xlu1 %v5148_v7  ;;  %v5151_v23 = vadd.f32 %v5885_v3, %v5110_v56 }
 0x591   :  { %5156 = vmax.xlane.f32.xlu1 %v5151_v23 }
 0x61a   :  { %v5155_v8 = vpop.xlane.xlu1 %5154 }
 0x61b   :  { %v5158_v57 = vsub.f32 %v5148_v7, %v5155_v8 }
 0x61d   :  { %v5160_v24 = vmul.f32 1.442695, %v5158_v57 }
 0x61e   :  { %v5157_v9 = vpop.xlane.xlu1 %5156 }
 0x61f   :  { %6902 = vpow2.f32 %v5160_v24  ;;  %v5159_v10 = vsub.f32 %v5151_v23, %v5157_v9 }
 0x621   :  { %v5162_v11 = vmul.f32 1.442695, %v5159_v10 }
 0x623   :  { %6904 = vpow2.f32 %v5162_v11 }
 0x629   :  { %v6903_v15 = vpop.eup %6902 }
 0x62a   :  { %5164 = vadd.xlane.f32.xlu0 %v6903_v15 }
 0x62d   :  { %v6905_v12 = vpop.eup %6904 }
 0x62e   :  { %5166 = vadd.xlane.f32.xlu1 %v6905_v12 }
 0x6b7   :  { %v5165_v40 = vpop.xlane.xlu0 %5164 }
 0x6b8   :  { %6906 = vrcp.f32 %v5165_v40 }
 0x6bb   :  { %v5167_v13 = vpop.xlane.xlu1 %5166 }
 0x6bc   :  { %6908 = vrcp.f32 %v5167_v13 }
 0x6c2   :  { %v6907_v16 = vpop.eup %6906 }
 0x6c3   :  { %v5170_v58 = vmul.f32 %v6907_v16, %v6903_v15 }
 0x6c5   :  { %5172 = vst [vmem:[#allocation17] sm:$0xff] %v5170_v58 }
 0x6c6   :  { %v6909_v17 = vpop.eup %6908 }
 0x6c7   :  { %v5171_v14 = vmul.f32 %v6909_v17, %v6905_v12 }
 0x6c9   :  { %5173 = vst [vmem:[#allocation17 + $0x8] sm:$0xff] %v5171_v14 }
 0x6ca   :  { %7119 = shalt.err (!%p7116_p6)
}
 0x6cb   :  { %s7120_s24 = scalar_lea.hbm %s7579_s9, 256 }
 0x6cc   :  { %p7121_p7 = scmp.ne.s32.totalorder %s7579_s9, %s7120_s24  ;;  %p7124_p8 = scmp.lt.u32.totalorder %s7120_s24, %s7579_s9 }
 0x6ce   :  { %p7126_p9 = pnand %p7124_p8, %p7121_p7 }
 0x6d0   :  { %7129 = shalt.err (!%p7126_p9)
}
 0x6d1   :  { %s7156_s11 = smov 128   ;;  %s7157_s13 = smov 8  }
 0x6d2   :  { %5185 = dma.vmem_to_hbm [thread:$0]  %s5180_s12, 256, %s7579_s9, [#allocation4], %s7156_s11, %s7156_s11, %s7157_s13  }
 0x6d3   :  { %7140 = dma.done.wait [#allocation4], 256  }
 0x6d4   :  { %7141 = vsyncadd [#allocation4], 4294967040 }
 0x6d5   :  { %5189 = vsyncpa [#allocation3], 1 }
 0x6d6   :  { %5190 = vsyncpa [#allocation6], 1 }
 0x6d7   :  { %5191 = vsyncpa [#allocation9], 1 }
 0x6d8   :  { %5192 = vsyncpa [#allocation12], 1 }
 0x6d9   :  { %5193 = vsyncpa [#allocation15], 1 }
 0x6da   :  { %5194 = vsyncpa [#allocation4], 1 }

</bundles_post_ra>
